<compile_context>
chip_gen: v6e
topology: v6e:2x2x1
jax: 0.10.0
libtpu: 0.0.40
codegen_flags: <defaults>
</compile_context>

<pallas_src>
import functools

import jax
import jax.numpy as jnp
from jax import lax
from jax.experimental import pallas as pl
from jax.experimental.pallas import tpu as pltpu


# ----------------------------------------------------------------------------
# small helpers
# ----------------------------------------------------------------------------
def _round_up(x, m):
    return -(-x // m) * m


def _pick_time_chunk(T, per_step_bytes, budget_bytes=8 << 20, max_steps=64):
    """Largest divisor of T whose streamed (double-buffered) bytes fit budget."""
    for c in range(min(T, max_steps), 0, -1):
        if T % c == 0 and c * per_step_bytes <= budget_bytes:
            return c
    return 1


# ----------------------------------------------------------------------------
# Pallas kernels
# ----------------------------------------------------------------------------
def _make_proj_kernel(pair_input):
    """Sequence-wide input projection; bf16 MXU operands, f32 accumulation."""
    if pair_input:
        def kernel(af_ref, ab_ref, wff_ref, wfb_ref, wbf_ref, wbb_ref,
                   bf_ref, bb_ref, gf_ref, gb_ref):
            af = af_ref[...].astype(jnp.bfloat16)
            ab = ab_ref[...].astype(jnp.bfloat16)
            gf_ref[...] = (
                jnp.dot(af, wff_ref[...], preferred_element_type=jnp.float32)
                + jnp.dot(ab, wfb_ref[...], preferred_element_type=jnp.float32)
                + bf_ref[...])
            gb_ref[...] = (
                jnp.dot(af, wbf_ref[...], preferred_element_type=jnp.float32)
                + jnp.dot(ab, wbb_ref[...], preferred_element_type=jnp.float32)
                + bb_ref[...])
    else:
        def kernel(x_ref, wf_ref, wb_ref, bf_ref, bb_ref, gf_ref, gb_ref):
            x = x_ref[...].astype(jnp.bfloat16)
            gf_ref[...] = (
                jnp.dot(x, wf_ref[...], preferred_element_type=jnp.float32)
                + bf_ref[...])
            gb_ref[...] = (
                jnp.dot(x, wb_ref[...], preferred_element_type=jnp.float32)
                + bb_ref[...])
    return kernel


def _make_recur_kernel(has_residual, chunk, B, H, unroll):
    """Bidirectional GRU recurrence over one time chunk.

    gf_ref / gb_ref : (chunk*B, 3H) precomputed gates (fwd chunk i / bwd chunk nc-1-i)
    res*_ref        : (chunk*B, H)  residual chunks (optional, fused add)
    wh_ref          : (2H, 6H)      block-diagonal fused hidden->hidden weights
    bhn_ref         : (1, 2H)       [bhn_fwd | bhn_bwd]
    out*_ref        : (chunk*B, H)  per-direction outputs
    h_ref           : (B, 2H)       hidden state [hf | hb], persists across chunks
    """
    def kernel(*refs):
        if has_residual:
            (gf_ref, gb_ref, resf_ref, resb_ref, wh_ref, bhn_ref,
             outf_ref, outb_ref, h_ref) = refs
        else:
            gf_ref, gb_ref, wh_ref, bhn_ref, outf_ref, outb_ref, h_ref = refs
            resf_ref = resb_ref = None

        ti = pl.program_id(1)

        @pl.when(ti == 0)
        def _():
            h_ref[...] = jnp.zeros_like(h_ref)

        wh = wh_ref[...]
        bhn = bhn_ref[...]
        bhn_f = bhn[:, :H]
        bhn_b = bhn[:, H:]

        def gru_gates(g, hh, bh, h_prev):
            r = jax.nn.sigmoid(g[:, :H] + hh[:, :H])
            z = jax.nn.sigmoid(g[:, H:2 * H] + hh[:, H:2 * H])
            n = jnp.tanh(g[:, 2 * H:] + r * (hh[:, 2 * H:] + bh))
            return (1.0 - z) * n + z * h_prev

        def step(t, h):
            rf = pl.multiple_of(t * B, B)                  # fwd: local time t
            rb = pl.multiple_of((chunk - 1 - t) * B, B)    # bwd: reversed in chunk
            gf = gf_ref[pl.ds(rf, B), :]
            gb = gb_ref[pl.ds(rb, B), :]
            # single fused hidden matmul per step (block-diagonal weights)
            hh = jnp.dot(h, wh, preferred_element_type=jnp.float32)   # (B, 6H)
            hf_new = gru_gates(gf, hh[:, :3 * H], bhn_f, h[:, :H])
            hb_new = gru_gates(gb, hh[:, 3 * H:], bhn_b, h[:, H:])
            of, ob = hf_new, hb_new
            if has_residual:                               # fused residual add
                of = of + resf_ref[pl.ds(rf, B), :]
                ob = ob + resb_ref[pl.ds(rb, B), :]
            outf_ref[pl.ds(rf, B), :] = of.astype(outf_ref.dtype)
            outb_ref[pl.ds(rb, B), :] = ob.astype(outb_ref.dtype)
            return jnp.concatenate([hf_new, hb_new], axis=1)

        h_final = lax.fori_loop(0, chunk, step, h_ref[...], unroll=unroll)
        h_ref[...] = h_final

    return kernel


def _make_head_kernel(chunk, B, H, unroll):
    """Masked time-mean accumulator + fused Linear + log-softmax (last chunk)."""
    def kernel(f_ref, b_ref, m_ref, wf_ref, wb_ref, bias_ref, logp_ref,
               numf_ref, numb_ref, den_ref):
        ti = pl.program_id(1)

        @pl.when(ti == 0)
        def _():
            numf_ref[...] = jnp.zeros_like(numf_ref)
            numb_ref[...] = jnp.zeros_like(numb_ref)
            den_ref[...] = jnp.zeros_like(den_ref)

        def step(t, carry):
            nf, nb, dn = carry
            r = pl.multiple_of(t * B, B)
            m = m_ref[pl.ds(r, B), :]                      # (B, 1)
            nf = nf + f_ref[pl.ds(r, B), :] * m
            nb = nb + b_ref[pl.ds(r, B), :] * m
            dn = dn + m
            return nf, nb, dn

        zf = jnp.zeros((B, H), jnp.float32)
        zd = jnp.zeros((B, 1), jnp.float32)
        nf, nb, dn = lax.fori_loop(0, chunk, step, (zf, zf, zd), unroll=unroll)
        numf_ref[...] += nf
        numb_ref[...] += nb
        den_ref[...] += dn

        @pl.when(ti == pl.num_programs(1) - 1)
        def _():
            den = jnp.maximum(den_ref[...], 1e-6)          # guard all-masked rows
            pf = numf_ref[...] / den
            pb = numb_ref[...] / den
            logits = (jnp.dot(pf, wf_ref[...], preferred_element_type=jnp.float32)
                      + jnp.dot(pb, wb_ref[...], preferred_element_type=jnp.float32)
                      + bias_ref[...])
            mx = jnp.max(logits, axis=1, keepdims=True)
            sh = logits - mx
            lse = jnp.log(jnp.sum(jnp.exp(sh), axis=1, keepdims=True))
            logp_ref[...] = sh - lse

    return kernel


# ----------------------------------------------------------------------------
# pallas_call wrappers
# ----------------------------------------------------------------------------
def bigru_layer(inputs, residual, p, *, t, b_tile, nbt, t_chunk, vmem_limit):
    """One bidirectional GRU layer (projection call + recurrence call).

    inputs  : (x,) for layer1 with x (nbt, t*b_tile, D), or (act_f, act_b) pair.
    residual: None or (res_f, res_b) fused into the output store.
    Returns (out_f, out_b), each (nbt, t*b_tile, H) float32.
    """
    H = p["bhn"].shape[1] // 2
    nc = t // t_chunk
    cb = t_chunk * b_tile
    rows = t * b_tile
    pair_input = len(inputs) == 2

    fwd = lambda bi, ti: (bi, ti, 0)
    rev = lambda bi, ti: (bi, nc - 1 - ti, 0)
    full = lambda a: pl.BlockSpec(a.shape, lambda bi, ti: (0,) * a.ndim)

    # ---- stage 1: input projection (fully parallel, pipelined, bf16 MXU) ----
    if pair_input:
        proj_args = (inputs[0], inputs[1], p["wi_ff"], p["wi_fb"],
                     p["wi_bf"], p["wi_bb"], p["bf"], p["bb"])
        proj_specs = [pl.BlockSpec((None, cb, H), fwd),
                      pl.BlockSpec((None, cb, H), fwd),
                      full(p["wi_ff"]), full(p["wi_fb"]),
                      full(p["wi_bf"]), full(p["wi_bb"]),
                      full(p["bf"]), full(p["bb"])]
    else:
        D = inputs[0].shape[-1]
        proj_args = (inputs[0], p["wi_f"], p["wi_b"], p["bf"], p["bb"])
        proj_specs = [pl.BlockSpec((None, cb, D), fwd),
                      full(p["wi_f"]), full(p["wi_b"]),
                      full(p["bf"]), full(p["bb"])]

    g_shape = jax.ShapeDtypeStruct((nbt, rows, 3 * H), jnp.float32)
    gf, gb = pl.pallas_call(
        _make_proj_kernel(pair_input),
        out_shape=(g_shape, g_shape),
        grid=(nbt, nc),
        in_specs=proj_specs,
        out_specs=(pl.BlockSpec((None, cb, 3 * H), fwd),
                   pl.BlockSpec((None, cb, 3 * H), fwd)),
        compiler_params=pltpu.CompilerParams(
            dimension_semantics=("parallel", "parallel"),
            vmem_limit_bytes=vmem_limit),
    )(*proj_args)

    # ---- stage 2: recurrence (time axis sequential, chunks streamed) ----
    has_res = residual is not None
    rec_args = [gf, gb]
    rec_specs = [pl.BlockSpec((None, cb, 3 * H), fwd),
                 pl.BlockSpec((None, cb, 3 * H), rev)]
    if has_res:
        rec_args += [residual[0], residual[1]]
        rec_specs += [pl.BlockSpec((None, cb, H), fwd),
                      pl.BlockSpec((None, cb, H), rev)]
    rec_args += [p["wh"], p["bhn"]]
    rec_specs += [full(p["wh"]), full(p["bhn"])]

    unroll = 4 if t_chunk % 4 == 0 else (2 if t_chunk % 2 == 0 else 1)
    o_shape = jax.ShapeDtypeStruct((nbt, rows, H), jnp.float32)
    out_f, out_b = pl.pallas_call(
        _make_recur_kernel(has_res, t_chunk, b_tile, H, unroll),
        out_shape=(o_shape, o_shape),
        grid=(nbt, nc),
        in_specs=rec_specs,
        out_specs=(pl.BlockSpec((None, cb, H), fwd),
                   pl.BlockSpec((None, cb, H), rev)),
        scratch_shapes=[pltpu.VMEM((b_tile, 2 * H), jnp.float32)],
        compiler_params=pltpu.CompilerParams(
            dimension_semantics=("parallel", "arbitrary"),
            vmem_limit_bytes=vmem_limit),
    )(*rec_args)
    return out_f, out_b


def head(out_f, out_b, m, wf, wb, bias, *, t, b_tile, nbt, t_chunk, vmem_limit):
    """Masked time-mean -> fused Linear -> log-softmax, T-chunked with accumulators."""
    H = out_f.shape[-1]
    O = wf.shape[-1]
    nc = t // t_chunk
    cb = t_chunk * b_tile
    fwd = lambda bi, ti: (bi, ti, 0)
    full = lambda a: pl.BlockSpec(a.shape, lambda bi, ti: (0,) * a.ndim)
    unroll = 4 if t_chunk % 4 == 0 else (2 if t_chunk % 2 == 0 else 1)

    logp = pl.pallas_call(
        _make_head_kernel(t_chunk, b_tile, H, unroll),
        out_shape=jax.ShapeDtypeStruct((nbt, b_tile, O), jnp.float32),
        grid=(nbt, nc),
        in_specs=[pl.BlockSpec((None, cb, H), fwd),
                  pl.BlockSpec((None, cb, H), fwd),
                  pl.BlockSpec((None, cb, 1), fwd),
                  full(wf), full(wb), full(bias)],
        out_specs=pl.BlockSpec((None, b_tile, O), lambda bi, ti: (bi, 0, 0)),
        scratch_shapes=[pltpu.VMEM((b_tile, H), jnp.float32),
                        pltpu.VMEM((b_tile, H), jnp.float32),
                        pltpu.VMEM((b_tile, 1), jnp.float32)],
        compiler_params=pltpu.CompilerParams(
            dimension_semantics=("parallel", "arbitrary"),
            vmem_limit_bytes=vmem_limit),
    )(out_f, out_b, m, wf, wb, bias)
    return logp.reshape(nbt * b_tile, O)


# ----------------------------------------------------------------------------
# parameter init (deterministic, synthetic) with gate / direction fusion
# ----------------------------------------------------------------------------
def init_gru_dir(key, d_in, h):
    """Per-direction fused weights, PyTorch gate order (r, z, n)."""
    k = 1.0 / jnp.sqrt(jnp.float32(h))
    ks = jax.random.split(key, 4)
    w_ih = jax.random.uniform(ks[0], (3, d_in, h), jnp.float32, -k, k)
    w_hh = jax.random.uniform(ks[1], (3, h, h), jnp.float32, -k, k)
    b_ih = jax.random.uniform(ks[2], (3, h), jnp.float32, -k, k)
    b_hh = jax.random.uniform(ks[3], (3, h), jnp.float32, -k, k)
    wi = jnp.concatenate([w_ih[0], w_ih[1], w_ih[2]], axis=1)   # (d_in, 3h)
    wh = jnp.concatenate([w_hh[0], w_hh[1], w_hh[2]], axis=1)   # (h, 3h)
    # folded bias: r/z get b_i + b_h; n gets b_in only (b_hn stays inside r*(.))
    bias = jnp.concatenate([b_ih[0] + b_hh[0], b_ih[1] + b_hh[1], b_ih[2]],
                           axis=0).reshape(1, 3 * h)
    bhn = b_hh[2].reshape(1, h)
    return wi, wh, bias, bhn


def init_bigru(key, d_in, h, pair_input):
    kf, kb = jax.random.split(key)
    wif, whf, bf, bhnf = init_gru_dir(kf, d_in, h)
    wib, whb, bb, bhnb = init_gru_dir(kb, d_in, h)
    # block-diagonal fused hidden->hidden weights: one (2h,6h) matmul per step
    wh = jnp.zeros((2 * h, 6 * h), jnp.float32)
    wh = wh.at[:h, :3 * h].set(whf)
    wh = wh.at[h:, 3 * h:].set(whb)
    p = dict(wh=wh, bhn=jnp.concatenate([bhnf, bhnb], axis=1), bf=bf, bb=bb)
    if pair_input:
        # input dim is 2h: split rows into fwd/bwd halves of the previous layer
        # so the concatenation never has to be materialized.
        p.update(wi_ff=wif[:h].astype(jnp.bfloat16),
                 wi_fb=wif[h:].astype(jnp.bfloat16),
                 wi_bf=wib[:h].astype(jnp.bfloat16),
                 wi_bb=wib[h:].astype(jnp.bfloat16))
    else:
        p.update(wi_f=wif.astype(jnp.bfloat16), wi_b=wib.astype(jnp.bfloat16))
    return p


def init_lannet(key, input_dim, hidden_dim, bn_dim, output_dim):
    h = hidden_dim // 2
    keys = jax.random.split(key, 8)
    params = {
        "layer1": init_bigru(keys[0], input_dim, h, pair_input=False),
        "layer11": init_bigru(keys[1], hidden_dim, h, pair_input=True),
        "layer12": init_bigru(keys[2], hidden_dim, h, pair_input=True),
        "layer13": init_bigru(keys[3], hidden_dim, h, pair_input=True),
    }
    k1 = 1.0 / jnp.sqrt(jnp.float32(hidden_dim))
    k2 = 1.0 / jnp.sqrt(jnp.float32(bn_dim))
    params["w1"] = jax.random.uniform(keys[4], (hidden_dim, bn_dim), jnp.float32, -k1, k1)
    params["b1"] = jax.random.uniform(keys[5], (1, bn_dim), jnp.float32, -k1, k1)
    params["w2"] = jax.random.uniform(keys[6], (bn_dim, output_dim), jnp.float32, -k2, k2)
    params["b2"] = jax.random.uniform(keys[7], (1, output_dim), jnp.float32, -k2, k2)
    return params


# ----------------------------------------------------------------------------
# LanNet forward
# ----------------------------------------------------------------------------
def lan_net_forward(params, src, mask, target, *, time_chunk=None, batch_tile=None):
    B, T, _ = src.shape
    H = params["layer1"]["bhn"].shape[1] // 2

    # batch tiling / padding (sublane aligned; padded rows sliced off at end)
    if batch_tile is None:
        batch_tile = min(_round_up(B, 8), 64)
    batch_tile = _round_up(batch_tile, 8)
    B_pad = _round_up(B, batch_tile)
    nbt = B_pad // batch_tile
    pad = B_pad - B
    if pad:
        src = jnp.pad(src, ((0, pad), (0, 0), (0, 0)))
        mask = jnp.pad(mask.astype(jnp.float32), ((0, pad), (0, 0)))
    mask = mask.astype(jnp.float32)

    # time chunking: largest divisor of T fitting a modest streamed-VMEM budget
    if time_chunk is None:
        per_step = batch_tile * (6 * H + 2 * H + 2 * H) * 4 * 2  # dbl-buffered bytes
        time_chunk = _pick_time_chunk(T, per_step)
    assert T % time_chunk == 0

    # single XLA transpose/reshape into tiled time-major 2D layout:
    # (B_pad, T, F) -> (nbt, T*batch_tile, F), row index = t*batch_tile + b
    def to_tiled(x):
        F = x.shape[-1]
        x = x.reshape(nbt, batch_tile, T, F)
        x = jnp.transpose(x, (0, 2, 1, 3))
        return x.reshape(nbt, T * batch_tile, F)

    x2d = to_tiled(src)
    m2d = to_tiled(mask[..., None])

    vmem_limit = 48 * 1024 * 1024   # headroom on v7x's 64 MiB; ample on v5e/v6e
    kw = dict(t=T, b_tile=batch_tile, nbt=nbt, t_chunk=time_chunk,
              vmem_limit=vmem_limit)

    h11 = bigru_layer((x2d,), None, params["layer1"], **kw)
    h12 = bigru_layer(h11, h11, params["layer11"], **kw)   # residual add fused
    h13 = bigru_layer(h12, h11, params["layer12"], **kw)
    h14 = bigru_layer(h13, h11, params["layer13"], **kw)

    # fuse the two head Linears (affine; masked-mean and Linear commute)
    w_full = jnp.dot(params["w1"], params["w2"])                   # (2H, O)
    b_full = jnp.dot(params["b1"], params["w2"]) + params["b2"]    # (1, O)

    logp = head(h14[0], h14[1], m2d, w_full[:H], w_full[H:], b_full, **kw)[:B]

    # scalar glue (gather / loss / accuracy) stays in plain JAX
    nll = -jnp.take_along_axis(logp, target, axis=1)
    ce_loss = nll.sum() / B
    predict = jnp.argmax(logp, axis=1).astype(target.dtype).reshape(-1, 1)
    correct = (predict == target).astype(jnp.float32)
    acc = correct.sum() / predict.shape[0]
    return acc, ce_loss


# ----------------------------------------------------------------------------
# pure-JAX reference (PyTorch semantics) for a correctness cross-check
# ----------------------------------------------------------------------------
def _ref_bigru(x, p, H):
    T, Bp, _ = x.shape
    if "wi_f" in p:
        wif = p["wi_f"].astype(jnp.float32)
        wib = p["wi_b"].astype(jnp.float32)
    else:
        wif = jnp.concatenate([p["wi_ff"], p["wi_fb"]], axis=0).astype(jnp.float32)
        wib = jnp.concatenate([p["wi_bf"], p["wi_bb"]], axis=0).astype(jnp.float32)
    whf = p["wh"][:H, :3 * H]
    whb = p["wh"][H:, 3 * H:]

    def direction(wi, wh, bias, bhn, xs):
        xs = xs.astype(jnp.bfloat16).astype(jnp.float32)   # match kernel MXU operands
        g_all = jnp.einsum("tbd,dg->tbg", xs, wi) + bias

        def step(h, g):
            hh = h @ wh
            r = jax.nn.sigmoid(g[:, :H] + hh[:, :H])
            z = jax.nn.sigmoid(g[:, H:2 * H] + hh[:, H:2 * H])
            n = jnp.tanh(g[:, 2 * H:] + r * (hh[:, 2 * H:] + bhn))
            h_new = (1.0 - z) * n + z * h
            return h_new, h_new

        _, ys = lax.scan(step, jnp.zeros((Bp, H), jnp.float32), g_all)
        return ys

    yf = direction(wif, whf, p["bf"], p["bhn"][:, :H], x)
    yb = direction(wib, whb, p["bb"], p["bhn"][:, H:], x[::-1])[::-1]
    return yf, yb


def ref_forward(params, src, mask, target):
    B, T, _ = src.shape
    H = params["layer1"]["bhn"].shape[1] // 2
    x = jnp.transpose(src, (1, 0, 2))
    h11 = jnp.concatenate(_ref_bigru(x, params["layer1"], H), axis=-1)
    h12 = jnp.concatenate(_ref_bigru(h11, params["layer11"], H), axis=-1) + h11
    h13 = jnp.concatenate(_ref_bigru(h12, params["layer12"], H), axis=-1) + h11
    h14 = jnp.concatenate(_ref_bigru(h13, params["layer13"], H), axis=-1) + h11
    out = jnp.einsum("tbh,hk->tbk", h14, params["w1"]) + params["b1"]
    out = jnp.einsum("tbk,ko->tbo", out, params["w2"]) + params["b2"]
    m = jnp.transpose(mask.astype(jnp.float32), (1, 0))[:, :, None]
    pooled = (out * m).sum(axis=0) / m.sum(axis=0)
    prob = jax.nn.softmax(pooled, axis=1)
    sel = jnp.take_along_axis(prob, target, axis=1)
    ce = -jnp.log(sel).sum() / B
    pred = jnp.argmax(prob, axis=1).reshape(-1, 1)
    acc = (pred == target).astype(jnp.float32).sum() / pred.shape[0]
    return acc, ce


# ----------------------------------------------------------------------------
# main
# ----------------------------------------------------------------------------
if __name__ == "__main__":
    B, T = 2, 8
    INPUT_DIM, HIDDEN_DIM, BN_DIM, OUTPUT_DIM = 16, 32, 24, 10

    root = jax.random.PRNGKey(0)
    k_param, k_src = jax.random.split(root)
    params = init_lannet(k_param, INPUT_DIM, HIDDEN_DIM, BN_DIM, OUTPUT_DIM)

    src = jax.random.normal(k_src, (B, T, INPUT_DIM), jnp.float32)
    lengths = jnp.array([T, 6], dtype=jnp.int32)
    mask = (jnp.arange(T)[None, :] < lengths[:, None]).astype(jnp.float32)
    target = jnp.array([[3], [7]], dtype=jnp.int32)

    # time_chunk=4 exercises the multi-chunk streaming / reversed-index path
    fwd = jax.jit(functools.partial(lan_net_forward, time_chunk=4))
    acc, ce_loss = fwd(params, src, mask, target)
    jax.block_until_ready((acc, ce_loss))

    ref_acc, ref_ce = ref_forward(params, src, mask, target)
    assert jnp.isfinite(ce_loss), "loss is not finite"
    assert abs(float(ce_loss) - float(ref_ce)) < 2e-2, (float(ce_loss), float(ref_ce))
    print("KERNEL_OK")
</pallas_src>

<mosaic_0001>
module attributes {stable_mosaic.version = 11 : i64} {
  func.func @kernel(%arg0: i32, %arg1: i32, %arg2: memref<1x32x16xf32, #tpu.memory_space<vmem>>, %arg3: memref<16x48xbf16, #tpu.memory_space<vmem>>, %arg4: memref<16x48xbf16, #tpu.memory_space<vmem>>, %arg5: memref<1x48xf32, #tpu.memory_space<vmem>>, %arg6: memref<1x48xf32, #tpu.memory_space<vmem>>, %arg7: memref<1x32x48xf32, #tpu.memory_space<vmem>>, %arg8: memref<1x32x48xf32, #tpu.memory_space<vmem>>) attributes {dimension_semantics = [#tpu.dimension_semantics<parallel>, #tpu.dimension_semantics<parallel>], iteration_bounds = array<i64: 1, 2>, scalar_prefetch = 0 : i64, scratch_operands = 0 : i64, tpu.core_type = #tpu.core_type<tc>, window_params = [{transform_indices = @transform_0, window_bounds = array<i64: 1, 32, 16>}, {pipeline_mode = #tpu.pipeline_mode<synchronous>, transform_indices = @transform_1, window_bounds = array<i64: 16, 48>}, {pipeline_mode = #tpu.pipeline_mode<synchronous>, transform_indices = @transform_2, window_bounds = array<i64: 16, 48>}, {pipeline_mode = #tpu.pipeline_mode<synchronous>, transform_indices = @transform_3, window_bounds = array<i64: 1, 48>}, {pipeline_mode = #tpu.pipeline_mode<synchronous>, transform_indices = @transform_4, window_bounds = array<i64: 1, 48>}, {transform_indices = @transform_5, window_bounds = array<i64: 1, 32, 48>}, {transform_indices = @transform_6, window_bounds = array<i64: 1, 32, 48>}]} {
    %c0 = arith.constant 0 : index
    %c0_0 = arith.constant 0 : index
    %c0_1 = arith.constant 0 : index
    %0 = vector.load %arg2[%c0, %c0_0, %c0_1] : memref<1x32x16xf32, #tpu.memory_space<vmem>>, vector<1x32x16xf32>
    %1 = vector.shape_cast %0 : vector<1x32x16xf32> to vector<32x16xf32>
    %2 = arith.truncf %1 : vector<32x16xf32> to vector<32x16xbf16>
    %c0_2 = arith.constant 0 : index
    %c0_3 = arith.constant 0 : index
    %3 = vector.load %arg3[%c0_2, %c0_3] : memref<16x48xbf16, #tpu.memory_space<vmem>>, vector<16x48xbf16>
    %cst = arith.constant dense<0.000000e+00> : vector<32x48xf32>
    %4 = tpu.matmul %2, %3, %cst {dimension_numbers = #tpu.dot_dimension_numbers<[1], [0], [0], [1], [0, 0, 1, 1], [], []>} : vector<32x16xbf16>, vector<16x48xbf16>, vector<32x48xf32> -> vector<32x48xf32>
    %c0_4 = arith.constant 0 : index
    %c0_5 = arith.constant 0 : index
    %5 = vector.load %arg5[%c0_4, %c0_5] : memref<1x48xf32, #tpu.memory_space<vmem>>, vector<1x48xf32>
    %6 = vector.broadcast %5 : vector<1x48xf32> to vector<32x48xf32>
    %7 = arith.addf %4, %6 : vector<32x48xf32>
    %c0_6 = arith.constant 0 : index
    %c0_7 = arith.constant 0 : index
    %c0_8 = arith.constant 0 : index
    %8 = vector.load %arg7[%c0_6, %c0_7, %c0_8] : memref<1x32x48xf32, #tpu.memory_space<vmem>>, vector<1x32x48xf32>
    %9 = vector.shape_cast %8 : vector<1x32x48xf32> to vector<32x48xf32>
    %10 = vector.shape_cast %7 : vector<32x48xf32> to vector<1x32x48xf32>
    tpu.vector_store %arg7[%c0_6, %c0_7, %c0_8], %10 {strides = array<i32>} : memref<1x32x48xf32, #tpu.memory_space<vmem>>, vector<1x32x48xf32>,
    %c0_9 = arith.constant 0 : index
    %c0_10 = arith.constant 0 : index
    %11 = vector.load %arg4[%c0_9, %c0_10] : memref<16x48xbf16, #tpu.memory_space<vmem>>, vector<16x48xbf16>
    %cst_11 = arith.constant dense<0.000000e+00> : vector<32x48xf32>
    %12 = tpu.matmul %2, %11, %cst_11 {dimension_numbers = #tpu.dot_dimension_numbers<[1], [0], [0], [1], [0, 0, 1, 1], [], []>} : vector<32x16xbf16>, vector<16x48xbf16>, vector<32x48xf32> -> vector<32x48xf32>
    %c0_12 = arith.constant 0 : index
    %c0_13 = arith.constant 0 : index
    %13 = vector.load %arg6[%c0_12, %c0_13] : memref<1x48xf32, #tpu.memory_space<vmem>>, vector<1x48xf32>
    %14 = vector.broadcast %13 : vector<1x48xf32> to vector<32x48xf32>
    %15 = arith.addf %12, %14 : vector<32x48xf32>
    %c0_14 = arith.constant 0 : index
    %c0_15 = arith.constant 0 : index
    %c0_16 = arith.constant 0 : index
    %16 = vector.load %arg8[%c0_14, %c0_15, %c0_16] : memref<1x32x48xf32, #tpu.memory_space<vmem>>, vector<1x32x48xf32>
    %17 = vector.shape_cast %16 : vector<1x32x48xf32> to vector<32x48xf32>
    %18 = vector.shape_cast %15 : vector<32x48xf32> to vector<1x32x48xf32>
    tpu.vector_store %arg8[%c0_14, %c0_15, %c0_16], %18 {strides = array<i32>} : memref<1x32x48xf32, #tpu.memory_space<vmem>>, vector<1x32x48xf32>,
    return
  }
  func.func @transform_0(%arg0: i32, %arg1: i32) -> (i32, i32, i32) {
    %c0_i32 = arith.constant 0 : i32
    %c0_i32_0 = arith.constant 0 : i32
    return %arg0, %arg1, %c0_i32 : i32, i32, i32
  }
  func.func @transform_1(%arg0: i32, %arg1: i32) -> (i32, i32) {
    %c0_i32 = arith.constant 0 : i32
    %c0_i32_0 = arith.constant 0 : i32
    %c0_i32_1 = arith.constant 0 : i32
    return %c0_i32, %c0_i32_0 : i32, i32
  }
  func.func @transform_2(%arg0: i32, %arg1: i32) -> (i32, i32) {
    %c0_i32 = arith.constant 0 : i32
    %c0_i32_0 = arith.constant 0 : i32
    %c0_i32_1 = arith.constant 0 : i32
    return %c0_i32, %c0_i32_0 : i32, i32
  }
  func.func @transform_3(%arg0: i32, %arg1: i32) -> (i32, i32) {
    %c0_i32 = arith.constant 0 : i32
    %c0_i32_0 = arith.constant 0 : i32
    %c0_i32_1 = arith.constant 0 : i32
    return %c0_i32, %c0_i32_0 : i32, i32
  }
  func.func @transform_4(%arg0: i32, %arg1: i32) -> (i32, i32) {
    %c0_i32 = arith.constant 0 : i32
    %c0_i32_0 = arith.constant 0 : i32
    %c0_i32_1 = arith.constant 0 : i32
    return %c0_i32, %c0_i32_0 : i32, i32
  }
  func.func @transform_5(%arg0: i32, %arg1: i32) -> (i32, i32, i32) {
    %c0_i32 = arith.constant 0 : i32
    %c0_i32_0 = arith.constant 0 : i32
    return %arg0, %arg1, %c0_i32 : i32, i32, i32
  }
  func.func @transform_6(%arg0: i32, %arg1: i32) -> (i32, i32, i32) {
    %c0_i32 = arith.constant 0 : i32
    %c0_i32_0 = arith.constant 0 : i32
    return %arg0, %arg1, %c0_i32 : i32, i32, i32
  }
}

module attributes {stable_mosaic.version = 11 : i64} {
  func.func @kernel(%arg0: i32, %arg1: i32, %arg2: memref<1x32x48xf32, #tpu.memory_space<vmem>>, %arg3: memref<1x32x48xf32, #tpu.memory_space<vmem>>, %arg4: memref<32x96xf32, #tpu.memory_space<vmem>>, %arg5: memref<1x32xf32, #tpu.memory_space<vmem>>, %arg6: memref<1x32x16xf32, #tpu.memory_space<vmem>>, %arg7: memref<1x32x16xf32, #tpu.memory_space<vmem>>, %arg8: memref<8x32xf32, #tpu.memory_space<vmem>>) attributes {dimension_semantics = [#tpu.dimension_semantics<parallel>, #tpu.dimension_semantics<arbitrary>], iteration_bounds = array<i64: 1, 2>, scalar_prefetch = 0 : i64, scratch_operands = 1 : i64, tpu.core_type = #tpu.core_type<tc>, window_params = [{transform_indices = @transform_0, window_bounds = array<i64: 1, 32, 48>}, {transform_indices = @transform_1, window_bounds = array<i64: 1, 32, 48>}, {pipeline_mode = #tpu.pipeline_mode<synchronous>, transform_indices = @transform_2, window_bounds = array<i64: 32, 96>}, {pipeline_mode = #tpu.pipeline_mode<synchronous>, transform_indices = @transform_3, window_bounds = array<i64: 1, 32>}, {transform_indices = @transform_4, window_bounds = array<i64: 1, 32, 16>}, {transform_indices = @transform_5, window_bounds = array<i64: 1, 32, 16>}]} {
    %c0_i32 = arith.constant 0 : i32
    %0 = arith.cmpi eq, %arg1, %c0_i32 : i32
    %1 = arith.extui %0 : i1 to i32
    %c0_i32_0 = arith.constant 0 : i32
    %2 = arith.cmpi ne, %1, %c0_i32_0 : i32
    scf.if %2 {
      %cst_79 = arith.constant 0.000000e+00 : f32
      %333 = vector.broadcast %cst_79 : f32 to vector<8x32xf32>
      %c0_80 = arith.constant 0 : index
      %c0_81 = arith.constant 0 : index
      %334 = vector.load %arg8[%c0_80, %c0_81] : memref<8x32xf32, #tpu.memory_space<vmem>>, vector<8x32xf32>
      tpu.vector_store %arg8[%c0_80, %c0_81], %333 {strides = array<i32>} : memref<8x32xf32, #tpu.memory_space<vmem>>, vector<8x32xf32>,
    } else {
    }
    %c0 = arith.constant 0 : index
    %c0_1 = arith.constant 0 : index
    %3 = vector.load %arg4[%c0, %c0_1] : memref<32x96xf32, #tpu.memory_space<vmem>>, vector<32x96xf32>
    %c0_2 = arith.constant 0 : index
    %c0_3 = arith.constant 0 : index
    %4 = vector.load %arg5[%c0_2, %c0_3] : memref<1x32xf32, #tpu.memory_space<vmem>>, vector<1x32xf32>
    %5 = vector.extract_strided_slice %4 {offsets = [0, 0], sizes = [1, 16], strides = [1, 1]} : vector<1x32xf32> to vector<1x16xf32>
    %6 = vector.extract_strided_slice %4 {offsets = [0, 16], sizes = [1, 16], strides = [1, 1]} : vector<1x32xf32> to vector<1x16xf32>
    %c0_4 = arith.constant 0 : index
    %c0_5 = arith.constant 0 : index
    %7 = vector.load %arg8[%c0_4, %c0_5] : memref<8x32xf32, #tpu.memory_space<vmem>>, vector<8x32xf32>
    %c0_i32_6 = arith.constant 0 : i32
    %c8_i32 = arith.constant 8 : i32
    %8 = arith.muli %c0_i32_6, %c8_i32 : i32
    %9 = tpu.assume_multiple %8, 8 : i32
    %c3_i32 = arith.constant 3 : i32
    %10 = arith.subi %c3_i32, %c0_i32_6 : i32
    %c8_i32_7 = arith.constant 8 : i32
    %11 = arith.muli %10, %c8_i32_7 : i32
    %12 = tpu.assume_multiple %11, 8 : i32
    %c0_8 = arith.constant 0 : index
    %13 = arith.index_cast %9 : i32 to index
    %c0_9 = arith.constant 0 : index
    %14 = vector.load %arg2[%c0_8, %13, %c0_9] : memref<1x32x48xf32, #tpu.memory_space<vmem>>, vector<1x8x48xf32>
    %15 = vector.shape_cast %14 : vector<1x8x48xf32> to vector<8x48xf32>
    %c0_10 = arith.constant 0 : index
    %16 = arith.index_cast %12 : i32 to index
    %c0_11 = arith.constant 0 : index
    %17 = vector.load %arg3[%c0_10, %16, %c0_11] : memref<1x32x48xf32, #tpu.memory_space<vmem>>, vector<1x8x48xf32>
    %18 = vector.shape_cast %17 : vector<1x8x48xf32> to vector<8x48xf32>
    %cst = arith.constant dense<0.000000e+00> : vector<8x96xf32>
    %19 = tpu.matmul %7, %3, %cst {dimension_numbers = #tpu.dot_dimension_numbers<[1], [0], [0], [1], [0, 0, 1, 1], [], []>} : vector<8x32xf32>, vector<32x96xf32>, vector<8x96xf32> -> vector<8x96xf32>
    %20 = vector.extract_strided_slice %19 {offsets = [0, 0], sizes = [8, 48], strides = [1, 1]} : vector<8x96xf32> to vector<8x48xf32>
    %21 = vector.extract_strided_slice %7 {offsets = [0, 0], sizes = [8, 16], strides = [1, 1]} : vector<8x32xf32> to vector<8x16xf32>
    %22 = vector.extract_strided_slice %15 {offsets = [0, 0], sizes = [8, 16], strides = [1, 1]} : vector<8x48xf32> to vector<8x16xf32>
    %23 = vector.extract_strided_slice %20 {offsets = [0, 0], sizes = [8, 16], strides = [1, 1]} : vector<8x48xf32> to vector<8x16xf32>
    %24 = arith.addf %22, %23 : vector<8x16xf32>
    %25 = arith.negf %24 : vector<8x16xf32>
    %26 = math.exp %25 : vector<8x16xf32>
    %cst_12 = arith.constant 1.000000e+00 : f32
    %27 = vector.broadcast %cst_12 : f32 to vector<8x16xf32>
    %28 = arith.addf %27, %26 : vector<8x16xf32>
    %29 = arith.divf %27, %28 : vector<8x16xf32>
    %30 = vector.extract_strided_slice %15 {offsets = [0, 16], sizes = [8, 16], strides = [1, 1]} : vector<8x48xf32> to vector<8x16xf32>
    %31 = vector.extract_strided_slice %20 {offsets = [0, 16], sizes = [8, 16], strides = [1, 1]} : vector<8x48xf32> to vector<8x16xf32>
    %32 = arith.addf %30, %31 : vector<8x16xf32>
    %33 = arith.negf %32 : vector<8x16xf32>
    %34 = math.exp %33 : vector<8x16xf32>
    %cst_13 = arith.constant 1.000000e+00 : f32
    %35 = vector.broadcast %cst_13 : f32 to vector<8x16xf32>
    %36 = arith.addf %35, %34 : vector<8x16xf32>
    %37 = arith.divf %35, %36 : vector<8x16xf32>
    %38 = vector.extract_strided_slice %15 {offsets = [0, 32], sizes = [8, 16], strides = [1, 1]} : vector<8x48xf32> to vector<8x16xf32>
    %39 = vector.extract_strided_slice %20 {offsets = [0, 32], sizes = [8, 16], strides = [1, 1]} : vector<8x48xf32> to vector<8x16xf32>
    %40 = vector.broadcast %5 : vector<1x16xf32> to vector<8x16xf32>
    %41 = arith.addf %39, %40 : vector<8x16xf32>
    %42 = arith.mulf %29, %41 : vector<8x16xf32>
    %43 = arith.addf %38, %42 : vector<8x16xf32>
    %44 = math.tanh %43 : vector<8x16xf32>
    %cst_14 = arith.constant 1.000000e+00 : f32
    %45 = vector.broadcast %cst_14 : f32 to vector<8x16xf32>
    %46 = arith.subf %45, %37 : vector<8x16xf32>
    %47 = arith.mulf %46, %44 : vector<8x16xf32>
    %48 = arith.mulf %37, %21 : vector<8x16xf32>
    %49 = arith.addf %47, %48 : vector<8x16xf32>
    %50 = vector.extract_strided_slice %19 {offsets = [0, 48], sizes = [8, 48], strides = [1, 1]} : vector<8x96xf32> to vector<8x48xf32>
    %51 = vector.extract_strided_slice %7 {offsets = [0, 16], sizes = [8, 16], strides = [1, 1]} : vector<8x32xf32> to vector<8x16xf32>
    %52 = vector.extract_strided_slice %18 {offsets = [0, 0], sizes = [8, 16], strides = [1, 1]} : vector<8x48xf32> to vector<8x16xf32>
    %53 = vector.extract_strided_slice %50 {offsets = [0, 0], sizes = [8, 16], strides = [1, 1]} : vector<8x48xf32> to vector<8x16xf32>
    %54 = arith.addf %52, %53 : vector<8x16xf32>
    %55 = arith.negf %54 : vector<8x16xf32>
    %56 = math.exp %55 : vector<8x16xf32>
    %cst_15 = arith.constant 1.000000e+00 : f32
    %57 = vector.broadcast %cst_15 : f32 to vector<8x16xf32>
    %58 = arith.addf %57, %56 : vector<8x16xf32>
    %59 = arith.divf %57, %58 : vector<8x16xf32>
    %60 = vector.extract_strided_slice %18 {offsets = [0, 16], sizes = [8, 16], strides = [1, 1]} : vector<8x48xf32> to vector<8x16xf32>
    %61 = vector.extract_strided_slice %50 {offsets = [0, 16], sizes = [8, 16], strides = [1, 1]} : vector<8x48xf32> to vector<8x16xf32>
    %62 = arith.addf %60, %61 : vector<8x16xf32>
    %63 = arith.negf %62 : vector<8x16xf32>
    %64 = math.exp %63 : vector<8x16xf32>
    %cst_16 = arith.constant 1.000000e+00 : f32
    %65 = vector.broadcast %cst_16 : f32 to vector<8x16xf32>
    %66 = arith.addf %65, %64 : vector<8x16xf32>
    %67 = arith.divf %65, %66 : vector<8x16xf32>
    %68 = vector.extract_strided_slice %18 {offsets = [0, 32], sizes = [8, 16], strides = [1, 1]} : vector<8x48xf32> to vector<8x16xf32>
    %69 = vector.extract_strided_slice %50 {offsets = [0, 32], sizes = [8, 16], strides = [1, 1]} : vector<8x48xf32> to vector<8x16xf32>
    %70 = vector.broadcast %6 : vector<1x16xf32> to vector<8x16xf32>
    %71 = arith.addf %69, %70 : vector<8x16xf32>
    %72 = arith.mulf %59, %71 : vector<8x16xf32>
    %73 = arith.addf %68, %72 : vector<8x16xf32>
    %74 = math.tanh %73 : vector<8x16xf32>
    %cst_17 = arith.constant 1.000000e+00 : f32
    %75 = vector.broadcast %cst_17 : f32 to vector<8x16xf32>
    %76 = arith.subf %75, %67 : vector<8x16xf32>
    %77 = arith.mulf %76, %74 : vector<8x16xf32>
    %78 = arith.mulf %67, %51 : vector<8x16xf32>
    %79 = arith.addf %77, %78 : vector<8x16xf32>
    %c0_18 = arith.constant 0 : index
    %80 = arith.index_cast %9 : i32 to index
    %c0_19 = arith.constant 0 : index
    %81 = vector.load %arg6[%c0_18, %80, %c0_19] : memref<1x32x16xf32, #tpu.memory_space<vmem>>, vector<1x8x16xf32>
    %82 = vector.shape_cast %81 : vector<1x8x16xf32> to vector<8x16xf32>
    %83 = vector.shape_cast %49 : vector<8x16xf32> to vector<1x8x16xf32>
    tpu.vector_store %arg6[%c0_18, %80, %c0_19], %83 {strides = array<i32>} : memref<1x32x16xf32, #tpu.memory_space<vmem>>, vector<1x8x16xf32>,
    %c0_20 = arith.constant 0 : index
    %84 = arith.index_cast %12 : i32 to index
    %c0_21 = arith.constant 0 : index
    %85 = vector.load %arg7[%c0_20, %84, %c0_21] : memref<1x32x16xf32, #tpu.memory_space<vmem>>, vector<1x8x16xf32>
    %86 = vector.shape_cast %85 : vector<1x8x16xf32> to vector<8x16xf32>
    %87 = vector.shape_cast %79 : vector<8x16xf32> to vector<1x8x16xf32>
    tpu.vector_store %arg7[%c0_20, %84, %c0_21], %87 {strides = array<i32>} : memref<1x32x16xf32, #tpu.memory_space<vmem>>, vector<1x8x16xf32>,
    %88 = tpu.concatenate %49, %79 in 1 : vector<8x16xf32>, vector<8x16xf32> -> vector<8x32xf32>
    %c1_i32 = arith.constant 1 : i32
    %c8_i32_22 = arith.constant 8 : i32
    %89 = arith.muli %c1_i32, %c8_i32_22 : i32
    %90 = tpu.assume_multiple %89, 8 : i32
    %c3_i32_23 = arith.constant 3 : i32
    %91 = arith.subi %c3_i32_23, %c1_i32 : i32
    %c8_i32_24 = arith.constant 8 : i32
    %92 = arith.muli %91, %c8_i32_24 : i32
    %93 = tpu.assume_multiple %92, 8 : i32
    %c0_25 = arith.constant 0 : index
    %94 = arith.index_cast %90 : i32 to index
    %c0_26 = arith.constant 0 : index
    %95 = vector.load %arg2[%c0_25, %94, %c0_26] : memref<1x32x48xf32, #tpu.memory_space<vmem>>, vector<1x8x48xf32>
    %96 = vector.shape_cast %95 : vector<1x8x48xf32> to vector<8x48xf32>
    %c0_27 = arith.constant 0 : index
    %97 = arith.index_cast %93 : i32 to index
    %c0_28 = arith.constant 0 : index
    %98 = vector.load %arg3[%c0_27, %97, %c0_28] : memref<1x32x48xf32, #tpu.memory_space<vmem>>, vector<1x8x48xf32>
    %99 = vector.shape_cast %98 : vector<1x8x48xf32> to vector<8x48xf32>
    %cst_29 = arith.constant dense<0.000000e+00> : vector<8x96xf32>
    %100 = tpu.matmul %88, %3, %cst_29 {dimension_numbers = #tpu.dot_dimension_numbers<[1], [0], [0], [1], [0, 0, 1, 1], [], []>} : vector<8x32xf32>, vector<32x96xf32>, vector<8x96xf32> -> vector<8x96xf32>
    %101 = vector.extract_strided_slice %100 {offsets = [0, 0], sizes = [8, 48], strides = [1, 1]} : vector<8x96xf32> to vector<8x48xf32>
    %102 = vector.extract_strided_slice %88 {offsets = [0, 0], sizes = [8, 16], strides = [1, 1]} : vector<8x32xf32> to vector<8x16xf32>
    %103 = vector.extract_strided_slice %96 {offsets = [0, 0], sizes = [8, 16], strides = [1, 1]} : vector<8x48xf32> to vector<8x16xf32>
    %104 = vector.extract_strided_slice %101 {offsets = [0, 0], sizes = [8, 16], strides = [1, 1]} : vector<8x48xf32> to vector<8x16xf32>
    %105 = arith.addf %103, %104 : vector<8x16xf32>
    %106 = arith.negf %105 : vector<8x16xf32>
    %107 = math.exp %106 : vector<8x16xf32>
    %cst_30 = arith.constant 1.000000e+00 : f32
    %108 = vector.broadcast %cst_30 : f32 to vector<8x16xf32>
    %109 = arith.addf %108, %107 : vector<8x16xf32>
    %110 = arith.divf %108, %109 : vector<8x16xf32>
    %111 = vector.extract_strided_slice %96 {offsets = [0, 16], sizes = [8, 16], strides = [1, 1]} : vector<8x48xf32> to vector<8x16xf32>
    %112 = vector.extract_strided_slice %101 {offsets = [0, 16], sizes = [8, 16], strides = [1, 1]} : vector<8x48xf32> to vector<8x16xf32>
    %113 = arith.addf %111, %112 : vector<8x16xf32>
    %114 = arith.negf %113 : vector<8x16xf32>
    %115 = math.exp %114 : vector<8x16xf32>
    %cst_31 = arith.constant 1.000000e+00 : f32
    %116 = vector.broadcast %cst_31 : f32 to vector<8x16xf32>
    %117 = arith.addf %116, %115 : vector<8x16xf32>
    %118 = arith.divf %116, %117 : vector<8x16xf32>
    %119 = vector.extract_strided_slice %96 {offsets = [0, 32], sizes = [8, 16], strides = [1, 1]} : vector<8x48xf32> to vector<8x16xf32>
    %120 = vector.extract_strided_slice %101 {offsets = [0, 32], sizes = [8, 16], strides = [1, 1]} : vector<8x48xf32> to vector<8x16xf32>
    %121 = vector.broadcast %5 : vector<1x16xf32> to vector<8x16xf32>
    %122 = arith.addf %120, %121 : vector<8x16xf32>
    %123 = arith.mulf %110, %122 : vector<8x16xf32>
    %124 = arith.addf %119, %123 : vector<8x16xf32>
    %125 = math.tanh %124 : vector<8x16xf32>
    %cst_32 = arith.constant 1.000000e+00 : f32
    %126 = vector.broadcast %cst_32 : f32 to vector<8x16xf32>
    %127 = arith.subf %126, %118 : vector<8x16xf32>
    %128 = arith.mulf %127, %125 : vector<8x16xf32>
    %129 = arith.mulf %118, %102 : vector<8x16xf32>
    %130 = arith.addf %128, %129 : vector<8x16xf32>
    %131 = vector.extract_strided_slice %100 {offsets = [0, 48], sizes = [8, 48], strides = [1, 1]} : vector<8x96xf32> to vector<8x48xf32>
    %132 = vector.extract_strided_slice %88 {offsets = [0, 16], sizes = [8, 16], strides = [1, 1]} : vector<8x32xf32> to vector<8x16xf32>
    %133 = vector.extract_strided_slice %99 {offsets = [0, 0], sizes = [8, 16], strides = [1, 1]} : vector<8x48xf32> to vector<8x16xf32>
    %134 = vector.extract_strided_slice %131 {offsets = [0, 0], sizes = [8, 16], strides = [1, 1]} : vector<8x48xf32> to vector<8x16xf32>
    %135 = arith.addf %133, %134 : vector<8x16xf32>
    %136 = arith.negf %135 : vector<8x16xf32>
    %137 = math.exp %136 : vector<8x16xf32>
    %cst_33 = arith.constant 1.000000e+00 : f32
    %138 = vector.broadcast %cst_33 : f32 to vector<8x16xf32>
    %139 = arith.addf %138, %137 : vector<8x16xf32>
    %140 = arith.divf %138, %139 : vector<8x16xf32>
    %141 = vector.extract_strided_slice %99 {offsets = [0, 16], sizes = [8, 16], strides = [1, 1]} : vector<8x48xf32> to vector<8x16xf32>
    %142 = vector.extract_strided_slice %131 {offsets = [0, 16], sizes = [8, 16], strides = [1, 1]} : vector<8x48xf32> to vector<8x16xf32>
    %143 = arith.addf %141, %142 : vector<8x16xf32>
    %144 = arith.negf %143 : vector<8x16xf32>
    %145 = math.exp %144 : vector<8x16xf32>
    %cst_34 = arith.constant 1.000000e+00 : f32
    %146 = vector.broadcast %cst_34 : f32 to vector<8x16xf32>
    %147 = arith.addf %146, %145 : vector<8x16xf32>
    %148 = arith.divf %146, %147 : vector<8x16xf32>
    %149 = vector.extract_strided_slice %99 {offsets = [0, 32], sizes = [8, 16], strides = [1, 1]} : vector<8x48xf32> to vector<8x16xf32>
    %150 = vector.extract_strided_slice %131 {offsets = [0, 32], sizes = [8, 16], strides = [1, 1]} : vector<8x48xf32> to vector<8x16xf32>
    %151 = vector.broadcast %6 : vector<1x16xf32> to vector<8x16xf32>
    %152 = arith.addf %150, %151 : vector<8x16xf32>
    %153 = arith.mulf %140, %152 : vector<8x16xf32>
    %154 = arith.addf %149, %153 : vector<8x16xf32>
    %155 = math.tanh %154 : vector<8x16xf32>
    %cst_35 = arith.constant 1.000000e+00 : f32
    %156 = vector.broadcast %cst_35 : f32 to vector<8x16xf32>
    %157 = arith.subf %156, %148 : vector<8x16xf32>
    %158 = arith.mulf %157, %155 : vector<8x16xf32>
    %159 = arith.mulf %148, %132 : vector<8x16xf32>
    %160 = arith.addf %158, %159 : vector<8x16xf32>
    %c0_36 = arith.constant 0 : index
    %161 = arith.index_cast %90 : i32 to index
    %c0_37 = arith.constant 0 : index
    %162 = vector.load %arg6[%c0_36, %161, %c0_37] : memref<1x32x16xf32, #tpu.memory_space<vmem>>, vector<1x8x16xf32>
    %163 = vector.shape_cast %162 : vector<1x8x16xf32> to vector<8x16xf32>
    %164 = vector.shape_cast %130 : vector<8x16xf32> to vector<1x8x16xf32>
    tpu.vector_store %arg6[%c0_36, %161, %c0_37], %164 {strides = array<i32>} : memref<1x32x16xf32, #tpu.memory_space<vmem>>, vector<1x8x16xf32>,
    %c0_38 = arith.constant 0 : index
    %165 = arith.index_cast %93 : i32 to index
    %c0_39 = arith.constant 0 : index
    %166 = vector.load %arg7[%c0_38, %165, %c0_39] : memref<1x32x16xf32, #tpu.memory_space<vmem>>, vector<1x8x16xf32>
    %167 = vector.shape_cast %166 : vector<1x8x16xf32> to vector<8x16xf32>
    %168 = vector.shape_cast %160 : vector<8x16xf32> to vector<1x8x16xf32>
    tpu.vector_store %arg7[%c0_38, %165, %c0_39], %168 {strides = array<i32>} : memref<1x32x16xf32, #tpu.memory_space<vmem>>, vector<1x8x16xf32>,
    %169 = tpu.concatenate %130, %160 in 1 : vector<8x16xf32>, vector<8x16xf32> -> vector<8x32xf32>
    %c2_i32 = arith.constant 2 : i32
    %c8_i32_40 = arith.constant 8 : i32
    %170 = arith.muli %c2_i32, %c8_i32_40 : i32
    %171 = tpu.assume_multiple %170, 8 : i32
    %c3_i32_41 = arith.constant 3 : i32
    %172 = arith.subi %c3_i32_41, %c2_i32 : i32
    %c8_i32_42 = arith.constant 8 : i32
    %173 = arith.muli %172, %c8_i32_42 : i32
    %174 = tpu.assume_multiple %173, 8 : i32
    %c0_43 = arith.constant 0 : index
    %175 = arith.index_cast %171 : i32 to index
    %c0_44 = arith.constant 0 : index
    %176 = vector.load %arg2[%c0_43, %175, %c0_44] : memref<1x32x48xf32, #tpu.memory_space<vmem>>, vector<1x8x48xf32>
    %177 = vector.shape_cast %176 : vector<1x8x48xf32> to vector<8x48xf32>
    %c0_45 = arith.constant 0 : index
    %178 = arith.index_cast %174 : i32 to index
    %c0_46 = arith.constant 0 : index
    %179 = vector.load %arg3[%c0_45, %178, %c0_46] : memref<1x32x48xf32, #tpu.memory_space<vmem>>, vector<1x8x48xf32>
    %180 = vector.shape_cast %179 : vector<1x8x48xf32> to vector<8x48xf32>
    %cst_47 = arith.constant dense<0.000000e+00> : vector<8x96xf32>
    %181 = tpu.matmul %169, %3, %cst_47 {dimension_numbers = #tpu.dot_dimension_numbers<[1], [0], [0], [1], [0, 0, 1, 1], [], []>} : vector<8x32xf32>, vector<32x96xf32>, vector<8x96xf32> -> vector<8x96xf32>
    %182 = vector.extract_strided_slice %181 {offsets = [0, 0], sizes = [8, 48], strides = [1, 1]} : vector<8x96xf32> to vector<8x48xf32>
    %183 = vector.extract_strided_slice %169 {offsets = [0, 0], sizes = [8, 16], strides = [1, 1]} : vector<8x32xf32> to vector<8x16xf32>
    %184 = vector.extract_strided_slice %177 {offsets = [0, 0], sizes = [8, 16], strides = [1, 1]} : vector<8x48xf32> to vector<8x16xf32>
    %185 = vector.extract_strided_slice %182 {offsets = [0, 0], sizes = [8, 16], strides = [1, 1]} : vector<8x48xf32> to vector<8x16xf32>
    %186 = arith.addf %184, %185 : vector<8x16xf32>
    %187 = arith.negf %186 : vector<8x16xf32>
    %188 = math.exp %187 : vector<8x16xf32>
    %cst_48 = arith.constant 1.000000e+00 : f32
    %189 = vector.broadcast %cst_48 : f32 to vector<8x16xf32>
    %190 = arith.addf %189, %188 : vector<8x16xf32>
    %191 = arith.divf %189, %190 : vector<8x16xf32>
    %192 = vector.extract_strided_slice %177 {offsets = [0, 16], sizes = [8, 16], strides = [1, 1]} : vector<8x48xf32> to vector<8x16xf32>
    %193 = vector.extract_strided_slice %182 {offsets = [0, 16], sizes = [8, 16], strides = [1, 1]} : vector<8x48xf32> to vector<8x16xf32>
    %194 = arith.addf %192, %193 : vector<8x16xf32>
    %195 = arith.negf %194 : vector<8x16xf32>
    %196 = math.exp %195 : vector<8x16xf32>
    %cst_49 = arith.constant 1.000000e+00 : f32
    %197 = vector.broadcast %cst_49 : f32 to vector<8x16xf32>
    %198 = arith.addf %197, %196 : vector<8x16xf32>
    %199 = arith.divf %197, %198 : vector<8x16xf32>
    %200 = vector.extract_strided_slice %177 {offsets = [0, 32], sizes = [8, 16], strides = [1, 1]} : vector<8x48xf32> to vector<8x16xf32>
    %201 = vector.extract_strided_slice %182 {offsets = [0, 32], sizes = [8, 16], strides = [1, 1]} : vector<8x48xf32> to vector<8x16xf32>
    %202 = vector.broadcast %5 : vector<1x16xf32> to vector<8x16xf32>
    %203 = arith.addf %201, %202 : vector<8x16xf32>
    %204 = arith.mulf %191, %203 : vector<8x16xf32>
    %205 = arith.addf %200, %204 : vector<8x16xf32>
    %206 = math.tanh %205 : vector<8x16xf32>
    %cst_50 = arith.constant 1.000000e+00 : f32
    %207 = vector.broadcast %cst_50 : f32 to vector<8x16xf32>
    %208 = arith.subf %207, %199 : vector<8x16xf32>
    %209 = arith.mulf %208, %206 : vector<8x16xf32>
    %210 = arith.mulf %199, %183 : vector<8x16xf32>
    %211 = arith.addf %209, %210 : vector<8x16xf32>
    %212 = vector.extract_strided_slice %181 {offsets = [0, 48], sizes = [8, 48], strides = [1, 1]} : vector<8x96xf32> to vector<8x48xf32>
    %213 = vector.extract_strided_slice %169 {offsets = [0, 16], sizes = [8, 16], strides = [1, 1]} : vector<8x32xf32> to vector<8x16xf32>
    %214 = vector.extract_strided_slice %180 {offsets = [0, 0], sizes = [8, 16], strides = [1, 1]} : vector<8x48xf32> to vector<8x16xf32>
    %215 = vector.extract_strided_slice %212 {offsets = [0, 0], sizes = [8, 16], strides = [1, 1]} : vector<8x48xf32> to vector<8x16xf32>
    %216 = arith.addf %214, %215 : vector<8x16xf32>
    %217 = arith.negf %216 : vector<8x16xf32>
    %218 = math.exp %217 : vector<8x16xf32>
    %cst_51 = arith.constant 1.000000e+00 : f32
    %219 = vector.broadcast %cst_51 : f32 to vector<8x16xf32>
    %220 = arith.addf %219, %218 : vector<8x16xf32>
    %221 = arith.divf %219, %220 : vector<8x16xf32>
    %222 = vector.extract_strided_slice %180 {offsets = [0, 16], sizes = [8, 16], strides = [1, 1]} : vector<8x48xf32> to vector<8x16xf32>
    %223 = vector.extract_strided_slice %212 {offsets = [0, 16], sizes = [8, 16], strides = [1, 1]} : vector<8x48xf32> to vector<8x16xf32>
    %224 = arith.addf %222, %223 : vector<8x16xf32>
    %225 = arith.negf %224 : vector<8x16xf32>
    %226 = math.exp %225 : vector<8x16xf32>
    %cst_52 = arith.constant 1.000000e+00 : f32
    %227 = vector.broadcast %cst_52 : f32 to vector<8x16xf32>
    %228 = arith.addf %227, %226 : vector<8x16xf32>
    %229 = arith.divf %227, %228 : vector<8x16xf32>
    %230 = vector.extract_strided_slice %180 {offsets = [0, 32], sizes = [8, 16], strides = [1, 1]} : vector<8x48xf32> to vector<8x16xf32>
    %231 = vector.extract_strided_slice %212 {offsets = [0, 32], sizes = [8, 16], strides = [1, 1]} : vector<8x48xf32> to vector<8x16xf32>
    %232 = vector.broadcast %6 : vector<1x16xf32> to vector<8x16xf32>
    %233 = arith.addf %231, %232 : vector<8x16xf32>
    %234 = arith.mulf %221, %233 : vector<8x16xf32>
    %235 = arith.addf %230, %234 : vector<8x16xf32>
    %236 = math.tanh %235 : vector<8x16xf32>
    %cst_53 = arith.constant 1.000000e+00 : f32
    %237 = vector.broadcast %cst_53 : f32 to vector<8x16xf32>
    %238 = arith.subf %237, %229 : vector<8x16xf32>
    %239 = arith.mulf %238, %236 : vector<8x16xf32>
    %240 = arith.mulf %229, %213 : vector<8x16xf32>
    %241 = arith.addf %239, %240 : vector<8x16xf32>
    %c0_54 = arith.constant 0 : index
    %242 = arith.index_cast %171 : i32 to index
    %c0_55 = arith.constant 0 : index
    %243 = vector.load %arg6[%c0_54, %242, %c0_55] : memref<1x32x16xf32, #tpu.memory_space<vmem>>, vector<1x8x16xf32>
    %244 = vector.shape_cast %243 : vector<1x8x16xf32> to vector<8x16xf32>
    %245 = vector.shape_cast %211 : vector<8x16xf32> to vector<1x8x16xf32>
    tpu.vector_store %arg6[%c0_54, %242, %c0_55], %245 {strides = array<i32>} : memref<1x32x16xf32, #tpu.memory_space<vmem>>, vector<1x8x16xf32>,
    %c0_56 = arith.constant 0 : index
    %246 = arith.index_cast %174 : i32 to index
    %c0_57 = arith.constant 0 : index
    %247 = vector.load %arg7[%c0_56, %246, %c0_57] : memref<1x32x16xf32, #tpu.memory_space<vmem>>, vector<1x8x16xf32>
    %248 = vector.shape_cast %247 : vector<1x8x16xf32> to vector<8x16xf32>
    %249 = vector.shape_cast %241 : vector<8x16xf32> to vector<1x8x16xf32>
    tpu.vector_store %arg7[%c0_56, %246, %c0_57], %249 {strides = array<i32>} : memref<1x32x16xf32, #tpu.memory_space<vmem>>, vector<1x8x16xf32>,
    %250 = tpu.concatenate %211, %241 in 1 : vector<8x16xf32>, vector<8x16xf32> -> vector<8x32xf32>
    %c3_i32_58 = arith.constant 3 : i32
    %c8_i32_59 = arith.constant 8 : i32
    %251 = arith.muli %c3_i32_58, %c8_i32_59 : i32
    %252 = tpu.assume_multiple %251, 8 : i32
    %c3_i32_60 = arith.constant 3 : i32
    %253 = arith.subi %c3_i32_60, %c3_i32_58 : i32
    %c8_i32_61 = arith.constant 8 : i32
    %254 = arith.muli %253, %c8_i32_61 : i32
    %255 = tpu.assume_multiple %254, 8 : i32
    %c0_62 = arith.constant 0 : index
    %256 = arith.index_cast %252 : i32 to index
    %c0_63 = arith.constant 0 : index
    %257 = vector.load %arg2[%c0_62, %256, %c0_63] : memref<1x32x48xf32, #tpu.memory_space<vmem>>, vector<1x8x48xf32>
    %258 = vector.shape_cast %257 : vector<1x8x48xf32> to vector<8x48xf32>
    %c0_64 = arith.constant 0 : index
    %259 = arith.index_cast %255 : i32 to index
    %c0_65 = arith.constant 0 : index
    %260 = vector.load %arg3[%c0_64, %259, %c0_65] : memref<1x32x48xf32, #tpu.memory_space<vmem>>, vector<1x8x48xf32>
    %261 = vector.shape_cast %260 : vector<1x8x48xf32> to vector<8x48xf32>
    %cst_66 = arith.constant dense<0.000000e+00> : vector<8x96xf32>
    %262 = tpu.matmul %250, %3, %cst_66 {dimension_numbers = #tpu.dot_dimension_numbers<[1], [0], [0], [1], [0, 0, 1, 1], [], []>} : vector<8x32xf32>, vector<32x96xf32>, vector<8x96xf32> -> vector<8x96xf32>
    %263 = vector.extract_strided_slice %262 {offsets = [0, 0], sizes = [8, 48], strides = [1, 1]} : vector<8x96xf32> to vector<8x48xf32>
    %264 = vector.extract_strided_slice %250 {offsets = [0, 0], sizes = [8, 16], strides = [1, 1]} : vector<8x32xf32> to vector<8x16xf32>
    %265 = vector.extract_strided_slice %258 {offsets = [0, 0], sizes = [8, 16], strides = [1, 1]} : vector<8x48xf32> to vector<8x16xf32>
    %266 = vector.extract_strided_slice %263 {offsets = [0, 0], sizes = [8, 16], strides = [1, 1]} : vector<8x48xf32> to vector<8x16xf32>
    %267 = arith.addf %265, %266 : vector<8x16xf32>
    %268 = arith.negf %267 : vector<8x16xf32>
    %269 = math.exp %268 : vector<8x16xf32>
    %cst_67 = arith.constant 1.000000e+00 : f32
    %270 = vector.broadcast %cst_67 : f32 to vector<8x16xf32>
    %271 = arith.addf %270, %269 : vector<8x16xf32>
    %272 = arith.divf %270, %271 : vector<8x16xf32>
    %273 = vector.extract_strided_slice %258 {offsets = [0, 16], sizes = [8, 16], strides = [1, 1]} : vector<8x48xf32> to vector<8x16xf32>
    %274 = vector.extract_strided_slice %263 {offsets = [0, 16], sizes = [8, 16], strides = [1, 1]} : vector<8x48xf32> to vector<8x16xf32>
    %275 = arith.addf %273, %274 : vector<8x16xf32>
    %276 = arith.negf %275 : vector<8x16xf32>
    %277 = math.exp %276 : vector<8x16xf32>
    %cst_68 = arith.constant 1.000000e+00 : f32
    %278 = vector.broadcast %cst_68 : f32 to vector<8x16xf32>
    %279 = arith.addf %278, %277 : vector<8x16xf32>
    %280 = arith.divf %278, %279 : vector<8x16xf32>
    %281 = vector.extract_strided_slice %258 {offsets = [0, 32], sizes = [8, 16], strides = [1, 1]} : vector<8x48xf32> to vector<8x16xf32>
    %282 = vector.extract_strided_slice %263 {offsets = [0, 32], sizes = [8, 16], strides = [1, 1]} : vector<8x48xf32> to vector<8x16xf32>
    %283 = vector.broadcast %5 : vector<1x16xf32> to vector<8x16xf32>
    %284 = arith.addf %282, %283 : vector<8x16xf32>
    %285 = arith.mulf %272, %284 : vector<8x16xf32>
    %286 = arith.addf %281, %285 : vector<8x16xf32>
    %287 = math.tanh %286 : vector<8x16xf32>
    %cst_69 = arith.constant 1.000000e+00 : f32
    %288 = vector.broadcast %cst_69 : f32 to vector<8x16xf32>
    %289 = arith.subf %288, %280 : vector<8x16xf32>
    %290 = arith.mulf %289, %287 : vector<8x16xf32>
    %291 = arith.mulf %280, %264 : vector<8x16xf32>
    %292 = arith.addf %290, %291 : vector<8x16xf32>
    %293 = vector.extract_strided_slice %262 {offsets = [0, 48], sizes = [8, 48], strides = [1, 1]} : vector<8x96xf32> to vector<8x48xf32>
    %294 = vector.extract_strided_slice %250 {offsets = [0, 16], sizes = [8, 16], strides = [1, 1]} : vector<8x32xf32> to vector<8x16xf32>
    %295 = vector.extract_strided_slice %261 {offsets = [0, 0], sizes = [8, 16], strides = [1, 1]} : vector<8x48xf32> to vector<8x16xf32>
    %296 = vector.extract_strided_slice %293 {offsets = [0, 0], sizes = [8, 16], strides = [1, 1]} : vector<8x48xf32> to vector<8x16xf32>
    %297 = arith.addf %295, %296 : vector<8x16xf32>
    %298 = arith.negf %297 : vector<8x16xf32>
    %299 = math.exp %298 : vector<8x16xf32>
    %cst_70 = arith.constant 1.000000e+00 : f32
    %300 = vector.broadcast %cst_70 : f32 to vector<8x16xf32>
    %301 = arith.addf %300, %299 : vector<8x16xf32>
    %302 = arith.divf %300, %301 : vector<8x16xf32>
    %303 = vector.extract_strided_slice %261 {offsets = [0, 16], sizes = [8, 16], strides = [1, 1]} : vector<8x48xf32> to vector<8x16xf32>
    %304 = vector.extract_strided_slice %293 {offsets = [0, 16], sizes = [8, 16], strides = [1, 1]} : vector<8x48xf32> to vector<8x16xf32>
    %305 = arith.addf %303, %304 : vector<8x16xf32>
    %306 = arith.negf %305 : vector<8x16xf32>
    %307 = math.exp %306 : vector<8x16xf32>
    %cst_71 = arith.constant 1.000000e+00 : f32
    %308 = vector.broadcast %cst_71 : f32 to vector<8x16xf32>
    %309 = arith.addf %308, %307 : vector<8x16xf32>
    %310 = arith.divf %308, %309 : vector<8x16xf32>
    %311 = vector.extract_strided_slice %261 {offsets = [0, 32], sizes = [8, 16], strides = [1, 1]} : vector<8x48xf32> to vector<8x16xf32>
    %312 = vector.extract_strided_slice %293 {offsets = [0, 32], sizes = [8, 16], strides = [1, 1]} : vector<8x48xf32> to vector<8x16xf32>
    %313 = vector.broadcast %6 : vector<1x16xf32> to vector<8x16xf32>
    %314 = arith.addf %312, %313 : vector<8x16xf32>
    %315 = arith.mulf %302, %314 : vector<8x16xf32>
    %316 = arith.addf %311, %315 : vector<8x16xf32>
    %317 = math.tanh %316 : vector<8x16xf32>
    %cst_72 = arith.constant 1.000000e+00 : f32
    %318 = vector.broadcast %cst_72 : f32 to vector<8x16xf32>
    %319 = arith.subf %318, %310 : vector<8x16xf32>
    %320 = arith.mulf %319, %317 : vector<8x16xf32>
    %321 = arith.mulf %310, %294 : vector<8x16xf32>
    %322 = arith.addf %320, %321 : vector<8x16xf32>
    %c0_73 = arith.constant 0 : index
    %323 = arith.index_cast %252 : i32 to index
    %c0_74 = arith.constant 0 : index
    %324 = vector.load %arg6[%c0_73, %323, %c0_74] : memref<1x32x16xf32, #tpu.memory_space<vmem>>, vector<1x8x16xf32>
    %325 = vector.shape_cast %324 : vector<1x8x16xf32> to vector<8x16xf32>
    %326 = vector.shape_cast %292 : vector<8x16xf32> to vector<1x8x16xf32>
    tpu.vector_store %arg6[%c0_73, %323, %c0_74], %326 {strides = array<i32>} : memref<1x32x16xf32, #tpu.memory_space<vmem>>, vector<1x8x16xf32>,
    %c0_75 = arith.constant 0 : index
    %327 = arith.index_cast %255 : i32 to index
    %c0_76 = arith.constant 0 : index
    %328 = vector.load %arg7[%c0_75, %327, %c0_76] : memref<1x32x16xf32, #tpu.memory_space<vmem>>, vector<1x8x16xf32>
    %329 = vector.shape_cast %328 : vector<1x8x16xf32> to vector<8x16xf32>
    %330 = vector.shape_cast %322 : vector<8x16xf32> to vector<1x8x16xf32>
    tpu.vector_store %arg7[%c0_75, %327, %c0_76], %330 {strides = array<i32>} : memref<1x32x16xf32, #tpu.memory_space<vmem>>, vector<1x8x16xf32>,
    %331 = tpu.concatenate %292, %322 in 1 : vector<8x16xf32>, vector<8x16xf32> -> vector<8x32xf32>
    %c4_i32 = arith.constant 4 : i32
    %c0_77 = arith.constant 0 : index
    %c0_78 = arith.constant 0 : index
    %332 = vector.load %arg8[%c0_77, %c0_78] : memref<8x32xf32, #tpu.memory_space<vmem>>, vector<8x32xf32>
    tpu.vector_store %arg8[%c0_77, %c0_78], %331 {strides = array<i32>} : memref<8x32xf32, #tpu.memory_space<vmem>>, vector<8x32xf32>,
    return
  }
  func.func @transform_0(%arg0: i32, %arg1: i32) -> (i32, i32, i32) {
    %c0_i32 = arith.constant 0 : i32
    %c0_i32_0 = arith.constant 0 : i32
    return %arg0, %arg1, %c0_i32 : i32, i32, i32
  }
  func.func @transform_1(%arg0: i32, %arg1: i32) -> (i32, i32, i32) {
    %c1_i32 = arith.constant 1 : i32
    %0 = arith.subi %c1_i32, %arg1 : i32
    %c0_i32 = arith.constant 0 : i32
    %c0_i32_0 = arith.constant 0 : i32
    return %arg0, %0, %c0_i32 : i32, i32, i32
  }
  func.func @transform_2(%arg0: i32, %arg1: i32) -> (i32, i32) {
    %c0_i32 = arith.constant 0 : i32
    %c0_i32_0 = arith.constant 0 : i32
    %c0_i32_1 = arith.constant 0 : i32
    return %c0_i32, %c0_i32_0 : i32, i32
  }
  func.func @transform_3(%arg0: i32, %arg1: i32) -> (i32, i32) {
    %c0_i32 = arith.constant 0 : i32
    %c0_i32_0 = arith.constant 0 : i32
    %c0_i32_1 = arith.constant 0 : i32
    return %c0_i32, %c0_i32_0 : i32, i32
  }
  func.func @transform_4(%arg0: i32, %arg1: i32) -> (i32, i32, i32) {
    %c0_i32 = arith.constant 0 : i32
    %c0_i32_0 = arith.constant 0 : i32
    return %arg0, %arg1, %c0_i32 : i32, i32, i32
  }
  func.func @transform_5(%arg0: i32, %arg1: i32) -> (i32, i32, i32) {
    %c1_i32 = arith.constant 1 : i32
    %0 = arith.subi %c1_i32, %arg1 : i32
    %c0_i32 = arith.constant 0 : i32
    %c0_i32_0 = arith.constant 0 : i32
    return %arg0, %0, %c0_i32 : i32, i32, i32
  }
}

module attributes {stable_mosaic.version = 11 : i64} {
  func.func @kernel(%arg0: i32, %arg1: i32, %arg2: memref<1x32x16xf32, #tpu.memory_space<vmem>>, %arg3: memref<1x32x16xf32, #tpu.memory_space<vmem>>, %arg4: memref<16x48xbf16, #tpu.memory_space<vmem>>, %arg5: memref<16x48xbf16, #tpu.memory_space<vmem>>, %arg6: memref<16x48xbf16, #tpu.memory_space<vmem>>, %arg7: memref<16x48xbf16, #tpu.memory_space<vmem>>, %arg8: memref<1x48xf32, #tpu.memory_space<vmem>>, %arg9: memref<1x48xf32, #tpu.memory_space<vmem>>, %arg10: memref<1x32x48xf32, #tpu.memory_space<vmem>>, %arg11: memref<1x32x48xf32, #tpu.memory_space<vmem>>) attributes {dimension_semantics = [#tpu.dimension_semantics<parallel>, #tpu.dimension_semantics<parallel>], iteration_bounds = array<i64: 1, 2>, scalar_prefetch = 0 : i64, scratch_operands = 0 : i64, tpu.core_type = #tpu.core_type<tc>, window_params = [{transform_indices = @transform_0, window_bounds = array<i64: 1, 32, 16>}, {transform_indices = @transform_1, window_bounds = array<i64: 1, 32, 16>}, {pipeline_mode = #tpu.pipeline_mode<synchronous>, transform_indices = @transform_2, window_bounds = array<i64: 16, 48>}, {pipeline_mode = #tpu.pipeline_mode<synchronous>, transform_indices = @transform_3, window_bounds = array<i64: 16, 48>}, {pipeline_mode = #tpu.pipeline_mode<synchronous>, transform_indices = @transform_4, window_bounds = array<i64: 16, 48>}, {pipeline_mode = #tpu.pipeline_mode<synchronous>, transform_indices = @transform_5, window_bounds = array<i64: 16, 48>}, {pipeline_mode = #tpu.pipeline_mode<synchronous>, transform_indices = @transform_6, window_bounds = array<i64: 1, 48>}, {pipeline_mode = #tpu.pipeline_mode<synchronous>, transform_indices = @transform_7, window_bounds = array<i64: 1, 48>}, {transform_indices = @transform_8, window_bounds = array<i64: 1, 32, 48>}, {transform_indices = @transform_9, window_bounds = array<i64: 1, 32, 48>}]} {
    %c0 = arith.constant 0 : index
    %c0_0 = arith.constant 0 : index
    %c0_1 = arith.constant 0 : index
    %0 = vector.load %arg2[%c0, %c0_0, %c0_1] : memref<1x32x16xf32, #tpu.memory_space<vmem>>, vector<1x32x16xf32>
    %1 = vector.shape_cast %0 : vector<1x32x16xf32> to vector<32x16xf32>
    %2 = arith.truncf %1 : vector<32x16xf32> to vector<32x16xbf16>
    %c0_2 = arith.constant 0 : index
    %c0_3 = arith.constant 0 : index
    %c0_4 = arith.constant 0 : index
    %3 = vector.load %arg3[%c0_2, %c0_3, %c0_4] : memref<1x32x16xf32, #tpu.memory_space<vmem>>, vector<1x32x16xf32>
    %4 = vector.shape_cast %3 : vector<1x32x16xf32> to vector<32x16xf32>
    %5 = arith.truncf %4 : vector<32x16xf32> to vector<32x16xbf16>
    %c0_5 = arith.constant 0 : index
    %c0_6 = arith.constant 0 : index
    %6 = vector.load %arg4[%c0_5, %c0_6] : memref<16x48xbf16, #tpu.memory_space<vmem>>, vector<16x48xbf16>
    %cst = arith.constant dense<0.000000e+00> : vector<32x48xf32>
    %7 = tpu.matmul %2, %6, %cst {dimension_numbers = #tpu.dot_dimension_numbers<[1], [0], [0], [1], [0, 0, 1, 1], [], []>} : vector<32x16xbf16>, vector<16x48xbf16>, vector<32x48xf32> -> vector<32x48xf32>
    %c0_7 = arith.constant 0 : index
    %c0_8 = arith.constant 0 : index
    %8 = vector.load %arg5[%c0_7, %c0_8] : memref<16x48xbf16, #tpu.memory_space<vmem>>, vector<16x48xbf16>
    %cst_9 = arith.constant dense<0.000000e+00> : vector<32x48xf32>
    %9 = tpu.matmul %5, %8, %cst_9 {dimension_numbers = #tpu.dot_dimension_numbers<[1], [0], [0], [1], [0, 0, 1, 1], [], []>} : vector<32x16xbf16>, vector<16x48xbf16>, vector<32x48xf32> -> vector<32x48xf32>
    %10 = arith.addf %7, %9 : vector<32x48xf32>
    %c0_10 = arith.constant 0 : index
    %c0_11 = arith.constant 0 : index
    %11 = vector.load %arg8[%c0_10, %c0_11] : memref<1x48xf32, #tpu.memory_space<vmem>>, vector<1x48xf32>
    %12 = vector.broadcast %11 : vector<1x48xf32> to vector<32x48xf32>
    %13 = arith.addf %10, %12 : vector<32x48xf32>
    %c0_12 = arith.constant 0 : index
    %c0_13 = arith.constant 0 : index
    %c0_14 = arith.constant 0 : index
    %14 = vector.load %arg10[%c0_12, %c0_13, %c0_14] : memref<1x32x48xf32, #tpu.memory_space<vmem>>, vector<1x32x48xf32>
    %15 = vector.shape_cast %14 : vector<1x32x48xf32> to vector<32x48xf32>
    %16 = vector.shape_cast %13 : vector<32x48xf32> to vector<1x32x48xf32>
    tpu.vector_store %arg10[%c0_12, %c0_13, %c0_14], %16 {strides = array<i32>} : memref<1x32x48xf32, #tpu.memory_space<vmem>>, vector<1x32x48xf32>,
    %c0_15 = arith.constant 0 : index
    %c0_16 = arith.constant 0 : index
    %17 = vector.load %arg6[%c0_15, %c0_16] : memref<16x48xbf16, #tpu.memory_space<vmem>>, vector<16x48xbf16>
    %cst_17 = arith.constant dense<0.000000e+00> : vector<32x48xf32>
    %18 = tpu.matmul %2, %17, %cst_17 {dimension_numbers = #tpu.dot_dimension_numbers<[1], [0], [0], [1], [0, 0, 1, 1], [], []>} : vector<32x16xbf16>, vector<16x48xbf16>, vector<32x48xf32> -> vector<32x48xf32>
    %c0_18 = arith.constant 0 : index
    %c0_19 = arith.constant 0 : index
    %19 = vector.load %arg7[%c0_18, %c0_19] : memref<16x48xbf16, #tpu.memory_space<vmem>>, vector<16x48xbf16>
    %cst_20 = arith.constant dense<0.000000e+00> : vector<32x48xf32>
    %20 = tpu.matmul %5, %19, %cst_20 {dimension_numbers = #tpu.dot_dimension_numbers<[1], [0], [0], [1], [0, 0, 1, 1], [], []>} : vector<32x16xbf16>, vector<16x48xbf16>, vector<32x48xf32> -> vector<32x48xf32>
    %21 = arith.addf %18, %20 : vector<32x48xf32>
    %c0_21 = arith.constant 0 : index
    %c0_22 = arith.constant 0 : index
    %22 = vector.load %arg9[%c0_21, %c0_22] : memref<1x48xf32, #tpu.memory_space<vmem>>, vector<1x48xf32>
    %23 = vector.broadcast %22 : vector<1x48xf32> to vector<32x48xf32>
    %24 = arith.addf %21, %23 : vector<32x48xf32>
    %c0_23 = arith.constant 0 : index
    %c0_24 = arith.constant 0 : index
    %c0_25 = arith.constant 0 : index
    %25 = vector.load %arg11[%c0_23, %c0_24, %c0_25] : memref<1x32x48xf32, #tpu.memory_space<vmem>>, vector<1x32x48xf32>
    %26 = vector.shape_cast %25 : vector<1x32x48xf32> to vector<32x48xf32>
    %27 = vector.shape_cast %24 : vector<32x48xf32> to vector<1x32x48xf32>
    tpu.vector_store %arg11[%c0_23, %c0_24, %c0_25], %27 {strides = array<i32>} : memref<1x32x48xf32, #tpu.memory_space<vmem>>, vector<1x32x48xf32>,
    return
  }
  func.func @transform_0(%arg0: i32, %arg1: i32) -> (i32, i32, i32) {
    %c0_i32 = arith.constant 0 : i32
    %c0_i32_0 = arith.constant 0 : i32
    return %arg0, %arg1, %c0_i32 : i32, i32, i32
  }
  func.func @transform_1(%arg0: i32, %arg1: i32) -> (i32, i32, i32) {
    %c0_i32 = arith.constant 0 : i32
    %c0_i32_0 = arith.constant 0 : i32
    return %arg0, %arg1, %c0_i32 : i32, i32, i32
  }
  func.func @transform_2(%arg0: i32, %arg1: i32) -> (i32, i32) {
    %c0_i32 = arith.constant 0 : i32
    %c0_i32_0 = arith.constant 0 : i32
    %c0_i32_1 = arith.constant 0 : i32
    return %c0_i32, %c0_i32_0 : i32, i32
  }
  func.func @transform_3(%arg0: i32, %arg1: i32) -> (i32, i32) {
    %c0_i32 = arith.constant 0 : i32
    %c0_i32_0 = arith.constant 0 : i32
    %c0_i32_1 = arith.constant 0 : i32
    return %c0_i32, %c0_i32_0 : i32, i32
  }
  func.func @transform_4(%arg0: i32, %arg1: i32) -> (i32, i32) {
    %c0_i32 = arith.constant 0 : i32
    %c0_i32_0 = arith.constant 0 : i32
    %c0_i32_1 = arith.constant 0 : i32
    return %c0_i32, %c0_i32_0 : i32, i32
  }
  func.func @transform_5(%arg0: i32, %arg1: i32) -> (i32, i32) {
    %c0_i32 = arith.constant 0 : i32
    %c0_i32_0 = arith.constant 0 : i32
    %c0_i32_1 = arith.constant 0 : i32
    return %c0_i32, %c0_i32_0 : i32, i32
  }
  func.func @transform_6(%arg0: i32, %arg1: i32) -> (i32, i32) {
    %c0_i32 = arith.constant 0 : i32
    %c0_i32_0 = arith.constant 0 : i32
    %c0_i32_1 = arith.constant 0 : i32
    return %c0_i32, %c0_i32_0 : i32, i32
  }
  func.func @transform_7(%arg0: i32, %arg1: i32) -> (i32, i32) {
    %c0_i32 = arith.constant 0 : i32
    %c0_i32_0 = arith.constant 0 : i32
    %c0_i32_1 = arith.constant 0 : i32
    return %c0_i32, %c0_i32_0 : i32, i32
  }
  func.func @transform_8(%arg0: i32, %arg1: i32) -> (i32, i32, i32) {
    %c0_i32 = arith.constant 0 : i32
    %c0_i32_0 = arith.constant 0 : i32
    return %arg0, %arg1, %c0_i32 : i32, i32, i32
  }
  func.func @transform_9(%arg0: i32, %arg1: i32) -> (i32, i32, i32) {
    %c0_i32 = arith.constant 0 : i32
    %c0_i32_0 = arith.constant 0 : i32
    return %arg0, %arg1, %c0_i32 : i32, i32, i32
  }
}

module attributes {stable_mosaic.version = 11 : i64} {
  func.func @kernel(%arg0: i32, %arg1: i32, %arg2: memref<1x32x48xf32, #tpu.memory_space<vmem>>, %arg3: memref<1x32x48xf32, #tpu.memory_space<vmem>>, %arg4: memref<1x32x16xf32, #tpu.memory_space<vmem>>, %arg5: memref<1x32x16xf32, #tpu.memory_space<vmem>>, %arg6: memref<32x96xf32, #tpu.memory_space<vmem>>, %arg7: memref<1x32xf32, #tpu.memory_space<vmem>>, %arg8: memref<1x32x16xf32, #tpu.memory_space<vmem>>, %arg9: memref<1x32x16xf32, #tpu.memory_space<vmem>>, %arg10: memref<8x32xf32, #tpu.memory_space<vmem>>) attributes {dimension_semantics = [#tpu.dimension_semantics<parallel>, #tpu.dimension_semantics<arbitrary>], iteration_bounds = array<i64: 1, 2>, scalar_prefetch = 0 : i64, scratch_operands = 1 : i64, tpu.core_type = #tpu.core_type<tc>, window_params = [{transform_indices = @transform_0, window_bounds = array<i64: 1, 32, 48>}, {transform_indices = @transform_1, window_bounds = array<i64: 1, 32, 48>}, {transform_indices = @transform_2, window_bounds = array<i64: 1, 32, 16>}, {transform_indices = @transform_3, window_bounds = array<i64: 1, 32, 16>}, {pipeline_mode = #tpu.pipeline_mode<synchronous>, transform_indices = @transform_4, window_bounds = array<i64: 32, 96>}, {pipeline_mode = #tpu.pipeline_mode<synchronous>, transform_indices = @transform_5, window_bounds = array<i64: 1, 32>}, {transform_indices = @transform_6, window_bounds = array<i64: 1, 32, 16>}, {transform_indices = @transform_7, window_bounds = array<i64: 1, 32, 16>}]} {
    %c0_i32 = arith.constant 0 : i32
    %0 = arith.cmpi eq, %arg1, %c0_i32 : i32
    %1 = arith.extui %0 : i1 to i32
    %c0_i32_0 = arith.constant 0 : i32
    %2 = arith.cmpi ne, %1, %c0_i32_0 : i32
    scf.if %2 {
      %cst_95 = arith.constant 0.000000e+00 : f32
      %365 = vector.broadcast %cst_95 : f32 to vector<8x32xf32>
      %c0_96 = arith.constant 0 : index
      %c0_97 = arith.constant 0 : index
      %366 = vector.load %arg10[%c0_96, %c0_97] : memref<8x32xf32, #tpu.memory_space<vmem>>, vector<8x32xf32>
      tpu.vector_store %arg10[%c0_96, %c0_97], %365 {strides = array<i32>} : memref<8x32xf32, #tpu.memory_space<vmem>>, vector<8x32xf32>,
    } else {
    }
    %c0 = arith.constant 0 : index
    %c0_1 = arith.constant 0 : index
    %3 = vector.load %arg6[%c0, %c0_1] : memref<32x96xf32, #tpu.memory_space<vmem>>, vector<32x96xf32>
    %c0_2 = arith.constant 0 : index
    %c0_3 = arith.constant 0 : index
    %4 = vector.load %arg7[%c0_2, %c0_3] : memref<1x32xf32, #tpu.memory_space<vmem>>, vector<1x32xf32>
    %5 = vector.extract_strided_slice %4 {offsets = [0, 0], sizes = [1, 16], strides = [1, 1]} : vector<1x32xf32> to vector<1x16xf32>
    %6 = vector.extract_strided_slice %4 {offsets = [0, 16], sizes = [1, 16], strides = [1, 1]} : vector<1x32xf32> to vector<1x16xf32>
    %c0_4 = arith.constant 0 : index
    %c0_5 = arith.constant 0 : index
    %7 = vector.load %arg10[%c0_4, %c0_5] : memref<8x32xf32, #tpu.memory_space<vmem>>, vector<8x32xf32>
    %c0_i32_6 = arith.constant 0 : i32
    %c8_i32 = arith.constant 8 : i32
    %8 = arith.muli %c0_i32_6, %c8_i32 : i32
    %9 = tpu.assume_multiple %8, 8 : i32
    %c3_i32 = arith.constant 3 : i32
    %10 = arith.subi %c3_i32, %c0_i32_6 : i32
    %c8_i32_7 = arith.constant 8 : i32
    %11 = arith.muli %10, %c8_i32_7 : i32
    %12 = tpu.assume_multiple %11, 8 : i32
    %c0_8 = arith.constant 0 : index
    %13 = arith.index_cast %9 : i32 to index
    %c0_9 = arith.constant 0 : index
    %14 = vector.load %arg2[%c0_8, %13, %c0_9] : memref<1x32x48xf32, #tpu.memory_space<vmem>>, vector<1x8x48xf32>
    %15 = vector.shape_cast %14 : vector<1x8x48xf32> to vector<8x48xf32>
    %c0_10 = arith.constant 0 : index
    %16 = arith.index_cast %12 : i32 to index
    %c0_11 = arith.constant 0 : index
    %17 = vector.load %arg3[%c0_10, %16, %c0_11] : memref<1x32x48xf32, #tpu.memory_space<vmem>>, vector<1x8x48xf32>
    %18 = vector.shape_cast %17 : vector<1x8x48xf32> to vector<8x48xf32>
    %cst = arith.constant dense<0.000000e+00> : vector<8x96xf32>
    %19 = tpu.matmul %7, %3, %cst {dimension_numbers = #tpu.dot_dimension_numbers<[1], [0], [0], [1], [0, 0, 1, 1], [], []>} : vector<8x32xf32>, vector<32x96xf32>, vector<8x96xf32> -> vector<8x96xf32>
    %20 = vector.extract_strided_slice %19 {offsets = [0, 0], sizes = [8, 48], strides = [1, 1]} : vector<8x96xf32> to vector<8x48xf32>
    %21 = vector.extract_strided_slice %7 {offsets = [0, 0], sizes = [8, 16], strides = [1, 1]} : vector<8x32xf32> to vector<8x16xf32>
    %22 = vector.extract_strided_slice %15 {offsets = [0, 0], sizes = [8, 16], strides = [1, 1]} : vector<8x48xf32> to vector<8x16xf32>
    %23 = vector.extract_strided_slice %20 {offsets = [0, 0], sizes = [8, 16], strides = [1, 1]} : vector<8x48xf32> to vector<8x16xf32>
    %24 = arith.addf %22, %23 : vector<8x16xf32>
    %25 = arith.negf %24 : vector<8x16xf32>
    %26 = math.exp %25 : vector<8x16xf32>
    %cst_12 = arith.constant 1.000000e+00 : f32
    %27 = vector.broadcast %cst_12 : f32 to vector<8x16xf32>
    %28 = arith.addf %27, %26 : vector<8x16xf32>
    %29 = arith.divf %27, %28 : vector<8x16xf32>
    %30 = vector.extract_strided_slice %15 {offsets = [0, 16], sizes = [8, 16], strides = [1, 1]} : vector<8x48xf32> to vector<8x16xf32>
    %31 = vector.extract_strided_slice %20 {offsets = [0, 16], sizes = [8, 16], strides = [1, 1]} : vector<8x48xf32> to vector<8x16xf32>
    %32 = arith.addf %30, %31 : vector<8x16xf32>
    %33 = arith.negf %32 : vector<8x16xf32>
    %34 = math.exp %33 : vector<8x16xf32>
    %cst_13 = arith.constant 1.000000e+00 : f32
    %35 = vector.broadcast %cst_13 : f32 to vector<8x16xf32>
    %36 = arith.addf %35, %34 : vector<8x16xf32>
    %37 = arith.divf %35, %36 : vector<8x16xf32>
    %38 = vector.extract_strided_slice %15 {offsets = [0, 32], sizes = [8, 16], strides = [1, 1]} : vector<8x48xf32> to vector<8x16xf32>
    %39 = vector.extract_strided_slice %20 {offsets = [0, 32], sizes = [8, 16], strides = [1, 1]} : vector<8x48xf32> to vector<8x16xf32>
    %40 = vector.broadcast %5 : vector<1x16xf32> to vector<8x16xf32>
    %41 = arith.addf %39, %40 : vector<8x16xf32>
    %42 = arith.mulf %29, %41 : vector<8x16xf32>
    %43 = arith.addf %38, %42 : vector<8x16xf32>
    %44 = math.tanh %43 : vector<8x16xf32>
    %cst_14 = arith.constant 1.000000e+00 : f32
    %45 = vector.broadcast %cst_14 : f32 to vector<8x16xf32>
    %46 = arith.subf %45, %37 : vector<8x16xf32>
    %47 = arith.mulf %46, %44 : vector<8x16xf32>
    %48 = arith.mulf %37, %21 : vector<8x16xf32>
    %49 = arith.addf %47, %48 : vector<8x16xf32>
    %50 = vector.extract_strided_slice %19 {offsets = [0, 48], sizes = [8, 48], strides = [1, 1]} : vector<8x96xf32> to vector<8x48xf32>
    %51 = vector.extract_strided_slice %7 {offsets = [0, 16], sizes = [8, 16], strides = [1, 1]} : vector<8x32xf32> to vector<8x16xf32>
    %52 = vector.extract_strided_slice %18 {offsets = [0, 0], sizes = [8, 16], strides = [1, 1]} : vector<8x48xf32> to vector<8x16xf32>
    %53 = vector.extract_strided_slice %50 {offsets = [0, 0], sizes = [8, 16], strides = [1, 1]} : vector<8x48xf32> to vector<8x16xf32>
    %54 = arith.addf %52, %53 : vector<8x16xf32>
    %55 = arith.negf %54 : vector<8x16xf32>
    %56 = math.exp %55 : vector<8x16xf32>
    %cst_15 = arith.constant 1.000000e+00 : f32
    %57 = vector.broadcast %cst_15 : f32 to vector<8x16xf32>
    %58 = arith.addf %57, %56 : vector<8x16xf32>
    %59 = arith.divf %57, %58 : vector<8x16xf32>
    %60 = vector.extract_strided_slice %18 {offsets = [0, 16], sizes = [8, 16], strides = [1, 1]} : vector<8x48xf32> to vector<8x16xf32>
    %61 = vector.extract_strided_slice %50 {offsets = [0, 16], sizes = [8, 16], strides = [1, 1]} : vector<8x48xf32> to vector<8x16xf32>
    %62 = arith.addf %60, %61 : vector<8x16xf32>
    %63 = arith.negf %62 : vector<8x16xf32>
    %64 = math.exp %63 : vector<8x16xf32>
    %cst_16 = arith.constant 1.000000e+00 : f32
    %65 = vector.broadcast %cst_16 : f32 to vector<8x16xf32>
    %66 = arith.addf %65, %64 : vector<8x16xf32>
    %67 = arith.divf %65, %66 : vector<8x16xf32>
    %68 = vector.extract_strided_slice %18 {offsets = [0, 32], sizes = [8, 16], strides = [1, 1]} : vector<8x48xf32> to vector<8x16xf32>
    %69 = vector.extract_strided_slice %50 {offsets = [0, 32], sizes = [8, 16], strides = [1, 1]} : vector<8x48xf32> to vector<8x16xf32>
    %70 = vector.broadcast %6 : vector<1x16xf32> to vector<8x16xf32>
    %71 = arith.addf %69, %70 : vector<8x16xf32>
    %72 = arith.mulf %59, %71 : vector<8x16xf32>
    %73 = arith.addf %68, %72 : vector<8x16xf32>
    %74 = math.tanh %73 : vector<8x16xf32>
    %cst_17 = arith.constant 1.000000e+00 : f32
    %75 = vector.broadcast %cst_17 : f32 to vector<8x16xf32>
    %76 = arith.subf %75, %67 : vector<8x16xf32>
    %77 = arith.mulf %76, %74 : vector<8x16xf32>
    %78 = arith.mulf %67, %51 : vector<8x16xf32>
    %79 = arith.addf %77, %78 : vector<8x16xf32>
    %c0_18 = arith.constant 0 : index
    %80 = arith.index_cast %9 : i32 to index
    %c0_19 = arith.constant 0 : index
    %81 = vector.load %arg4[%c0_18, %80, %c0_19] : memref<1x32x16xf32, #tpu.memory_space<vmem>>, vector<1x8x16xf32>
    %82 = vector.shape_cast %81 : vector<1x8x16xf32> to vector<8x16xf32>
    %83 = arith.addf %49, %82 : vector<8x16xf32>
    %c0_20 = arith.constant 0 : index
    %84 = arith.index_cast %12 : i32 to index
    %c0_21 = arith.constant 0 : index
    %85 = vector.load %arg5[%c0_20, %84, %c0_21] : memref<1x32x16xf32, #tpu.memory_space<vmem>>, vector<1x8x16xf32>
    %86 = vector.shape_cast %85 : vector<1x8x16xf32> to vector<8x16xf32>
    %87 = arith.addf %79, %86 : vector<8x16xf32>
    %c0_22 = arith.constant 0 : index
    %88 = arith.index_cast %9 : i32 to index
    %c0_23 = arith.constant 0 : index
    %89 = vector.load %arg8[%c0_22, %88, %c0_23] : memref<1x32x16xf32, #tpu.memory_space<vmem>>, vector<1x8x16xf32>
    %90 = vector.shape_cast %89 : vector<1x8x16xf32> to vector<8x16xf32>
    %91 = vector.shape_cast %83 : vector<8x16xf32> to vector<1x8x16xf32>
    tpu.vector_store %arg8[%c0_22, %88, %c0_23], %91 {strides = array<i32>} : memref<1x32x16xf32, #tpu.memory_space<vmem>>, vector<1x8x16xf32>,
    %c0_24 = arith.constant 0 : index
    %92 = arith.index_cast %12 : i32 to index
    %c0_25 = arith.constant 0 : index
    %93 = vector.load %arg9[%c0_24, %92, %c0_25] : memref<1x32x16xf32, #tpu.memory_space<vmem>>, vector<1x8x16xf32>
    %94 = vector.shape_cast %93 : vector<1x8x16xf32> to vector<8x16xf32>
    %95 = vector.shape_cast %87 : vector<8x16xf32> to vector<1x8x16xf32>
    tpu.vector_store %arg9[%c0_24, %92, %c0_25], %95 {strides = array<i32>} : memref<1x32x16xf32, #tpu.memory_space<vmem>>, vector<1x8x16xf32>,
    %96 = tpu.concatenate %49, %79 in 1 : vector<8x16xf32>, vector<8x16xf32> -> vector<8x32xf32>
    %c1_i32 = arith.constant 1 : i32
    %c8_i32_26 = arith.constant 8 : i32
    %97 = arith.muli %c1_i32, %c8_i32_26 : i32
    %98 = tpu.assume_multiple %97, 8 : i32
    %c3_i32_27 = arith.constant 3 : i32
    %99 = arith.subi %c3_i32_27, %c1_i32 : i32
    %c8_i32_28 = arith.constant 8 : i32
    %100 = arith.muli %99, %c8_i32_28 : i32
    %101 = tpu.assume_multiple %100, 8 : i32
    %c0_29 = arith.constant 0 : index
    %102 = arith.index_cast %98 : i32 to index
    %c0_30 = arith.constant 0 : index
    %103 = vector.load %arg2[%c0_29, %102, %c0_30] : memref<1x32x48xf32, #tpu.memory_space<vmem>>, vector<1x8x48xf32>
    %104 = vector.shape_cast %103 : vector<1x8x48xf32> to vector<8x48xf32>
    %c0_31 = arith.constant 0 : index
    %105 = arith.index_cast %101 : i32 to index
    %c0_32 = arith.constant 0 : index
    %106 = vector.load %arg3[%c0_31, %105, %c0_32] : memref<1x32x48xf32, #tpu.memory_space<vmem>>, vector<1x8x48xf32>
    %107 = vector.shape_cast %106 : vector<1x8x48xf32> to vector<8x48xf32>
    %cst_33 = arith.constant dense<0.000000e+00> : vector<8x96xf32>
    %108 = tpu.matmul %96, %3, %cst_33 {dimension_numbers = #tpu.dot_dimension_numbers<[1], [0], [0], [1], [0, 0, 1, 1], [], []>} : vector<8x32xf32>, vector<32x96xf32>, vector<8x96xf32> -> vector<8x96xf32>
    %109 = vector.extract_strided_slice %108 {offsets = [0, 0], sizes = [8, 48], strides = [1, 1]} : vector<8x96xf32> to vector<8x48xf32>
    %110 = vector.extract_strided_slice %96 {offsets = [0, 0], sizes = [8, 16], strides = [1, 1]} : vector<8x32xf32> to vector<8x16xf32>
    %111 = vector.extract_strided_slice %104 {offsets = [0, 0], sizes = [8, 16], strides = [1, 1]} : vector<8x48xf32> to vector<8x16xf32>
    %112 = vector.extract_strided_slice %109 {offsets = [0, 0], sizes = [8, 16], strides = [1, 1]} : vector<8x48xf32> to vector<8x16xf32>
    %113 = arith.addf %111, %112 : vector<8x16xf32>
    %114 = arith.negf %113 : vector<8x16xf32>
    %115 = math.exp %114 : vector<8x16xf32>
    %cst_34 = arith.constant 1.000000e+00 : f32
    %116 = vector.broadcast %cst_34 : f32 to vector<8x16xf32>
    %117 = arith.addf %116, %115 : vector<8x16xf32>
    %118 = arith.divf %116, %117 : vector<8x16xf32>
    %119 = vector.extract_strided_slice %104 {offsets = [0, 16], sizes = [8, 16], strides = [1, 1]} : vector<8x48xf32> to vector<8x16xf32>
    %120 = vector.extract_strided_slice %109 {offsets = [0, 16], sizes = [8, 16], strides = [1, 1]} : vector<8x48xf32> to vector<8x16xf32>
    %121 = arith.addf %119, %120 : vector<8x16xf32>
    %122 = arith.negf %121 : vector<8x16xf32>
    %123 = math.exp %122 : vector<8x16xf32>
    %cst_35 = arith.constant 1.000000e+00 : f32
    %124 = vector.broadcast %cst_35 : f32 to vector<8x16xf32>
    %125 = arith.addf %124, %123 : vector<8x16xf32>
    %126 = arith.divf %124, %125 : vector<8x16xf32>
    %127 = vector.extract_strided_slice %104 {offsets = [0, 32], sizes = [8, 16], strides = [1, 1]} : vector<8x48xf32> to vector<8x16xf32>
    %128 = vector.extract_strided_slice %109 {offsets = [0, 32], sizes = [8, 16], strides = [1, 1]} : vector<8x48xf32> to vector<8x16xf32>
    %129 = vector.broadcast %5 : vector<1x16xf32> to vector<8x16xf32>
    %130 = arith.addf %128, %129 : vector<8x16xf32>
    %131 = arith.mulf %118, %130 : vector<8x16xf32>
    %132 = arith.addf %127, %131 : vector<8x16xf32>
    %133 = math.tanh %132 : vector<8x16xf32>
    %cst_36 = arith.constant 1.000000e+00 : f32
    %134 = vector.broadcast %cst_36 : f32 to vector<8x16xf32>
    %135 = arith.subf %134, %126 : vector<8x16xf32>
    %136 = arith.mulf %135, %133 : vector<8x16xf32>
    %137 = arith.mulf %126, %110 : vector<8x16xf32>
    %138 = arith.addf %136, %137 : vector<8x16xf32>
    %139 = vector.extract_strided_slice %108 {offsets = [0, 48], sizes = [8, 48], strides = [1, 1]} : vector<8x96xf32> to vector<8x48xf32>
    %140 = vector.extract_strided_slice %96 {offsets = [0, 16], sizes = [8, 16], strides = [1, 1]} : vector<8x32xf32> to vector<8x16xf32>
    %141 = vector.extract_strided_slice %107 {offsets = [0, 0], sizes = [8, 16], strides = [1, 1]} : vector<8x48xf32> to vector<8x16xf32>
    %142 = vector.extract_strided_slice %139 {offsets = [0, 0], sizes = [8, 16], strides = [1, 1]} : vector<8x48xf32> to vector<8x16xf32>
    %143 = arith.addf %141, %142 : vector<8x16xf32>
    %144 = arith.negf %143 : vector<8x16xf32>
    %145 = math.exp %144 : vector<8x16xf32>
    %cst_37 = arith.constant 1.000000e+00 : f32
    %146 = vector.broadcast %cst_37 : f32 to vector<8x16xf32>
    %147 = arith.addf %146, %145 : vector<8x16xf32>
    %148 = arith.divf %146, %147 : vector<8x16xf32>
    %149 = vector.extract_strided_slice %107 {offsets = [0, 16], sizes = [8, 16], strides = [1, 1]} : vector<8x48xf32> to vector<8x16xf32>
    %150 = vector.extract_strided_slice %139 {offsets = [0, 16], sizes = [8, 16], strides = [1, 1]} : vector<8x48xf32> to vector<8x16xf32>
    %151 = arith.addf %149, %150 : vector<8x16xf32>
    %152 = arith.negf %151 : vector<8x16xf32>
    %153 = math.exp %152 : vector<8x16xf32>
    %cst_38 = arith.constant 1.000000e+00 : f32
    %154 = vector.broadcast %cst_38 : f32 to vector<8x16xf32>
    %155 = arith.addf %154, %153 : vector<8x16xf32>
    %156 = arith.divf %154, %155 : vector<8x16xf32>
    %157 = vector.extract_strided_slice %107 {offsets = [0, 32], sizes = [8, 16], strides = [1, 1]} : vector<8x48xf32> to vector<8x16xf32>
    %158 = vector.extract_strided_slice %139 {offsets = [0, 32], sizes = [8, 16], strides = [1, 1]} : vector<8x48xf32> to vector<8x16xf32>
    %159 = vector.broadcast %6 : vector<1x16xf32> to vector<8x16xf32>
    %160 = arith.addf %158, %159 : vector<8x16xf32>
    %161 = arith.mulf %148, %160 : vector<8x16xf32>
    %162 = arith.addf %157, %161 : vector<8x16xf32>
    %163 = math.tanh %162 : vector<8x16xf32>
    %cst_39 = arith.constant 1.000000e+00 : f32
    %164 = vector.broadcast %cst_39 : f32 to vector<8x16xf32>
    %165 = arith.subf %164, %156 : vector<8x16xf32>
    %166 = arith.mulf %165, %163 : vector<8x16xf32>
    %167 = arith.mulf %156, %140 : vector<8x16xf32>
    %168 = arith.addf %166, %167 : vector<8x16xf32>
    %c0_40 = arith.constant 0 : index
    %169 = arith.index_cast %98 : i32 to index
    %c0_41 = arith.constant 0 : index
    %170 = vector.load %arg4[%c0_40, %169, %c0_41] : memref<1x32x16xf32, #tpu.memory_space<vmem>>, vector<1x8x16xf32>
    %171 = vector.shape_cast %170 : vector<1x8x16xf32> to vector<8x16xf32>
    %172 = arith.addf %138, %171 : vector<8x16xf32>
    %c0_42 = arith.constant 0 : index
    %173 = arith.index_cast %101 : i32 to index
    %c0_43 = arith.constant 0 : index
    %174 = vector.load %arg5[%c0_42, %173, %c0_43] : memref<1x32x16xf32, #tpu.memory_space<vmem>>, vector<1x8x16xf32>
    %175 = vector.shape_cast %174 : vector<1x8x16xf32> to vector<8x16xf32>
    %176 = arith.addf %168, %175 : vector<8x16xf32>
    %c0_44 = arith.constant 0 : index
    %177 = arith.index_cast %98 : i32 to index
    %c0_45 = arith.constant 0 : index
    %178 = vector.load %arg8[%c0_44, %177, %c0_45] : memref<1x32x16xf32, #tpu.memory_space<vmem>>, vector<1x8x16xf32>
    %179 = vector.shape_cast %178 : vector<1x8x16xf32> to vector<8x16xf32>
    %180 = vector.shape_cast %172 : vector<8x16xf32> to vector<1x8x16xf32>
    tpu.vector_store %arg8[%c0_44, %177, %c0_45], %180 {strides = array<i32>} : memref<1x32x16xf32, #tpu.memory_space<vmem>>, vector<1x8x16xf32>,
    %c0_46 = arith.constant 0 : index
    %181 = arith.index_cast %101 : i32 to index
    %c0_47 = arith.constant 0 : index
    %182 = vector.load %arg9[%c0_46, %181, %c0_47] : memref<1x32x16xf32, #tpu.memory_space<vmem>>, vector<1x8x16xf32>
    %183 = vector.shape_cast %182 : vector<1x8x16xf32> to vector<8x16xf32>
    %184 = vector.shape_cast %176 : vector<8x16xf32> to vector<1x8x16xf32>
    tpu.vector_store %arg9[%c0_46, %181, %c0_47], %184 {strides = array<i32>} : memref<1x32x16xf32, #tpu.memory_space<vmem>>, vector<1x8x16xf32>,
    %185 = tpu.concatenate %138, %168 in 1 : vector<8x16xf32>, vector<8x16xf32> -> vector<8x32xf32>
    %c2_i32 = arith.constant 2 : i32
    %c8_i32_48 = arith.constant 8 : i32
    %186 = arith.muli %c2_i32, %c8_i32_48 : i32
    %187 = tpu.assume_multiple %186, 8 : i32
    %c3_i32_49 = arith.constant 3 : i32
    %188 = arith.subi %c3_i32_49, %c2_i32 : i32
    %c8_i32_50 = arith.constant 8 : i32
    %189 = arith.muli %188, %c8_i32_50 : i32
    %190 = tpu.assume_multiple %189, 8 : i32
    %c0_51 = arith.constant 0 : index
    %191 = arith.index_cast %187 : i32 to index
    %c0_52 = arith.constant 0 : index
    %192 = vector.load %arg2[%c0_51, %191, %c0_52] : memref<1x32x48xf32, #tpu.memory_space<vmem>>, vector<1x8x48xf32>
    %193 = vector.shape_cast %192 : vector<1x8x48xf32> to vector<8x48xf32>
    %c0_53 = arith.constant 0 : index
    %194 = arith.index_cast %190 : i32 to index
    %c0_54 = arith.constant 0 : index
    %195 = vector.load %arg3[%c0_53, %194, %c0_54] : memref<1x32x48xf32, #tpu.memory_space<vmem>>, vector<1x8x48xf32>
    %196 = vector.shape_cast %195 : vector<1x8x48xf32> to vector<8x48xf32>
    %cst_55 = arith.constant dense<0.000000e+00> : vector<8x96xf32>
    %197 = tpu.matmul %185, %3, %cst_55 {dimension_numbers = #tpu.dot_dimension_numbers<[1], [0], [0], [1], [0, 0, 1, 1], [], []>} : vector<8x32xf32>, vector<32x96xf32>, vector<8x96xf32> -> vector<8x96xf32>
    %198 = vector.extract_strided_slice %197 {offsets = [0, 0], sizes = [8, 48], strides = [1, 1]} : vector<8x96xf32> to vector<8x48xf32>
    %199 = vector.extract_strided_slice %185 {offsets = [0, 0], sizes = [8, 16], strides = [1, 1]} : vector<8x32xf32> to vector<8x16xf32>
    %200 = vector.extract_strided_slice %193 {offsets = [0, 0], sizes = [8, 16], strides = [1, 1]} : vector<8x48xf32> to vector<8x16xf32>
    %201 = vector.extract_strided_slice %198 {offsets = [0, 0], sizes = [8, 16], strides = [1, 1]} : vector<8x48xf32> to vector<8x16xf32>
    %202 = arith.addf %200, %201 : vector<8x16xf32>
    %203 = arith.negf %202 : vector<8x16xf32>
    %204 = math.exp %203 : vector<8x16xf32>
    %cst_56 = arith.constant 1.000000e+00 : f32
    %205 = vector.broadcast %cst_56 : f32 to vector<8x16xf32>
    %206 = arith.addf %205, %204 : vector<8x16xf32>
    %207 = arith.divf %205, %206 : vector<8x16xf32>
    %208 = vector.extract_strided_slice %193 {offsets = [0, 16], sizes = [8, 16], strides = [1, 1]} : vector<8x48xf32> to vector<8x16xf32>
    %209 = vector.extract_strided_slice %198 {offsets = [0, 16], sizes = [8, 16], strides = [1, 1]} : vector<8x48xf32> to vector<8x16xf32>
    %210 = arith.addf %208, %209 : vector<8x16xf32>
    %211 = arith.negf %210 : vector<8x16xf32>
    %212 = math.exp %211 : vector<8x16xf32>
    %cst_57 = arith.constant 1.000000e+00 : f32
    %213 = vector.broadcast %cst_57 : f32 to vector<8x16xf32>
    %214 = arith.addf %213, %212 : vector<8x16xf32>
    %215 = arith.divf %213, %214 : vector<8x16xf32>
    %216 = vector.extract_strided_slice %193 {offsets = [0, 32], sizes = [8, 16], strides = [1, 1]} : vector<8x48xf32> to vector<8x16xf32>
    %217 = vector.extract_strided_slice %198 {offsets = [0, 32], sizes = [8, 16], strides = [1, 1]} : vector<8x48xf32> to vector<8x16xf32>
    %218 = vector.broadcast %5 : vector<1x16xf32> to vector<8x16xf32>
    %219 = arith.addf %217, %218 : vector<8x16xf32>
    %220 = arith.mulf %207, %219 : vector<8x16xf32>
    %221 = arith.addf %216, %220 : vector<8x16xf32>
    %222 = math.tanh %221 : vector<8x16xf32>
    %cst_58 = arith.constant 1.000000e+00 : f32
    %223 = vector.broadcast %cst_58 : f32 to vector<8x16xf32>
    %224 = arith.subf %223, %215 : vector<8x16xf32>
    %225 = arith.mulf %224, %222 : vector<8x16xf32>
    %226 = arith.mulf %215, %199 : vector<8x16xf32>
    %227 = arith.addf %225, %226 : vector<8x16xf32>
    %228 = vector.extract_strided_slice %197 {offsets = [0, 48], sizes = [8, 48], strides = [1, 1]} : vector<8x96xf32> to vector<8x48xf32>
    %229 = vector.extract_strided_slice %185 {offsets = [0, 16], sizes = [8, 16], strides = [1, 1]} : vector<8x32xf32> to vector<8x16xf32>
    %230 = vector.extract_strided_slice %196 {offsets = [0, 0], sizes = [8, 16], strides = [1, 1]} : vector<8x48xf32> to vector<8x16xf32>
    %231 = vector.extract_strided_slice %228 {offsets = [0, 0], sizes = [8, 16], strides = [1, 1]} : vector<8x48xf32> to vector<8x16xf32>
    %232 = arith.addf %230, %231 : vector<8x16xf32>
    %233 = arith.negf %232 : vector<8x16xf32>
    %234 = math.exp %233 : vector<8x16xf32>
    %cst_59 = arith.constant 1.000000e+00 : f32
    %235 = vector.broadcast %cst_59 : f32 to vector<8x16xf32>
    %236 = arith.addf %235, %234 : vector<8x16xf32>
    %237 = arith.divf %235, %236 : vector<8x16xf32>
    %238 = vector.extract_strided_slice %196 {offsets = [0, 16], sizes = [8, 16], strides = [1, 1]} : vector<8x48xf32> to vector<8x16xf32>
    %239 = vector.extract_strided_slice %228 {offsets = [0, 16], sizes = [8, 16], strides = [1, 1]} : vector<8x48xf32> to vector<8x16xf32>
    %240 = arith.addf %238, %239 : vector<8x16xf32>
    %241 = arith.negf %240 : vector<8x16xf32>
    %242 = math.exp %241 : vector<8x16xf32>
    %cst_60 = arith.constant 1.000000e+00 : f32
    %243 = vector.broadcast %cst_60 : f32 to vector<8x16xf32>
    %244 = arith.addf %243, %242 : vector<8x16xf32>
    %245 = arith.divf %243, %244 : vector<8x16xf32>
    %246 = vector.extract_strided_slice %196 {offsets = [0, 32], sizes = [8, 16], strides = [1, 1]} : vector<8x48xf32> to vector<8x16xf32>
    %247 = vector.extract_strided_slice %228 {offsets = [0, 32], sizes = [8, 16], strides = [1, 1]} : vector<8x48xf32> to vector<8x16xf32>
    %248 = vector.broadcast %6 : vector<1x16xf32> to vector<8x16xf32>
    %249 = arith.addf %247, %248 : vector<8x16xf32>
    %250 = arith.mulf %237, %249 : vector<8x16xf32>
    %251 = arith.addf %246, %250 : vector<8x16xf32>
    %252 = math.tanh %251 : vector<8x16xf32>
    %cst_61 = arith.constant 1.000000e+00 : f32
    %253 = vector.broadcast %cst_61 : f32 to vector<8x16xf32>
    %254 = arith.subf %253, %245 : vector<8x16xf32>
    %255 = arith.mulf %254, %252 : vector<8x16xf32>
    %256 = arith.mulf %245, %229 : vector<8x16xf32>
    %257 = arith.addf %255, %256 : vector<8x16xf32>
    %c0_62 = arith.constant 0 : index
    %258 = arith.index_cast %187 : i32 to index
    %c0_63 = arith.constant 0 : index
    %259 = vector.load %arg4[%c0_62, %258, %c0_63] : memref<1x32x16xf32, #tpu.memory_space<vmem>>, vector<1x8x16xf32>
    %260 = vector.shape_cast %259 : vector<1x8x16xf32> to vector<8x16xf32>
    %261 = arith.addf %227, %260 : vector<8x16xf32>
    %c0_64 = arith.constant 0 : index
    %262 = arith.index_cast %190 : i32 to index
    %c0_65 = arith.constant 0 : index
    %263 = vector.load %arg5[%c0_64, %262, %c0_65] : memref<1x32x16xf32, #tpu.memory_space<vmem>>, vector<1x8x16xf32>
    %264 = vector.shape_cast %263 : vector<1x8x16xf32> to vector<8x16xf32>
    %265 = arith.addf %257, %264 : vector<8x16xf32>
    %c0_66 = arith.constant 0 : index
    %266 = arith.index_cast %187 : i32 to index
    %c0_67 = arith.constant 0 : index
    %267 = vector.load %arg8[%c0_66, %266, %c0_67] : memref<1x32x16xf32, #tpu.memory_space<vmem>>, vector<1x8x16xf32>
    %268 = vector.shape_cast %267 : vector<1x8x16xf32> to vector<8x16xf32>
    %269 = vector.shape_cast %261 : vector<8x16xf32> to vector<1x8x16xf32>
    tpu.vector_store %arg8[%c0_66, %266, %c0_67], %269 {strides = array<i32>} : memref<1x32x16xf32, #tpu.memory_space<vmem>>, vector<1x8x16xf32>,
    %c0_68 = arith.constant 0 : index
    %270 = arith.index_cast %190 : i32 to index
    %c0_69 = arith.constant 0 : index
    %271 = vector.load %arg9[%c0_68, %270, %c0_69] : memref<1x32x16xf32, #tpu.memory_space<vmem>>, vector<1x8x16xf32>
    %272 = vector.shape_cast %271 : vector<1x8x16xf32> to vector<8x16xf32>
    %273 = vector.shape_cast %265 : vector<8x16xf32> to vector<1x8x16xf32>
    tpu.vector_store %arg9[%c0_68, %270, %c0_69], %273 {strides = array<i32>} : memref<1x32x16xf32, #tpu.memory_space<vmem>>, vector<1x8x16xf32>,
    %274 = tpu.concatenate %227, %257 in 1 : vector<8x16xf32>, vector<8x16xf32> -> vector<8x32xf32>
    %c3_i32_70 = arith.constant 3 : i32
    %c8_i32_71 = arith.constant 8 : i32
    %275 = arith.muli %c3_i32_70, %c8_i32_71 : i32
    %276 = tpu.assume_multiple %275, 8 : i32
    %c3_i32_72 = arith.constant 3 : i32
    %277 = arith.subi %c3_i32_72, %c3_i32_70 : i32
    %c8_i32_73 = arith.constant 8 : i32
    %278 = arith.muli %277, %c8_i32_73 : i32
    %279 = tpu.assume_multiple %278, 8 : i32
    %c0_74 = arith.constant 0 : index
    %280 = arith.index_cast %276 : i32 to index
    %c0_75 = arith.constant 0 : index
    %281 = vector.load %arg2[%c0_74, %280, %c0_75] : memref<1x32x48xf32, #tpu.memory_space<vmem>>, vector<1x8x48xf32>
    %282 = vector.shape_cast %281 : vector<1x8x48xf32> to vector<8x48xf32>
    %c0_76 = arith.constant 0 : index
    %283 = arith.index_cast %279 : i32 to index
    %c0_77 = arith.constant 0 : index
    %284 = vector.load %arg3[%c0_76, %283, %c0_77] : memref<1x32x48xf32, #tpu.memory_space<vmem>>, vector<1x8x48xf32>
    %285 = vector.shape_cast %284 : vector<1x8x48xf32> to vector<8x48xf32>
    %cst_78 = arith.constant dense<0.000000e+00> : vector<8x96xf32>
    %286 = tpu.matmul %274, %3, %cst_78 {dimension_numbers = #tpu.dot_dimension_numbers<[1], [0], [0], [1], [0, 0, 1, 1], [], []>} : vector<8x32xf32>, vector<32x96xf32>, vector<8x96xf32> -> vector<8x96xf32>
    %287 = vector.extract_strided_slice %286 {offsets = [0, 0], sizes = [8, 48], strides = [1, 1]} : vector<8x96xf32> to vector<8x48xf32>
    %288 = vector.extract_strided_slice %274 {offsets = [0, 0], sizes = [8, 16], strides = [1, 1]} : vector<8x32xf32> to vector<8x16xf32>
    %289 = vector.extract_strided_slice %282 {offsets = [0, 0], sizes = [8, 16], strides = [1, 1]} : vector<8x48xf32> to vector<8x16xf32>
    %290 = vector.extract_strided_slice %287 {offsets = [0, 0], sizes = [8, 16], strides = [1, 1]} : vector<8x48xf32> to vector<8x16xf32>
    %291 = arith.addf %289, %290 : vector<8x16xf32>
    %292 = arith.negf %291 : vector<8x16xf32>
    %293 = math.exp %292 : vector<8x16xf32>
    %cst_79 = arith.constant 1.000000e+00 : f32
    %294 = vector.broadcast %cst_79 : f32 to vector<8x16xf32>
    %295 = arith.addf %294, %293 : vector<8x16xf32>
    %296 = arith.divf %294, %295 : vector<8x16xf32>
    %297 = vector.extract_strided_slice %282 {offsets = [0, 16], sizes = [8, 16], strides = [1, 1]} : vector<8x48xf32> to vector<8x16xf32>
    %298 = vector.extract_strided_slice %287 {offsets = [0, 16], sizes = [8, 16], strides = [1, 1]} : vector<8x48xf32> to vector<8x16xf32>
    %299 = arith.addf %297, %298 : vector<8x16xf32>
    %300 = arith.negf %299 : vector<8x16xf32>
    %301 = math.exp %300 : vector<8x16xf32>
    %cst_80 = arith.constant 1.000000e+00 : f32
    %302 = vector.broadcast %cst_80 : f32 to vector<8x16xf32>
    %303 = arith.addf %302, %301 : vector<8x16xf32>
    %304 = arith.divf %302, %303 : vector<8x16xf32>
    %305 = vector.extract_strided_slice %282 {offsets = [0, 32], sizes = [8, 16], strides = [1, 1]} : vector<8x48xf32> to vector<8x16xf32>
    %306 = vector.extract_strided_slice %287 {offsets = [0, 32], sizes = [8, 16], strides = [1, 1]} : vector<8x48xf32> to vector<8x16xf32>
    %307 = vector.broadcast %5 : vector<1x16xf32> to vector<8x16xf32>
    %308 = arith.addf %306, %307 : vector<8x16xf32>
    %309 = arith.mulf %296, %308 : vector<8x16xf32>
    %310 = arith.addf %305, %309 : vector<8x16xf32>
    %311 = math.tanh %310 : vector<8x16xf32>
    %cst_81 = arith.constant 1.000000e+00 : f32
    %312 = vector.broadcast %cst_81 : f32 to vector<8x16xf32>
    %313 = arith.subf %312, %304 : vector<8x16xf32>
    %314 = arith.mulf %313, %311 : vector<8x16xf32>
    %315 = arith.mulf %304, %288 : vector<8x16xf32>
    %316 = arith.addf %314, %315 : vector<8x16xf32>
    %317 = vector.extract_strided_slice %286 {offsets = [0, 48], sizes = [8, 48], strides = [1, 1]} : vector<8x96xf32> to vector<8x48xf32>
    %318 = vector.extract_strided_slice %274 {offsets = [0, 16], sizes = [8, 16], strides = [1, 1]} : vector<8x32xf32> to vector<8x16xf32>
    %319 = vector.extract_strided_slice %285 {offsets = [0, 0], sizes = [8, 16], strides = [1, 1]} : vector<8x48xf32> to vector<8x16xf32>
    %320 = vector.extract_strided_slice %317 {offsets = [0, 0], sizes = [8, 16], strides = [1, 1]} : vector<8x48xf32> to vector<8x16xf32>
    %321 = arith.addf %319, %320 : vector<8x16xf32>
    %322 = arith.negf %321 : vector<8x16xf32>
    %323 = math.exp %322 : vector<8x16xf32>
    %cst_82 = arith.constant 1.000000e+00 : f32
    %324 = vector.broadcast %cst_82 : f32 to vector<8x16xf32>
    %325 = arith.addf %324, %323 : vector<8x16xf32>
    %326 = arith.divf %324, %325 : vector<8x16xf32>
    %327 = vector.extract_strided_slice %285 {offsets = [0, 16], sizes = [8, 16], strides = [1, 1]} : vector<8x48xf32> to vector<8x16xf32>
    %328 = vector.extract_strided_slice %317 {offsets = [0, 16], sizes = [8, 16], strides = [1, 1]} : vector<8x48xf32> to vector<8x16xf32>
    %329 = arith.addf %327, %328 : vector<8x16xf32>
    %330 = arith.negf %329 : vector<8x16xf32>
    %331 = math.exp %330 : vector<8x16xf32>
    %cst_83 = arith.constant 1.000000e+00 : f32
    %332 = vector.broadcast %cst_83 : f32 to vector<8x16xf32>
    %333 = arith.addf %332, %331 : vector<8x16xf32>
    %334 = arith.divf %332, %333 : vector<8x16xf32>
    %335 = vector.extract_strided_slice %285 {offsets = [0, 32], sizes = [8, 16], strides = [1, 1]} : vector<8x48xf32> to vector<8x16xf32>
    %336 = vector.extract_strided_slice %317 {offsets = [0, 32], sizes = [8, 16], strides = [1, 1]} : vector<8x48xf32> to vector<8x16xf32>
    %337 = vector.broadcast %6 : vector<1x16xf32> to vector<8x16xf32>
    %338 = arith.addf %336, %337 : vector<8x16xf32>
    %339 = arith.mulf %326, %338 : vector<8x16xf32>
    %340 = arith.addf %335, %339 : vector<8x16xf32>
    %341 = math.tanh %340 : vector<8x16xf32>
    %cst_84 = arith.constant 1.000000e+00 : f32
    %342 = vector.broadcast %cst_84 : f32 to vector<8x16xf32>
    %343 = arith.subf %342, %334 : vector<8x16xf32>
    %344 = arith.mulf %343, %341 : vector<8x16xf32>
    %345 = arith.mulf %334, %318 : vector<8x16xf32>
    %346 = arith.addf %344, %345 : vector<8x16xf32>
    %c0_85 = arith.constant 0 : index
    %347 = arith.index_cast %276 : i32 to index
    %c0_86 = arith.constant 0 : index
    %348 = vector.load %arg4[%c0_85, %347, %c0_86] : memref<1x32x16xf32, #tpu.memory_space<vmem>>, vector<1x8x16xf32>
    %349 = vector.shape_cast %348 : vector<1x8x16xf32> to vector<8x16xf32>
    %350 = arith.addf %316, %349 : vector<8x16xf32>
    %c0_87 = arith.constant 0 : index
    %351 = arith.index_cast %279 : i32 to index
    %c0_88 = arith.constant 0 : index
    %352 = vector.load %arg5[%c0_87, %351, %c0_88] : memref<1x32x16xf32, #tpu.memory_space<vmem>>, vector<1x8x16xf32>
    %353 = vector.shape_cast %352 : vector<1x8x16xf32> to vector<8x16xf32>
    %354 = arith.addf %346, %353 : vector<8x16xf32>
    %c0_89 = arith.constant 0 : index
    %355 = arith.index_cast %276 : i32 to index
    %c0_90 = arith.constant 0 : index
    %356 = vector.load %arg8[%c0_89, %355, %c0_90] : memref<1x32x16xf32, #tpu.memory_space<vmem>>, vector<1x8x16xf32>
    %357 = vector.shape_cast %356 : vector<1x8x16xf32> to vector<8x16xf32>
    %358 = vector.shape_cast %350 : vector<8x16xf32> to vector<1x8x16xf32>
    tpu.vector_store %arg8[%c0_89, %355, %c0_90], %358 {strides = array<i32>} : memref<1x32x16xf32, #tpu.memory_space<vmem>>, vector<1x8x16xf32>,
    %c0_91 = arith.constant 0 : index
    %359 = arith.index_cast %279 : i32 to index
    %c0_92 = arith.constant 0 : index
    %360 = vector.load %arg9[%c0_91, %359, %c0_92] : memref<1x32x16xf32, #tpu.memory_space<vmem>>, vector<1x8x16xf32>
    %361 = vector.shape_cast %360 : vector<1x8x16xf32> to vector<8x16xf32>
    %362 = vector.shape_cast %354 : vector<8x16xf32> to vector<1x8x16xf32>
    tpu.vector_store %arg9[%c0_91, %359, %c0_92], %362 {strides = array<i32>} : memref<1x32x16xf32, #tpu.memory_space<vmem>>, vector<1x8x16xf32>,
    %363 = tpu.concatenate %316, %346 in 1 : vector<8x16xf32>, vector<8x16xf32> -> vector<8x32xf32>
    %c4_i32 = arith.constant 4 : i32
    %c0_93 = arith.constant 0 : index
    %c0_94 = arith.constant 0 : index
    %364 = vector.load %arg10[%c0_93, %c0_94] : memref<8x32xf32, #tpu.memory_space<vmem>>, vector<8x32xf32>
    tpu.vector_store %arg10[%c0_93, %c0_94], %363 {strides = array<i32>} : memref<8x32xf32, #tpu.memory_space<vmem>>, vector<8x32xf32>,
    return
  }
  func.func @transform_0(%arg0: i32, %arg1: i32) -> (i32, i32, i32) {
    %c0_i32 = arith.constant 0 : i32
    %c0_i32_0 = arith.constant 0 : i32
    return %arg0, %arg1, %c0_i32 : i32, i32, i32
  }
  func.func @transform_1(%arg0: i32, %arg1: i32) -> (i32, i32, i32) {
    %c1_i32 = arith.constant 1 : i32
    %0 = arith.subi %c1_i32, %arg1 : i32
    %c0_i32 = arith.constant 0 : i32
    %c0_i32_0 = arith.constant 0 : i32
    return %arg0, %0, %c0_i32 : i32, i32, i32
  }
  func.func @transform_2(%arg0: i32, %arg1: i32) -> (i32, i32, i32) {
    %c0_i32 = arith.constant 0 : i32
    %c0_i32_0 = arith.constant 0 : i32
    return %arg0, %arg1, %c0_i32 : i32, i32, i32
  }
  func.func @transform_3(%arg0: i32, %arg1: i32) -> (i32, i32, i32) {
    %c1_i32 = arith.constant 1 : i32
    %0 = arith.subi %c1_i32, %arg1 : i32
    %c0_i32 = arith.constant 0 : i32
    %c0_i32_0 = arith.constant 0 : i32
    return %arg0, %0, %c0_i32 : i32, i32, i32
  }
  func.func @transform_4(%arg0: i32, %arg1: i32) -> (i32, i32) {
    %c0_i32 = arith.constant 0 : i32
    %c0_i32_0 = arith.constant 0 : i32
    %c0_i32_1 = arith.constant 0 : i32
    return %c0_i32, %c0_i32_0 : i32, i32
  }
  func.func @transform_5(%arg0: i32, %arg1: i32) -> (i32, i32) {
    %c0_i32 = arith.constant 0 : i32
    %c0_i32_0 = arith.constant 0 : i32
    %c0_i32_1 = arith.constant 0 : i32
    return %c0_i32, %c0_i32_0 : i32, i32
  }
  func.func @transform_6(%arg0: i32, %arg1: i32) -> (i32, i32, i32) {
    %c0_i32 = arith.constant 0 : i32
    %c0_i32_0 = arith.constant 0 : i32
    return %arg0, %arg1, %c0_i32 : i32, i32, i32
  }
  func.func @transform_7(%arg0: i32, %arg1: i32) -> (i32, i32, i32) {
    %c1_i32 = arith.constant 1 : i32
    %0 = arith.subi %c1_i32, %arg1 : i32
    %c0_i32 = arith.constant 0 : i32
    %c0_i32_0 = arith.constant 0 : i32
    return %arg0, %0, %c0_i32 : i32, i32, i32
  }
}

module attributes {stable_mosaic.version = 11 : i64} {
  func.func @kernel(%arg0: i32, %arg1: i32, %arg2: memref<1x32x16xf32, #tpu.memory_space<vmem>>, %arg3: memref<1x32x16xf32, #tpu.memory_space<vmem>>, %arg4: memref<1x32x1xf32, #tpu.memory_space<vmem>>, %arg5: memref<16x10xf32, #tpu.memory_space<vmem>>, %arg6: memref<16x10xf32, #tpu.memory_space<vmem>>, %arg7: memref<1x10xf32, #tpu.memory_space<vmem>>, %arg8: memref<1x8x10xf32, #tpu.memory_space<vmem>>, %arg9: memref<8x16xf32, #tpu.memory_space<vmem>>, %arg10: memref<8x16xf32, #tpu.memory_space<vmem>>, %arg11: memref<8x1xf32, #tpu.memory_space<vmem>>) attributes {dimension_semantics = [#tpu.dimension_semantics<parallel>, #tpu.dimension_semantics<arbitrary>], iteration_bounds = array<i64: 1, 2>, scalar_prefetch = 0 : i64, scratch_operands = 3 : i64, tpu.core_type = #tpu.core_type<tc>, window_params = [{transform_indices = @transform_0, window_bounds = array<i64: 1, 32, 16>}, {transform_indices = @transform_1, window_bounds = array<i64: 1, 32, 16>}, {transform_indices = @transform_2, window_bounds = array<i64: 1, 32, 1>}, {pipeline_mode = #tpu.pipeline_mode<synchronous>, transform_indices = @transform_3, window_bounds = array<i64: 16, 10>}, {pipeline_mode = #tpu.pipeline_mode<synchronous>, transform_indices = @transform_4, window_bounds = array<i64: 16, 10>}, {pipeline_mode = #tpu.pipeline_mode<synchronous>, transform_indices = @transform_5, window_bounds = array<i64: 1, 10>}, {transform_indices = @transform_6, window_bounds = array<i64: 1, 8, 10>}]} {
    %c0_i32 = arith.constant 0 : i32
    %0 = arith.cmpi eq, %arg1, %c0_i32 : i32
    %1 = arith.extui %0 : i1 to i32
    %c0_i32_0 = arith.constant 0 : i32
    %2 = arith.cmpi ne, %1, %c0_i32_0 : i32
    scf.if %2 {
      %cst_43 = arith.constant 0.000000e+00 : f32
      %89 = vector.broadcast %cst_43 : f32 to vector<8x16xf32>
      %c0_44 = arith.constant 0 : index
      %c0_45 = arith.constant 0 : index
      %90 = vector.load %arg9[%c0_44, %c0_45] : memref<8x16xf32, #tpu.memory_space<vmem>>, vector<8x16xf32>
      tpu.vector_store %arg9[%c0_44, %c0_45], %89 {strides = array<i32>} : memref<8x16xf32, #tpu.memory_space<vmem>>, vector<8x16xf32>,
      %cst_46 = arith.constant 0.000000e+00 : f32
      %91 = vector.broadcast %cst_46 : f32 to vector<8x16xf32>
      %c0_47 = arith.constant 0 : index
      %c0_48 = arith.constant 0 : index
      %92 = vector.load %arg10[%c0_47, %c0_48] : memref<8x16xf32, #tpu.memory_space<vmem>>, vector<8x16xf32>
      tpu.vector_store %arg10[%c0_47, %c0_48], %91 {strides = array<i32>} : memref<8x16xf32, #tpu.memory_space<vmem>>, vector<8x16xf32>,
      %cst_49 = arith.constant 0.000000e+00 : f32
      %93 = vector.broadcast %cst_49 : f32 to vector<8x1xf32>
      %c0_50 = arith.constant 0 : index
      %c0_51 = arith.constant 0 : index
      %94 = vector.load %arg11[%c0_50, %c0_51] : memref<8x1xf32, #tpu.memory_space<vmem>>, vector<8x1xf32>
      tpu.vector_store %arg11[%c0_50, %c0_51], %93 {strides = array<i32>} : memref<8x1xf32, #tpu.memory_space<vmem>>, vector<8x1xf32>,
    } else {
    }
    %cst = arith.constant 0.000000e+00 : f32
    %3 = vector.broadcast %cst : f32 to vector<8x16xf32>
    %cst_1 = arith.constant 0.000000e+00 : f32
    %4 = vector.broadcast %cst_1 : f32 to vector<8x1xf32>
    %c0_i32_2 = arith.constant 0 : i32
    %c8_i32 = arith.constant 8 : i32
    %5 = arith.muli %c0_i32_2, %c8_i32 : i32
    %6 = tpu.assume_multiple %5, 8 : i32
    %c0 = arith.constant 0 : index
    %7 = arith.index_cast %6 : i32 to index
    %c0_3 = arith.constant 0 : index
    %8 = vector.load %arg4[%c0, %7, %c0_3] : memref<1x32x1xf32, #tpu.memory_space<vmem>>, vector<1x8x1xf32>
    %9 = vector.shape_cast %8 : vector<1x8x1xf32> to vector<8x1xf32>
    %c0_4 = arith.constant 0 : index
    %10 = arith.index_cast %6 : i32 to index
    %c0_5 = arith.constant 0 : index
    %11 = vector.load %arg2[%c0_4, %10, %c0_5] : memref<1x32x16xf32, #tpu.memory_space<vmem>>, vector<1x8x16xf32>
    %12 = vector.shape_cast %11 : vector<1x8x16xf32> to vector<8x16xf32>
    %13 = vector.broadcast %9 : vector<8x1xf32> to vector<8x16xf32>
    %14 = arith.mulf %12, %13 : vector<8x16xf32>
    %15 = arith.addf %3, %14 : vector<8x16xf32>
    %c0_6 = arith.constant 0 : index
    %16 = arith.index_cast %6 : i32 to index
    %c0_7 = arith.constant 0 : index
    %17 = vector.load %arg3[%c0_6, %16, %c0_7] : memref<1x32x16xf32, #tpu.memory_space<vmem>>, vector<1x8x16xf32>
    %18 = vector.shape_cast %17 : vector<1x8x16xf32> to vector<8x16xf32>
    %19 = vector.broadcast %9 : vector<8x1xf32> to vector<8x16xf32>
    %20 = arith.mulf %18, %19 : vector<8x16xf32>
    %21 = arith.addf %3, %20 : vector<8x16xf32>
    %22 = arith.addf %4, %9 : vector<8x1xf32>
    %c1_i32 = arith.constant 1 : i32
    %c8_i32_8 = arith.constant 8 : i32
    %23 = arith.muli %c1_i32, %c8_i32_8 : i32
    %24 = tpu.assume_multiple %23, 8 : i32
    %c0_9 = arith.constant 0 : index
    %25 = arith.index_cast %24 : i32 to index
    %c0_10 = arith.constant 0 : index
    %26 = vector.load %arg4[%c0_9, %25, %c0_10] : memref<1x32x1xf32, #tpu.memory_space<vmem>>, vector<1x8x1xf32>
    %27 = vector.shape_cast %26 : vector<1x8x1xf32> to vector<8x1xf32>
    %c0_11 = arith.constant 0 : index
    %28 = arith.index_cast %24 : i32 to index
    %c0_12 = arith.constant 0 : index
    %29 = vector.load %arg2[%c0_11, %28, %c0_12] : memref<1x32x16xf32, #tpu.memory_space<vmem>>, vector<1x8x16xf32>
    %30 = vector.shape_cast %29 : vector<1x8x16xf32> to vector<8x16xf32>
    %31 = vector.broadcast %27 : vector<8x1xf32> to vector<8x16xf32>
    %32 = arith.mulf %30, %31 : vector<8x16xf32>
    %33 = arith.addf %15, %32 : vector<8x16xf32>
    %c0_13 = arith.constant 0 : index
    %34 = arith.index_cast %24 : i32 to index
    %c0_14 = arith.constant 0 : index
    %35 = vector.load %arg3[%c0_13, %34, %c0_14] : memref<1x32x16xf32, #tpu.memory_space<vmem>>, vector<1x8x16xf32>
    %36 = vector.shape_cast %35 : vector<1x8x16xf32> to vector<8x16xf32>
    %37 = vector.broadcast %27 : vector<8x1xf32> to vector<8x16xf32>
    %38 = arith.mulf %36, %37 : vector<8x16xf32>
    %39 = arith.addf %21, %38 : vector<8x16xf32>
    %40 = arith.addf %22, %27 : vector<8x1xf32>
    %c2_i32 = arith.constant 2 : i32
    %c8_i32_15 = arith.constant 8 : i32
    %41 = arith.muli %c2_i32, %c8_i32_15 : i32
    %42 = tpu.assume_multiple %41, 8 : i32
    %c0_16 = arith.constant 0 : index
    %43 = arith.index_cast %42 : i32 to index
    %c0_17 = arith.constant 0 : index
    %44 = vector.load %arg4[%c0_16, %43, %c0_17] : memref<1x32x1xf32, #tpu.memory_space<vmem>>, vector<1x8x1xf32>
    %45 = vector.shape_cast %44 : vector<1x8x1xf32> to vector<8x1xf32>
    %c0_18 = arith.constant 0 : index
    %46 = arith.index_cast %42 : i32 to index
    %c0_19 = arith.constant 0 : index
    %47 = vector.load %arg2[%c0_18, %46, %c0_19] : memref<1x32x16xf32, #tpu.memory_space<vmem>>, vector<1x8x16xf32>
    %48 = vector.shape_cast %47 : vector<1x8x16xf32> to vector<8x16xf32>
    %49 = vector.broadcast %45 : vector<8x1xf32> to vector<8x16xf32>
    %50 = arith.mulf %48, %49 : vector<8x16xf32>
    %51 = arith.addf %33, %50 : vector<8x16xf32>
    %c0_20 = arith.constant 0 : index
    %52 = arith.index_cast %42 : i32 to index
    %c0_21 = arith.constant 0 : index
    %53 = vector.load %arg3[%c0_20, %52, %c0_21] : memref<1x32x16xf32, #tpu.memory_space<vmem>>, vector<1x8x16xf32>
    %54 = vector.shape_cast %53 : vector<1x8x16xf32> to vector<8x16xf32>
    %55 = vector.broadcast %45 : vector<8x1xf32> to vector<8x16xf32>
    %56 = arith.mulf %54, %55 : vector<8x16xf32>
    %57 = arith.addf %39, %56 : vector<8x16xf32>
    %58 = arith.addf %40, %45 : vector<8x1xf32>
    %c3_i32 = arith.constant 3 : i32
    %c8_i32_22 = arith.constant 8 : i32
    %59 = arith.muli %c3_i32, %c8_i32_22 : i32
    %60 = tpu.assume_multiple %59, 8 : i32
    %c0_23 = arith.constant 0 : index
    %61 = arith.index_cast %60 : i32 to index
    %c0_24 = arith.constant 0 : index
    %62 = vector.load %arg4[%c0_23, %61, %c0_24] : memref<1x32x1xf32, #tpu.memory_space<vmem>>, vector<1x8x1xf32>
    %63 = vector.shape_cast %62 : vector<1x8x1xf32> to vector<8x1xf32>
    %c0_25 = arith.constant 0 : index
    %64 = arith.index_cast %60 : i32 to index
    %c0_26 = arith.constant 0 : index
    %65 = vector.load %arg2[%c0_25, %64, %c0_26] : memref<1x32x16xf32, #tpu.memory_space<vmem>>, vector<1x8x16xf32>
    %66 = vector.shape_cast %65 : vector<1x8x16xf32> to vector<8x16xf32>
    %67 = vector.broadcast %63 : vector<8x1xf32> to vector<8x16xf32>
    %68 = arith.mulf %66, %67 : vector<8x16xf32>
    %69 = arith.addf %51, %68 : vector<8x16xf32>
    %c0_27 = arith.constant 0 : index
    %70 = arith.index_cast %60 : i32 to index
    %c0_28 = arith.constant 0 : index
    %71 = vector.load %arg3[%c0_27, %70, %c0_28] : memref<1x32x16xf32, #tpu.memory_space<vmem>>, vector<1x8x16xf32>
    %72 = vector.shape_cast %71 : vector<1x8x16xf32> to vector<8x16xf32>
    %73 = vector.broadcast %63 : vector<8x1xf32> to vector<8x16xf32>
    %74 = arith.mulf %72, %73 : vector<8x16xf32>
    %75 = arith.addf %57, %74 : vector<8x16xf32>
    %76 = arith.addf %58, %63 : vector<8x1xf32>
    %c4_i32 = arith.constant 4 : i32
    %c0_29 = arith.constant 0 : index
    %c0_30 = arith.constant 0 : index
    %77 = vector.load %arg9[%c0_29, %c0_30] : memref<8x16xf32, #tpu.memory_space<vmem>>, vector<8x16xf32>
    %78 = arith.addf %77, %69 : vector<8x16xf32>
    %c0_31 = arith.constant 0 : index
    %c0_32 = arith.constant 0 : index
    %79 = vector.load %arg9[%c0_31, %c0_32] : memref<8x16xf32, #tpu.memory_space<vmem>>, vector<8x16xf32>
    tpu.vector_store %arg9[%c0_31, %c0_32], %78 {strides = array<i32>} : memref<8x16xf32, #tpu.memory_space<vmem>>, vector<8x16xf32>,
    %c0_33 = arith.constant 0 : index
    %c0_34 = arith.constant 0 : index
    %80 = vector.load %arg10[%c0_33, %c0_34] : memref<8x16xf32, #tpu.memory_space<vmem>>, vector<8x16xf32>
    %81 = arith.addf %80, %75 : vector<8x16xf32>
    %c0_35 = arith.constant 0 : index
    %c0_36 = arith.constant 0 : index
    %82 = vector.load %arg10[%c0_35, %c0_36] : memref<8x16xf32, #tpu.memory_space<vmem>>, vector<8x16xf32>
    tpu.vector_store %arg10[%c0_35, %c0_36], %81 {strides = array<i32>} : memref<8x16xf32, #tpu.memory_space<vmem>>, vector<8x16xf32>,
    %c0_37 = arith.constant 0 : index
    %c0_38 = arith.constant 0 : index
    %83 = vector.load %arg11[%c0_37, %c0_38] : memref<8x1xf32, #tpu.memory_space<vmem>>, vector<8x1xf32>
    %84 = arith.addf %83, %76 : vector<8x1xf32>
    %c0_39 = arith.constant 0 : index
    %c0_40 = arith.constant 0 : index
    %85 = vector.load %arg11[%c0_39, %c0_40] : memref<8x1xf32, #tpu.memory_space<vmem>>, vector<8x1xf32>
    tpu.vector_store %arg11[%c0_39, %c0_40], %84 {strides = array<i32>} : memref<8x1xf32, #tpu.memory_space<vmem>>, vector<8x1xf32>,
    %c1_i32_41 = arith.constant 1 : i32
    %86 = arith.cmpi eq, %arg1, %c1_i32_41 : i32
    %87 = arith.extui %86 : i1 to i32
    %c0_i32_42 = arith.constant 0 : i32
    %88 = arith.cmpi ne, %87, %c0_i32_42 : i32
    scf.if %88 {
      %c0_43 = arith.constant 0 : index
      %c0_44 = arith.constant 0 : index
      %89 = vector.load %arg11[%c0_43, %c0_44] : memref<8x1xf32, #tpu.memory_space<vmem>>, vector<8x1xf32>
      %cst_45 = arith.constant 9.99999997E-7 : f32
      %90 = vector.broadcast %cst_45 : f32 to vector<8x1xf32>
      %91 = arith.maximumf %89, %90 : vector<8x1xf32>
      %c0_46 = arith.constant 0 : index
      %c0_47 = arith.constant 0 : index
      %92 = vector.load %arg9[%c0_46, %c0_47] : memref<8x16xf32, #tpu.memory_space<vmem>>, vector<8x16xf32>
      %93 = vector.broadcast %91 : vector<8x1xf32> to vector<8x16xf32>
      %94 = arith.divf %92, %93 : vector<8x16xf32>
      %c0_48 = arith.constant 0 : index
      %c0_49 = arith.constant 0 : index
      %95 = vector.load %arg10[%c0_48, %c0_49] : memref<8x16xf32, #tpu.memory_space<vmem>>, vector<8x16xf32>
      %96 = vector.broadcast %91 : vector<8x1xf32> to vector<8x16xf32>
      %97 = arith.divf %95, %96 : vector<8x16xf32>
      %c0_50 = arith.constant 0 : index
      %c0_51 = arith.constant 0 : index
      %98 = vector.load %arg5[%c0_50, %c0_51] : memref<16x10xf32, #tpu.memory_space<vmem>>, vector<16x10xf32>
      %cst_52 = arith.constant dense<0.000000e+00> : vector<8x10xf32>
      %99 = tpu.matmul %94, %98, %cst_52 {dimension_numbers = #tpu.dot_dimension_numbers<[1], [0], [0], [1], [0, 0, 1, 1], [], []>} : vector<8x16xf32>, vector<16x10xf32>, vector<8x10xf32> -> vector<8x10xf32>
      %c0_53 = arith.constant 0 : index
      %c0_54 = arith.constant 0 : index
      %100 = vector.load %arg6[%c0_53, %c0_54] : memref<16x10xf32, #tpu.memory_space<vmem>>, vector<16x10xf32>
      %cst_55 = arith.constant dense<0.000000e+00> : vector<8x10xf32>
      %101 = tpu.matmul %97, %100, %cst_55 {dimension_numbers = #tpu.dot_dimension_numbers<[1], [0], [0], [1], [0, 0, 1, 1], [], []>} : vector<8x16xf32>, vector<16x10xf32>, vector<8x10xf32> -> vector<8x10xf32>
      %102 = arith.addf %99, %101 : vector<8x10xf32>
      %c0_56 = arith.constant 0 : index
      %c0_57 = arith.constant 0 : index
      %103 = vector.load %arg7[%c0_56, %c0_57] : memref<1x10xf32, #tpu.memory_space<vmem>>, vector<1x10xf32>
      %104 = vector.broadcast %103 : vector<1x10xf32> to vector<8x10xf32>
      %105 = arith.addf %102, %104 : vector<8x10xf32>
      %cst_58 = arith.constant dense<0xFF800000> : vector<8xf32>
      %106 = vector.multi_reduction <maximumf>, %105, %cst_58 [1] : vector<8x10xf32> to vector<8xf32>
      %107 = vector.shape_cast %106 : vector<8xf32> to vector<8x1xf32>
      %108 = vector.broadcast %107 : vector<8x1xf32> to vector<8x10xf32>
      %109 = arith.subf %105, %108 : vector<8x10xf32>
      %110 = math.exp %109 : vector<8x10xf32>
      %cst_59 = arith.constant dense<0.000000e+00> : vector<8xf32>
      %111 = vector.multi_reduction <add>, %110, %cst_59 [1] : vector<8x10xf32> to vector<8xf32>
      %112 = vector.shape_cast %111 : vector<8xf32> to vector<8x1xf32>
      %113 = math.log %112 : vector<8x1xf32>
      %114 = vector.broadcast %113 : vector<8x1xf32> to vector<8x10xf32>
      %115 = arith.subf %109, %114 : vector<8x10xf32>
      %c0_60 = arith.constant 0 : index
      %c0_61 = arith.constant 0 : index
      %c0_62 = arith.constant 0 : index
      %116 = vector.load %arg8[%c0_60, %c0_61, %c0_62] : memref<1x8x10xf32, #tpu.memory_space<vmem>>, vector<1x8x10xf32>
      %117 = vector.shape_cast %116 : vector<1x8x10xf32> to vector<8x10xf32>
      %118 = vector.shape_cast %115 : vector<8x10xf32> to vector<1x8x10xf32>
      tpu.vector_store %arg8[%c0_60, %c0_61, %c0_62], %118 {strides = array<i32>} : memref<1x8x10xf32, #tpu.memory_space<vmem>>, vector<1x8x10xf32>,
    } else {
    }
    return
  }
  func.func @transform_0(%arg0: i32, %arg1: i32) -> (i32, i32, i32) {
    %c0_i32 = arith.constant 0 : i32
    %c0_i32_0 = arith.constant 0 : i32
    return %arg0, %arg1, %c0_i32 : i32, i32, i32
  }
  func.func @transform_1(%arg0: i32, %arg1: i32) -> (i32, i32, i32) {
    %c0_i32 = arith.constant 0 : i32
    %c0_i32_0 = arith.constant 0 : i32
    return %arg0, %arg1, %c0_i32 : i32, i32, i32
  }
  func.func @transform_2(%arg0: i32, %arg1: i32) -> (i32, i32, i32) {
    %c0_i32 = arith.constant 0 : i32
    %c0_i32_0 = arith.constant 0 : i32
    return %arg0, %arg1, %c0_i32 : i32, i32, i32
  }
  func.func @transform_3(%arg0: i32, %arg1: i32) -> (i32, i32) {
    %c0_i32 = arith.constant 0 : i32
    %c0_i32_0 = arith.constant 0 : i32
    %c0_i32_1 = arith.constant 0 : i32
    return %c0_i32, %c0_i32_0 : i32, i32
  }
  func.func @transform_4(%arg0: i32, %arg1: i32) -> (i32, i32) {
    %c0_i32 = arith.constant 0 : i32
    %c0_i32_0 = arith.constant 0 : i32
    %c0_i32_1 = arith.constant 0 : i32
    return %c0_i32, %c0_i32_0 : i32, i32
  }
  func.func @transform_5(%arg0: i32, %arg1: i32) -> (i32, i32) {
    %c0_i32 = arith.constant 0 : i32
    %c0_i32_0 = arith.constant 0 : i32
    %c0_i32_1 = arith.constant 0 : i32
    return %c0_i32, %c0_i32_0 : i32, i32
  }
  func.func @transform_6(%arg0: i32, %arg1: i32) -> (i32, i32, i32) {
    %c0_i32 = arith.constant 0 : i32
    %c0_i32_0 = arith.constant 0 : i32
    %c0_i32_1 = arith.constant 0 : i32
    return %arg0, %c0_i32, %c0_i32_0 : i32, i32, i32
  }
}

</mosaic_0001>

<bundles_post_ra>
// kernel: lan_net_forward.9
= control target key start
LH: loop header
LB: loop body
LE: loop exit
PB: predicated region body
PF: predicated region fallthrough
CT: control target
= control target key end

     0   :  { %s727_s21 = smov 0   ;;  %s729_s22 = smov 0   ;;  %s783_s0 = inlined_call_operand.vmem [shape: f32[1,64,16], index: 0, kind: input, shape index: {}]   ;;  %s784_s1 = inlined_call_operand.vmem [shape: bf16[16,48], index: 1, kind: input, shape index: {}]   ;;  %s785_s2 = inlined_call_operand.vmem [shape: bf16[16,48], index: 2, kind: input, shape index: {}]   ;;  %s786_s3 = inlined_call_operand.vmem [shape: f32[1,48], index: 3, kind: input, shape index: {}]   ;;  %s787_s4 = inlined_call_operand.vmem [shape: f32[1,48], index: 4, kind: input, shape index: {}]   ;;  %s788_s5 = inlined_call_operand.vmem [shape: f32[1,64,48], index: 5, kind: output, shape index: {0}]   ;;  %s789_s6 = inlined_call_operand.vmem [shape: f32[1,64,48], index: 6, kind: output, shape index: {1}]  }
   0x1   :  { %s731_s23 = smov 0  }
   0x2 LB: > { %s26_s24 = sadd.s32 1, %s686_s22  ;;  %p607_p0 = scmp.ge.s32.totalorder %s690_s23, 1  ;;  %s690_s23 = sphi %s731_s23, %s17_s23   ;;  %s686_s22 = sphi %s729_s22, %s791_s22   ;;  %s682_s21 = sphi %s727_s21, %s790_s21  }
   0x3   : > { %p27_p1 = scmp.ge.s32.totalorder %s26_s24, 2  ;;  %p238_p2 = scmp.lt.s32.totalorder %s690_s23, 3 }
   0x5   : > { %s793_s24 = smov (%p27_p1, %s26_s24), 0  ;;  %p239_p3 = pnand %p607_p0, %p238_p2 }
   0x6   : > { %s608_s27 = sshll.u32 (!%p239_p3), %s682_s21, 2 }
   0x7   : > { %242 = sbr.rel (%p239_p3) target bundleno = 221 (0xdd), region = 40  ;;  %p288_p4 = scmp.lt.s32.totalorder (!%p239_p3), %s608_s27, 7 }
   0xc   : > { %v666_v0 = vld [vmem:[%s784_s1] sm:$0xff]   ;;  %s795_s27 = smov (!%p288_p4, %s608_s27), 7  ;;  %vm337_vm0 = vcmask 130048   ;;  %vm393_vm1 = vcmask 392192  }
   0xd   : > { %v667_v1 = vld [vmem:[%s785_s2] sm:$0xff]   ;;  %630 = vmatprep.subr.bf16.mxu0 %v666_v0  ;;  %s609_s30 = sshll.u32 %s795_s27, 3 }
   0xe   : > { %636 = vmatprep.subr.bf16.mxu1 %v667_v1  ;;  %631 = vmatpush3.bf16.msra.mxu0 %v666_v0  ;;  %s293_s9 = scalar_lea.vmem %s783_s0, %s609_s30  ;;  %v614_v10 = vld [vmem:[%s786_s3] ss:$0 sm:$0xff]  ;;  %s303_s16 = scalar_lea.vmem %s788_s5, %s609_s30 }
   0xf   : > { %637 = vmatpush3.bf16.msra.mxu1 %v667_v1  ;;  %v316_v2 = vld [vmem:[%s293_s9] sm:$0xff]  ;;  %v317_v3 = vld [vmem:[%s293_s9 + $0x8] sm:$0xff]  ;;  %v318_v4 = vld [vmem:[%s293_s9 + $0x10] sm:$0xff]  ;;  %s313_s19 = scalar_lea.vmem %s789_s6, %s609_s30 }
  0x10   : > { %v320_v5 = vpack.c.bf16 %v317_v3, %v316_v2  ;;  %v319_v6 = vld [vmem:[%s293_s9 + $0x18] sm:$0xff]  ;;  %v618_v11 = vld [vmem:[%s787_s4] ss:$0 sm:$0xff] }
  0x11   : > { %v321_v7 = vpack.c.bf16 %v319_v6, %v318_v4 }
  0x12   : > { %632 = vmatprep.mubr.msk.bf16.mxu0 %vm337_vm0, %v320_v5  ;;  %638 = vmatprep.mubr.msk.bf16.mxu1 %vm337_vm0, %v320_v5 }
  0x13   : > { %633 = vmatmul.mubr.msk.bf16.vlgmr.msra.gmra.mxu0 %vm337_vm0, %v321_v7  ;;  %639 = vmatmul.mubr.msk.bf16.vlgmr.msra.gmra.mxu1 %vm337_vm0, %v321_v7 }
  0xd3   : > { %v634_v8 = vpop.f32.mrf.mxu0  ;;  %v640_v9 = vpop.f32.mrf.mxu1 }
  0xd4   : > { %v387_v22 = vadd.f32 %v634_v8, %v614_v10  ;;  %v456_v23 = vadd.f32 %v640_v9, %v618_v11 }
  0xd5   : > { %v378_v12 = vpop.f32.mrf.mxu0  ;;  %v447_v13 = vpop.f32.mrf.mxu1 }
  0xd6   : > { %v379_v14 = vadd.f32 %v614_v10, %v378_v12  ;;  %v448_v15 = vadd.f32 %v618_v11, %v447_v13  ;;  %396 = vst.msk [vmem:[%s303_s16 + $0x10] sm:$0xff] %vm393_vm1, %v387_v22  ;;  %464 = vst.msk [vmem:[%s313_s19 + $0x10] sm:$0xff] %vm393_vm1, %v456_v23 }
  0xd7   : > { %v635_v16 = vpop.f32.mrf.mxu0  ;;  %v641_v17 = vpop.f32.mrf.mxu1 }
  0xd8   : > { %394 = vst.msk [vmem:[%s303_s16] sm:$0xff] %vm393_vm1, %v379_v14  ;;  %462 = vst.msk [vmem:[%s313_s19] sm:$0xff] %vm393_vm1, %v448_v15  ;;  %v390_v24 = vadd.f32 %v635_v16, %v614_v10  ;;  %v459_v25 = vadd.f32 %v641_v17, %v618_v11 }
  0xd9   : > { %v381_v18 = vpop.f32.mrf.mxu0  ;;  %v450_v19 = vpop.f32.mrf.mxu1 }
  0xda   : > { %v382_v20 = vadd.f32 %v614_v10, %v381_v18  ;;  %v451_v21 = vadd.f32 %v618_v11, %v450_v19  ;;  %397 = vst.msk [vmem:[%s303_s16 + $0x18] sm:$0xff] %vm393_vm1, %v390_v24  ;;  %465 = vst.msk [vmem:[%s313_s19 + $0x18] sm:$0xff] %vm393_vm1, %v459_v25 }
  0xdc   : > { %395 = vst.msk [vmem:[%s303_s16 + $0x8] sm:$0xff] %vm393_vm1, %v382_v20  ;;  %463 = vst.msk [vmem:[%s313_s19 + $0x8] sm:$0xff] %vm393_vm1, %v451_v21 }
  0xdd PF: > { %s17_s23 = sadd.s32 1, %s690_s23   ;;  %s790_s21 = smov %s686_s22 }
  0xde   : > { %p14_p5 = scmp.ge.s32.totalorder %s17_s23, 4   ;;  %s791_s22 = smov %s793_s24 }
  0xe0   :  { %16 = sbr.rel (!%p14_p5) target bundleno = 2 (0x2), region = 82 }

// kernel: lan_net_forward.10
= control target key start
LH: loop header
LB: loop body
LE: loop exit
PB: predicated region body
PF: predicated region fallthrough
CT: control target
= control target key end

     0   :  { %s1371_s18 = smov 0   ;;  %s1373_s19 = smov 0   ;;  %s1580_s0 = inlined_call_operand.vmem [shape: f32[1,64,48], index: 0, kind: input, shape index: {}]   ;;  %s1581_s1 = inlined_call_operand.vmem [shape: f32[1,64,48], index: 1, kind: input, shape index: {}]   ;;  %s1582_s2 = inlined_call_operand.vmem [shape: f32[32,96], index: 2, kind: input, shape index: {}]   ;;  %s1583_s3 = inlined_call_operand.vmem [shape: f32[1,32], index: 3, kind: input, shape index: {}]   ;;  %s1584_s4 = inlined_call_operand.vmem [shape: f32[1,64,16], index: 4, kind: output, shape index: {0}]   ;;  %s1585_s5 = inlined_call_operand.vmem [shape: f32[1,64,16], index: 5, kind: output, shape index: {1}]  }
   0x1   :  { %s1375_s20 = smov 0  }
   0x2 LB: > { %s25_s21 = sadd.s32 1, %s1325_s19  ;;  %p1124_p0 = scmp.ge.s32.totalorder %s1329_s20, 1  ;;  %s1329_s20 = sphi %s1375_s20, %s16_s20   ;;  %s1325_s19 = sphi %s1373_s19, %s1587_s19   ;;  %s1321_s18 = sphi %s1371_s18, %s1586_s18  }
   0x3   : > { %p26_p1 = scmp.ge.s32.totalorder %s25_s21, 2  ;;  %p236_p2 = scmp.lt.s32.totalorder %s1329_s20, 3 }
   0x5   : > { %s1589_s21 = smov (%p26_p1, %s25_s21), 0  ;;  %p237_p3 = pnand %p1124_p0, %p236_p2 }
   0x6   : > { %s1125_s22 = sshll.u32 (!%p237_p3), %s1321_s18, 2  ;;  %s302_s23 = ssub.s32 (!%p237_p3), 1, %s1321_s18 }
   0x7   : > { %240 = sbr.rel (%p237_p3) target bundleno = 2776 (0xad8), region = 36  ;;  %p295_p4 = scmp.lt.s32.totalorder (!%p237_p3), %s1125_s22, 7 }
   0x8   : > { %s1127_s24 = sshll.u32 (!%p237_p3), %s302_s23, 2  ;;  %p1133_p6 = scmp.ne.s32.totalorder (!%p237_p3), %s1321_s18, 0 }
   0x9   : > { %p306_p5 = scmp.lt.s32.totalorder (!%p237_p3), %s1127_s24, 7 }
   0xc   : > { %s1591_s22 = smov (!%p295_p4, %s1125_s22), 7  ;;  %s1593_s24 = smov (!%p306_p5, %s1127_s24), 7 }
   0xd   : > { %s1126_s25 = sshll.u32 %s1591_s22, 3  ;;  %s1128_s29 = sshll.u32 %s1593_s24, 3 }
   0xe   : > { %s1392_s28 = scalar_lea.vmem %s1580_s0, %s1126_s25  ;;  %s1397_s7 = scalar_lea.vmem %s1581_s1, %s1128_s29 }
   0xf   : > { %s1402_s10 = scalar_lea.vmem %s1584_s4, %s1126_s25  ;;  %s1407_s13 = scalar_lea.vmem %s1585_s5, %s1128_s29 }
  0x10   : > { %339 = sbr.rel (%p1133_p6) target bundleno = 23 (0x17), region = 40 }
  0x15   : > { %vm340_vm0 = vcmask 261120   ;;  %v1331_v0 = vmov 0.0  }
  0x16   : > { %341 = vst.msk [vmem:[#allocation2] sm:$0xff] %vm340_vm0, %v1331_v0 }
  0x17 PF: > { %v1412_v1 = vld [vmem:[%s1582_s2 + $0x18] sm:$0xff]  ;;  %v1332_v2 = vmov 0.0   ;;  %v1418_v3 = vld [vmem:[%s1582_s2 + $0x10] sm:$0xff]  ;;  %vm1333_vm1 = vmmov 0   ;;  %v1137_v4 = vld [vmem:[%s1583_s3] ss:$0 sm:$0xff] }
  0x18   : > { %1181 = vmatprep.subr.mxu0 %v1332_v2  ;;  %1189 = vmatprep.mubr.msk.f32.mxu0 %vm1333_vm1, %v1332_v2  ;;  %s1334_s23 = smov 32   ;;  %v1431_v5 = vld [vmem:[%s1582_s2 + $0x8] sm:$0xff]  ;;  %v1440_v6 = vld [vmem:[%s1582_s2] sm:$0xff]  ;;  %vm351_vm2 = vcmask 261120   ;;  %s1335_s29 = smov 64   ;;  %v1134_v22 = vld [vmem:[%s1397_s7 + $0x18] sm:$0xff] }
  0x19   : > { %1182 = vmatpush3.msra.mxu0 %v1412_v1  ;;  %437 = vrot.lane.b32.xlu0 %v1137_v4, %s1334_s23  ;;  %s1336_s30 = smov 48   ;;  %s1337_s6 = smov 96   ;;  %v348_v14 = vld [vmem:[%s1392_s28] sm:$0xff]  ;;  %vm501_vm3 = vcmask 130048   ;;  %v1140_v54 = vld [vmem:[%s1392_s28 + $0x8] sm:$0xff]  ;;  %v1141_v59 = vld [vmem:[%s1397_s7 + $0x10] sm:$0xff] }
  0x1a   : > { %1183 = vmatprep.subr.mxu0 %v1332_v2  ;;  %1192 = vmatprep.subr.mxu1 %v1332_v2  ;;  %s1338_s8 = smov 80   ;;  %s1339_s9 = smov 16  }
  0x1b   : > { %1184 = vmatpush3.msra.mxu0 %v1418_v3  ;;  %1193 = vmatpush3.msra.mxu1 %v1412_v1  ;;  %s1340_s11 = smov 112  }
  0x1c   : > { %1185 = vmatprep.subr.mxu0 %v1332_v2  ;;  %1194 = vmatprep.subr.mxu1 %v1332_v2 }
  0x1d   : > { %1186 = vmatpush3.msra.mxu0 %v1431_v5  ;;  %v1444_v7 = vld [vmem:[#allocation2] sm:$0xff]  ;;  %474 = vrot.lane.b32.xlu0 %v1137_v4, %s1335_s29 }
  0x1e   : > { %1187 = vmatprep.subr.mxu0 %v1332_v2  ;;  %1195 = vmatpush3.msra.mxu1 %v1418_v3 }
  0x1f   : > { %1188 = vmatpush3.msra.mxu0 %v1440_v6  ;;  %1196 = vmatprep.subr.mxu1 %v1332_v2 }
  0x20   : > { %1190 = vmatmul.mubr.msk.f32.vlgmr.msra.gmra.mxu0 %vm351_vm2, %v1444_v7  ;;  %1197 = vmatpush3.msra.mxu1 %v1431_v5 }
  0x21   : > { %1198 = vmatprep.subr.mxu1 %v1332_v2  ;;  %1200 = vmatprep.mubr.msk.f32.mxu1 %vm1333_vm1, %v1332_v2 }
  0x22   : > { %1199 = vmatpush3.msra.mxu1 %v1440_v6  ;;  %1203 = vmatprep.subr.mxu0 %v1332_v2 }
  0x23   : > { %1204 = vmatpush3.msra.mxu0 %v1412_v1  ;;  %1211 = vmatprep.mubr.msk.f32.mxu0 %vm1333_vm1, %v1332_v2 }
  0x24   : > { %1205 = vmatprep.subr.mxu0 %v1332_v2  ;;  %1214 = vmatprep.subr.mxu1 %v1332_v2 }
  0x25   : > { %1206 = vmatpush3.msra.mxu0 %v1418_v3 }
  0x26   : > { %1207 = vmatprep.subr.mxu0 %v1332_v2 }
  0x27   : > { %1208 = vmatpush3.msra.mxu0 %v1431_v5 }
  0x28   : > { %1209 = vmatprep.subr.mxu0 %v1332_v2 }
  0x29   : > { %1210 = vmatpush3.msra.mxu0 %v1440_v6 }
  0x8b   : > { %v1468_v8 = vpop.permute.xlu0 %437 }
  0x8f   : > { %v1470_v9 = vpop.permute.xlu0 %474 }
  0xe0   : > { %v421_v10 = vpop.f32.mrf.mxu0 }
  0xe1   : > { %v477_v11 = vadd.f32 %v1470_v9, %v421_v10  ;;  %v440_v12 = vadd.f32 %v1468_v8, %v421_v10  ;;  %v425_v15 = vadd.f32 %v421_v10, %v348_v14 }
  0xe2   : > { %v1191_v13 = vpop.f32.mrf.mxu0 }
  0xe3   : > { %479 = vrot.lane.b32.xlu0 %v477_v11, %s1336_s30  ;;  %442 = vrot.lane.b32.xlu1 %v440_v12, %s1337_s6  ;;  %v1136_v16 = vmul.f32 -1.442695, %v425_v15 }
  0xe5   : > { %1259 = vpow2.f32 %v1136_v16 }
  0xe7   : > { %464 = vrot.lane.b32.xlu1 %v421_v10, %s1338_s8 }
  0xf2   : > { %v1260_v17 = vpop.eup %1259 }
  0xf3   : > { %v429_v18 = vadd.f32 1.0, %v1260_v17 }
  0xf5   : > { %1261 = vrcp.f32 %v429_v18 }
 0x102   : > { %v1262_v19 = vpop.eup %1261 }
 0x103   : > { %v452_v38 = vsub.f32 1.0, %v1262_v19 }
 0x155   : > { %v443_v20 = vpop.permute.xlu1 %442  ;;  %v480_v29 = vpop.permute.xlu0 %479 }
 0x156   : > { %v445_v21 = vmul.f32 %v1262_v19, %v443_v20 }
 0x158   : > { %447 = vrot.lane.b32.xlu1 %v445_v21, %s1334_s23 }
 0x159   : > { %v465_v23 = vpop.permute.xlu1 %464 }
 0x15a   : > { %v467_v24 = vadd.f32 %v1134_v22, %v465_v23 }
 0x15c   : > { %v1138_v25 = vmul.f32 -1.442695, %v467_v24 }
 0x15e   : > { %1263 = vpow2.f32 %v1138_v25 }
 0x16b   : > { %v1264_v26 = vpop.eup %1263 }
 0x16c   : > { %v471_v27 = vadd.f32 1.0, %v1264_v26 }
 0x16e   : > { %1265 = vrcp.f32 %v471_v27 }
 0x17b   : > { %v1266_v28 = vpop.eup %1265 }
 0x17c   : > { %v482_v30 = vmul.f32 %v1266_v28, %v480_v29  ;;  %v489_v44 = vsub.f32 1.0, %v1266_v28  ;;  %v495_v46 = vmul.f32 %v1266_v28, %v1444_v7 }
 0x17e   : > { %484 = vrot.lane.b32.xlu0 %v482_v30, %s1334_s23 }
 0x182   : > { %458 = vrot.lane.b32.xlu0 %v1444_v7, %s1339_s9 }
 0x1ca   : > { %v448_v31 = vpop.permute.xlu1 %447 }
 0x1cb   : > { %v450_v32 = vadd.f32 %v448_v31, %v348_v14 }
 0x1cd   : > { %1267 = vtanh.f32 %v450_v32  ;;  %v1147_v32 = vld [vmem:[%s1392_s28 + $0x10] sm:$0xff] }
 0x1da   : > { %v1268_v33 = vpop.eup %1267 }
 0x1db   : > { %454 = vrot.lane.b32.xlu1 %v1268_v33, %s1340_s11 }
 0x1f0   : > { %v485_v34 = vpop.permute.xlu0 %484 }
 0x1f1   : > { %v487_v35 = vadd.f32 %v1134_v22, %v485_v34 }
 0x1f3   : > { %1269 = vtanh.f32 %v487_v35 }
 0x1f4   : > { %v459_v37 = vpop.permute.xlu0 %458 }
 0x1f5   : > { %v461_v40 = vmul.f32 %v1262_v19, %v459_v37  ;;  %v1148_v37 = vld [vmem:[%s1397_s7 + $0x8] sm:$0xff] }
 0x200   : > { %v1270_v36 = vpop.eup %1269 }
 0x201   : > { %491 = vrot.lane.b32.xlu1 %v1270_v36, %s1340_s11 }
 0x24d   : > { %v455_v39 = vpop.permute.xlu1 %454 }
 0x24e   : > { %v457_v41 = vmul.f32 %v455_v39, %v452_v38 }
 0x250   : > { %v462_v42 = vadd.f32 %v461_v40, %v457_v41 }
 0x252   : > { %498 = vrot.lane.b32.xlu0 %v462_v42, %s1340_s11 }
 0x273   : > { %v492_v43 = vpop.permute.xlu1 %491 }
 0x274   : > { %v494_v45 = vmul.f32 %v492_v43, %v489_v44 }
 0x276   : > { %v1487_v47 = vadd.f32 %v495_v46, %v494_v45 }
 0x2c4   : > { %v499_v48 = vpop.permute.xlu0 %498 }
 0x2c5   : > { %502 = vst.msk [vmem:[%s1402_s10] sm:$0xff] %vm501_vm3, %v499_v48  ;;  %v509_v49 = vsel %vm501_vm3, %v499_v48, %v1487_v47 }
 0x2c6   : > { %1201 = vmatmul.mubr.msk.f32.vlgmr.msra.gmra.mxu1 %vm351_vm2, %v509_v49 }
 0x2c7   : > { %1215 = vmatpush3.msra.mxu1 %v1412_v1  ;;  %1222 = vmatprep.mubr.msk.f32.mxu1 %vm1333_vm1, %v1332_v2 }
 0x2c8   : > { %1216 = vmatprep.subr.mxu1 %v1332_v2 }
 0x2c9   : > { %1217 = vmatpush3.msra.mxu1 %v1418_v3 }
 0x2ca   : > { %1218 = vmatprep.subr.mxu1 %v1332_v2 }
 0x2cb   : > { %1219 = vmatpush3.msra.mxu1 %v1431_v5 }
 0x2cc   : > { %1220 = vmatprep.subr.mxu1 %v1332_v2 }
 0x2cd   : > { %1221 = vmatpush3.msra.mxu1 %v1440_v6 }
 0x386   : > { %v583_v50 = vpop.f32.mrf.mxu1 }
 0x387   : > { %618 = vrot.lane.b32.xlu0 %v583_v50, %s1338_s8  ;;  %v594_v51 = vadd.f32 %v583_v50, %v1468_v8  ;;  %v628_v53 = vadd.f32 %v583_v50, %v1470_v9  ;;  %v587_v55 = vadd.f32 %v1140_v54, %v583_v50 }
 0x388   : > { %v1202_v52 = vpop.f32.mrf.mxu1 }
 0x389   : > { %596 = vrot.lane.b32.xlu1 %v594_v51, %s1337_s6  ;;  %v1143_v56 = vmul.f32 -1.442695, %v587_v55 }
 0x38b   : > { %1271 = vpow2.f32 %v1143_v56 }
 0x38d   : > { %630 = vrot.lane.b32.xlu1 %v628_v53, %s1336_s30 }
 0x398   : > { %v1272_v57 = vpop.eup %1271 }
 0x399   : > { %v591_v58 = vadd.f32 1.0, %v1272_v57 }
 0x39b   : > { %1273 = vrcp.f32 %v591_v58 }
 0x3a8   : > { %v1274_v62 = vpop.eup %1273 }
 0x3a9   : > { %v606_v16 = vsub.f32 1.0, %v1274_v62 }
 0x3f9   : > { %v619_v60 = vpop.permute.xlu0 %618 }
 0x3fa   : > { %v621_v61 = vadd.f32 %v1141_v59, %v619_v60 }
 0x3fb   : > { %v597_v63 = vpop.permute.xlu1 %596 }
 0x3fc   : > { %v1144_v0 = vmul.f32 -1.442695, %v621_v61  ;;  %v599_v1 = vmul.f32 %v1274_v62, %v597_v63 }
 0x3fe   : > { %1275 = vpow2.f32 %v1144_v0  ;;  %601 = vrot.lane.b32.xlu0 %v599_v1, %s1334_s23 }
 0x3ff   : > { %v631_v5 = vpop.permute.xlu1 %630 }
 0x40b   : > { %v1276_v2 = vpop.eup %1275 }
 0x40c   : > { %v625_v3 = vadd.f32 1.0, %v1276_v2 }
 0x40e   : > { %1277 = vrcp.f32 %v625_v3 }
 0x41b   : > { %v1278_v4 = vpop.eup %1277 }
 0x41c   : > { %v633_v6 = vmul.f32 %v1278_v4, %v631_v5  ;;  %v640_v22 = vsub.f32 1.0, %v1278_v4  ;;  %v646_v24 = vmul.f32 %v1278_v4, %v509_v49 }
 0x41e   : > { %635 = vrot.lane.b32.xlu1 %v633_v6, %s1334_s23 }
 0x422   : > { %612 = vrot.lane.b32.xlu1 %v509_v49, %s1339_s9 }
 0x470   : > { %v602_v7 = vpop.permute.xlu0 %601 }
 0x471   : > { %v604_v10 = vadd.f32 %v1140_v54, %v602_v7 }
 0x473   : > { %1279 = vtanh.f32 %v604_v10 }
 0x480   : > { %v1280_v11 = vpop.eup %1279 }
 0x481   : > { %608 = vrot.lane.b32.xlu0 %v1280_v11, %s1340_s11  ;;  %v1154_v11 = vld [vmem:[%s1392_s28 + $0x18] sm:$0xff] }
 0x490   : > { %v636_v12 = vpop.permute.xlu1 %635 }
 0x491   : > { %v638_v13 = vadd.f32 %v1141_v59, %v636_v12 }
 0x493   : > { %1281 = vtanh.f32 %v638_v13 }
 0x494   : > { %v613_v15 = vpop.permute.xlu1 %612 }
 0x495   : > { %v615_v18 = vmul.f32 %v1274_v62, %v613_v15 }
 0x4a0   : > { %v1282_v14 = vpop.eup %1281 }
 0x4a1   : > { %642 = vrot.lane.b32.xlu0 %v1282_v14, %s1340_s11 }
 0x4f3   : > { %v609_v17 = vpop.permute.xlu0 %608 }
 0x4f4   : > { %v611_v19 = vmul.f32 %v609_v17, %v606_v16  ;;  %v814_v16 = vld [vmem:[%s1397_s7] sm:$0xff] }
 0x4f6   : > { %v616_v20 = vadd.f32 %v615_v18, %v611_v19 }
 0x4f8   : > { %649 = vrot.lane.b32.xlu1 %v616_v20, %s1340_s11 }
 0x513   : > { %v643_v21 = vpop.permute.xlu0 %642 }
 0x514   : > { %v645_v23 = vmul.f32 %v643_v21, %v640_v22 }
 0x516   : > { %v1516_v25 = vadd.f32 %v646_v24, %v645_v23 }
 0x56a   : > { %v650_v26 = vpop.permute.xlu1 %649 }
 0x56b   : > { %1145 = vst.msk [vmem:[%s1402_s10 + $0x8] sm:$0xff] %vm501_vm3, %v650_v26  ;;  %v660_v27 = vsel %vm501_vm3, %v650_v26, %v1516_v25 }
 0x56c   : > { %1212 = vmatmul.mubr.msk.f32.vlgmr.msra.gmra.mxu0 %vm351_vm2, %v660_v27 }
 0x62c   : > { %v734_v28 = vpop.f32.mrf.mxu0 }
 0x62d   : > { %769 = vrot.lane.b32.xlu1 %v734_v28, %s1338_s8  ;;  %v745_v29 = vadd.f32 %v734_v28, %v1468_v8  ;;  %v779_v31 = vadd.f32 %v734_v28, %v1470_v9  ;;  %v738_v33 = vadd.f32 %v1147_v32, %v734_v28 }
 0x62e   : > { %v1213_v30 = vpop.f32.mrf.mxu0 }
 0x62f   : > { %747 = vrot.lane.b32.xlu0 %v745_v29, %s1337_s6  ;;  %v1150_v34 = vmul.f32 -1.442695, %v738_v33 }
 0x631   : > { %1283 = vpow2.f32 %v1150_v34 }
 0x633   : > { %781 = vrot.lane.b32.xlu0 %v779_v31, %s1336_s30 }
 0x63e   : > { %v1284_v35 = vpop.eup %1283 }
 0x63f   : > { %v742_v36 = vadd.f32 1.0, %v1284_v35 }
 0x641   : > { %1285 = vrcp.f32 %v742_v36 }
 0x64e   : > { %v1286_v40 = vpop.eup %1285 }
 0x64f   : > { %v757_v57 = vsub.f32 1.0, %v1286_v40 }
 0x69f   : > { %v770_v38 = vpop.permute.xlu1 %769 }
 0x6a0   : > { %v772_v39 = vadd.f32 %v1148_v37, %v770_v38 }
 0x6a1   : > { %v748_v41 = vpop.permute.xlu0 %747 }
 0x6a2   : > { %v1151_v42 = vmul.f32 -1.442695, %v772_v39  ;;  %v750_v43 = vmul.f32 %v1286_v40, %v748_v41 }
 0x6a4   : > { %1287 = vpow2.f32 %v1151_v42  ;;  %752 = vrot.lane.b32.xlu1 %v750_v43, %s1334_s23 }
 0x6a5   : > { %v782_v48 = vpop.permute.xlu0 %781 }
 0x6b1   : > { %v1288_v44 = vpop.eup %1287 }
 0x6b2   : > { %v776_v45 = vadd.f32 1.0, %v1288_v44 }
 0x6b4   : > { %1289 = vrcp.f32 %v776_v45 }
 0x6c1   : > { %v1290_v46 = vpop.eup %1289 }
 0x6c2   : > { %v784_v49 = vmul.f32 %v1290_v46, %v782_v48  ;;  %v791_v63 = vsub.f32 1.0, %v1290_v46  ;;  %v797_v1 = vmul.f32 %v1290_v46, %v660_v27 }
 0x6c4   : > { %786 = vrot.lane.b32.xlu0 %v784_v49, %s1334_s23 }
 0x6c8   : > { %763 = vrot.lane.b32.xlu0 %v660_v27, %s1339_s9 }
 0x716   : > { %v753_v50 = vpop.permute.xlu1 %752 }
 0x717   : > { %v755_v51 = vadd.f32 %v1147_v32, %v753_v50 }
 0x719   : > { %1291 = vtanh.f32 %v755_v51 }
 0x726   : > { %v1292_v52 = vpop.eup %1291 }
 0x727   : > { %759 = vrot.lane.b32.xlu1 %v1292_v52, %s1340_s11 }
 0x736   : > { %v787_v53 = vpop.permute.xlu0 %786 }
 0x737   : > { %v789_v54 = vadd.f32 %v1148_v37, %v787_v53 }
 0x739   : > { %1293 = vtanh.f32 %v789_v54 }
 0x73a   : > { %v764_v56 = vpop.permute.xlu0 %763 }
 0x73b   : > { %v766_v59 = vmul.f32 %v1286_v40, %v764_v56 }
 0x746   : > { %v1294_v55 = vpop.eup %1293 }
 0x747   : > { %793 = vrot.lane.b32.xlu1 %v1294_v55, %s1340_s11 }
 0x799   : > { %v760_v58 = vpop.permute.xlu1 %759 }
 0x79a   : > { %v762_v60 = vmul.f32 %v760_v58, %v757_v57 }
 0x79c   : > { %v767_v61 = vadd.f32 %v766_v59, %v762_v60 }
 0x79e   : > { %800 = vrot.lane.b32.xlu0 %v767_v61, %s1340_s11 }
 0x7b9   : > { %v794_v62 = vpop.permute.xlu1 %793 }
 0x7ba   : > { %v796_v0 = vmul.f32 %v794_v62, %v791_v63 }
 0x7bc   : > { %v798_v2 = vadd.f32 %v797_v1, %v796_v0 }
 0x810   : > { %v801_v3 = vpop.permute.xlu0 %800 }
 0x811   : > { %1152 = vst.msk [vmem:[%s1402_s10 + $0x10] sm:$0xff] %vm501_vm3, %v801_v3  ;;  %v811_v4 = vsel %vm501_vm3, %v801_v3, %v798_v2 }
 0x812   : > { %1223 = vmatmul.mubr.msk.f32.vlgmr.msra.gmra.mxu1 %vm351_vm2, %v811_v4 }
 0x8d2   : > { %v884_v5 = vpop.f32.mrf.mxu1 }
 0x8d3   : > { %919 = vrot.lane.b32.xlu1 %v884_v5, %s1338_s8  ;;  %v895_v6 = vadd.f32 %v884_v5, %v1468_v8  ;;  %v929_v10 = vadd.f32 %v884_v5, %v1470_v9  ;;  %v888_v12 = vadd.f32 %v1154_v11, %v884_v5 }
 0x8d4   : > { %v1224_v7 = vpop.f32.mrf.mxu1 }
 0x8d5   : > { %897 = vrot.lane.b32.xlu0 %v895_v6, %s1337_s6  ;;  %v1156_v13 = vmul.f32 -1.442695, %v888_v12 }
 0x8d7   : > { %931 = vrot.lane.b32.xlu1 %v929_v10, %s1336_s30  ;;  %1295 = vpow2.f32 %v1156_v13 }
 0x8e4   : > { %v1296_v14 = vpop.eup %1295 }
 0x8e5   : > { %v892_v15 = vadd.f32 1.0, %v1296_v14 }
 0x8e7   : > { %1297 = vrcp.f32 %v892_v15 }
 0x8f4   : > { %v1298_v19 = vpop.eup %1297 }
 0x945   : > { %v920_v17 = vpop.permute.xlu1 %919 }
 0x946   : > { %v922_v18 = vadd.f32 %v920_v17, %v814_v16 }
 0x947   : > { %v898_v20 = vpop.permute.xlu0 %897 }
 0x948   : > { %v1157_v8 = vmul.f32 -1.442695, %v922_v18  ;;  %v900_v21 = vmul.f32 %v1298_v19, %v898_v20 }
 0x949   : > { %v932_v24 = vpop.permute.xlu1 %931 }
 0x94a   : > { %1299 = vpow2.f32 %v1157_v8  ;;  %902 = vrot.lane.b32.xlu0 %v900_v21, %s1334_s23 }
 0x957   : > { %v1300_v9 = vpop.eup %1299 }
 0x958   : > { %v926_v22 = vadd.f32 1.0, %v1300_v9 }
 0x95a   : > { %1301 = vrcp.f32 %v926_v22 }
 0x967   : > { %v1302_v23 = vpop.eup %1301 }
 0x968   : > { %v934_v26 = vmul.f32 %v1302_v23, %v932_v24  ;;  %v941_v39 = vsub.f32 1.0, %v1302_v23  ;;  %v947_v41 = vmul.f32 %v1302_v23, %v811_v4 }
 0x96a   : > { %936 = vrot.lane.b32.xlu1 %v934_v26, %s1334_s23 }
 0x96e   : > { %913 = vrot.lane.b32.xlu1 %v811_v4, %s1339_s9 }
 0x972   : > { %504 = vrot.lane.b32.xlu1 %v1487_v47, %s1340_s11  ;;  %v907_v47 = vsub.f32 1.0, %v1298_v19 }
 0x976   : > { %806 = vrot.lane.b32.xlu1 %v798_v2, %s1340_s11 }
 0x9bc   : > { %v903_v27 = vpop.permute.xlu0 %902 }
 0x9bd   : > { %v905_v28 = vadd.f32 %v1154_v11, %v903_v27 }
 0x9bf   : > { %1303 = vtanh.f32 %v905_v28 }
 0x9cc   : > { %v1304_v29 = vpop.eup %1303 }
 0x9cd   : > { %909 = vrot.lane.b32.xlu0 %v1304_v29, %s1340_s11 }
 0x9dc   : > { %v937_v30 = vpop.permute.xlu1 %936 }
 0x9dd   : > { %v939_v31 = vadd.f32 %v937_v30, %v814_v16 }
 0x9df   : > { %1305 = vtanh.f32 %v939_v31 }
 0x9e0   : > { %v914_v32 = vpop.permute.xlu1 %913 }
 0x9e1   : > { %v916_v36 = vmul.f32 %v1298_v19, %v914_v32 }
 0x9e4   : > { %v505_v33 = vpop.permute.xlu1 %504 }
 0x9e5   : > { %1139 = vst.msk [vmem:[%s1407_s13 + $0x18] sm:$0xff] %vm501_vm3, %v505_v33 }
 0x9e8   : > { %v807_v45 = vpop.permute.xlu1 %806 }
 0x9e9   : > { %1153 = vst.msk [vmem:[%s1407_s13 + $0x8] sm:$0xff] %vm501_vm3, %v807_v45 }
 0x9ec   : > { %v1306_v34 = vpop.eup %1305 }
 0x9ed   : > { %943 = vrot.lane.b32.xlu0 %v1306_v34, %s1340_s11 }
 0x9f1   : > { %655 = vrot.lane.b32.xlu0 %v1516_v25, %s1340_s11 }
 0xa3f   : > { %v910_v35 = vpop.permute.xlu0 %909 }
 0xa40   : > { %v912_v37 = vmul.f32 %v910_v35, %v907_v47 }
 0xa42   : > { %v917_v38 = vadd.f32 %v916_v36, %v912_v37 }
 0xa44   : > { %950 = vrot.lane.b32.xlu0 %v917_v38, %s1340_s11 }
 0xa5f   : > { %v944_v40 = vpop.permute.xlu0 %943 }
 0xa60   : > { %v946_v42 = vmul.f32 %v944_v40, %v941_v39 }
 0xa62   : > { %v948_v43 = vadd.f32 %v947_v41, %v946_v42 }
 0xa63   : > { %v656_v44 = vpop.permute.xlu0 %655 }
 0xa64   : > { %1146 = vst.msk [vmem:[%s1407_s13 + $0x10] sm:$0xff] %vm501_vm3, %v656_v44  ;;  %956 = vrot.lane.b32.xlu1 %v948_v43, %s1340_s11 }
 0xab6   : > { %v951_v25 = vpop.permute.xlu0 %950 }
 0xab7   : > { %1158 = vst.msk [vmem:[%s1402_s10 + $0x18] sm:$0xff] %vm501_vm3, %v951_v25  ;;  %v960_v46 = vsel %vm501_vm3, %v951_v25, %v948_v43 }
 0xab8   : > { %961 = vst.msk [vmem:[#allocation2] sm:$0xff] %vm351_vm2, %v960_v46 }
 0xad6   : > { %v957_v48 = vpop.permute.xlu1 %956 }
 0xad7   : > { %959 = vst.msk [vmem:[%s1407_s13] sm:$0xff] %vm501_vm3, %v957_v48 }
 0xad8 PF: > { %s16_s20 = sadd.s32 1, %s1329_s20   ;;  %s1586_s18 = smov %s1325_s19 }
 0xad9   : > { %p13_p7 = scmp.ge.s32.totalorder %s16_s20, 4   ;;  %s1587_s19 = smov %s1589_s21 }
 0xadb   :  { %15 = sbr.rel (!%p13_p7) target bundleno = 2 (0x2), region = 97 }

// kernel: lan_net_forward.11
= control target key start
LH: loop header
LB: loop body
LE: loop exit
PB: predicated region body
PF: predicated region fallthrough
CT: control target
= control target key end

     0   :  { %s1039_s30 = smov 0   ;;  %s1041_s10 = smov 0   ;;  %s1118_s0 = inlined_call_operand.vmem [shape: f32[1,64,16], index: 0, kind: input, shape index: {}]   ;;  %s1119_s1 = inlined_call_operand.vmem [shape: f32[1,64,16], index: 1, kind: input, shape index: {}]   ;;  %s1120_s2 = inlined_call_operand.vmem [shape: bf16[16,48], index: 2, kind: input, shape index: {}]   ;;  %s1121_s3 = inlined_call_operand.vmem [shape: bf16[16,48], index: 3, kind: input, shape index: {}]   ;;  %s1122_s4 = inlined_call_operand.vmem [shape: bf16[16,48], index: 4, kind: input, shape index: {}]   ;;  %s1123_s5 = inlined_call_operand.vmem [shape: bf16[16,48], index: 5, kind: input, shape index: {}]   ;;  %s1124_s6 = inlined_call_operand.vmem [shape: f32[1,48], index: 6, kind: input, shape index: {}]   ;;  %s1125_s7 = inlined_call_operand.vmem [shape: f32[1,48], index: 7, kind: input, shape index: {}]   ;;  %s1126_s8 = inlined_call_operand.vmem [shape: f32[1,64,48], index: 8, kind: output, shape index: {0}]   ;;  %s1127_s9 = inlined_call_operand.vmem [shape: f32[1,64,48], index: 9, kind: output, shape index: {1}]  }
   0x1   :  { %s1043_s11 = smov 0  }
   0x2 LB: > { %s29_s12 = sadd.s32 1, %s983_s10  ;;  %p876_p0 = scmp.ge.s32.totalorder %s987_s11, 1  ;;  %s987_s11 = sphi %s1043_s11, %s20_s11   ;;  %s983_s10 = sphi %s1041_s10, %s1129_s10   ;;  %s979_s30 = sphi %s1039_s30, %s1128_s30  }
   0x3   : > { %p30_p1 = scmp.ge.s32.totalorder %s29_s12, 2  ;;  %p330_p2 = scmp.lt.s32.totalorder %s987_s11, 3 }
   0x5   : > { %s1131_s12 = smov (%p30_p1, %s29_s12), 0  ;;  %p331_p3 = pnand %p876_p0, %p330_p2 }
   0x6   : > { %s877_s15 = sshll.u32 (!%p331_p3), %s979_s30, 2 }
   0x7   : > { %334 = sbr.rel (%p331_p3) target bundleno = 233 (0xe9), region = 52  ;;  %p395_p4 = scmp.lt.s32.totalorder (!%p331_p3), %s877_s15, 7 }
   0xc   : > { %v961_v0 = vld [vmem:[%s1121_s3] sm:$0xff]   ;;  %s1133_s15 = smov (!%p395_p4, %s877_s15), 7  ;;  %vm455_vm0 = vcmask 130048   ;;  %vm583_vm1 = vcmask 392192  }
   0xd   : > { %v962_v1 = vld [vmem:[%s1120_s2] sm:$0xff]   ;;  %913 = vmatprep.subr.bf16.mxu0 %v961_v0  ;;  %s1069_s22 = sshll.u32 %s1133_s15, 3 }
   0xe   : > { %v963_v2 = vld [vmem:[%s1123_s5] sm:$0xff]   ;;  %919 = vmatprep.subr.bf16.mxu1 %v962_v1  ;;  %914 = vmatpush3.bf16.msra.mxu0 %v961_v0  ;;  %s410_s25 = scalar_lea.vmem %s1119_s1, %s1069_s22  ;;  %s400_s28 = scalar_lea.vmem %s1118_s0, %s1069_s22 }
   0xf   : > { %v964_v3 = vld [vmem:[%s1122_s4] sm:$0xff]   ;;  %920 = vmatpush3.bf16.msra.mxu1 %v962_v1  ;;  %925 = vmatprep.subr.bf16.mxu0 %v963_v2  ;;  %v440_v5 = vld [vmem:[%s410_s25 + $0x8] sm:$0xff]  ;;  %v441_v9 = vld [vmem:[%s410_s25 + $0x10] sm:$0xff]  ;;  %s420_s15 = scalar_lea.vmem %s1126_s8, %s1069_s22  ;;  %s430_s20 = scalar_lea.vmem %s1127_s9, %s1069_s22 }
  0x10   : > { %931 = vmatprep.subr.bf16.mxu1 %v964_v3  ;;  %v439_v4 = vld [vmem:[%s410_s25] sm:$0xff]  ;;  %v434_v8 = vld [vmem:[%s400_s28 + $0x8] sm:$0xff]  ;;  %v442_v10 = vld [vmem:[%s410_s25 + $0x18] sm:$0xff] }
  0x11   : > { %v433_v6 = vld [vmem:[%s400_s28] sm:$0xff]  ;;  %v443_v7 = vpack.c.bf16 %v440_v5, %v439_v4  ;;  %v444_v12 = vpack.c.bf16 %v442_v10, %v441_v9  ;;  %v435_v13 = vld [vmem:[%s400_s28 + $0x10] sm:$0xff]  ;;  %v436_v14 = vld [vmem:[%s400_s28 + $0x18] sm:$0xff] }
  0x12   : > { %v437_v11 = vpack.c.bf16 %v434_v8, %v433_v6  ;;  %v438_v15 = vpack.c.bf16 %v436_v14, %v435_v13  ;;  %v891_v22 = vld [vmem:[%s1124_s6] ss:$0 sm:$0xff] }
  0x13   : > { %915 = vmatprep.mubr.msk.bf16.mxu0 %vm455_vm0, %v443_v7  ;;  %v898_v39 = vld [vmem:[%s1125_s7] ss:$0 sm:$0xff] }
  0x14   : > { %921 = vmatprep.mubr.msk.bf16.mxu1 %vm455_vm0, %v437_v11  ;;  %916 = vmatmul.mubr.msk.bf16.vlgmr.msra.gmra.mxu0 %vm455_vm0, %v444_v12 }
  0x15   : > { %922 = vmatmul.mubr.msk.bf16.vlgmr.msra.gmra.mxu1 %vm455_vm0, %v438_v15  ;;  %926 = vmatpush3.bf16.msra.mxu0 %v963_v2 }
  0x16   : > { %932 = vmatpush3.bf16.msra.mxu1 %v964_v3  ;;  %927 = vmatprep.mubr.msk.bf16.mxu0 %vm455_vm0, %v443_v7 }
  0x17   : > { %933 = vmatprep.mubr.msk.bf16.mxu1 %vm455_vm0, %v437_v11 }
  0x1c   : > { %928 = vmatmul.mubr.msk.bf16.vlgmr.msra.gmra.mxu0 %vm455_vm0, %v444_v12 }
  0x1d   : > { %934 = vmatmul.mubr.msk.bf16.vlgmr.msra.gmra.mxu1 %vm455_vm0, %v438_v15 }
  0xd4   : > { %v917_v16 = vpop.f32.mrf.mxu0 }
  0xd5   : > { %v923_v17 = vpop.f32.mrf.mxu1 }
  0xd6   : > { %v496_v18 = vpop.f32.mrf.mxu0  ;;  %v566_v26 = vadd.f32 %v923_v17, %v917_v16 }
  0xd7   : > { %v557_v19 = vpop.f32.mrf.mxu1 }
  0xd8   : > { %v558_v20 = vadd.f32 %v557_v19, %v496_v18  ;;  %v918_v21 = vpop.f32.mrf.mxu0  ;;  %v581_v34 = vadd.f32 %v891_v22, %v566_v26 }
  0xd9   : > { %v924_v23 = vpop.f32.mrf.mxu1 }
  0xda   : > { %v579_v24 = vadd.f32 %v891_v22, %v558_v20  ;;  %v499_v25 = vpop.f32.mrf.mxu0  ;;  %v569_v28 = vadd.f32 %v924_v23, %v918_v21  ;;  %586 = vst.msk [vmem:[%s420_s15 + $0x10] sm:$0xff] %vm583_vm1, %v581_v34 }
  0xdb   : > { %v560_v27 = vpop.f32.mrf.mxu1 }
  0xdc   : > { %584 = vst.msk [vmem:[%s420_s15] sm:$0xff] %vm583_vm1, %v579_v24  ;;  %v561_v29 = vadd.f32 %v560_v27, %v499_v25  ;;  %v929_v30 = vpop.f32.mrf.mxu0  ;;  %v582_v36 = vadd.f32 %v891_v22, %v569_v28 }
  0xdd   : > { %v935_v31 = vpop.f32.mrf.mxu1 }
  0xde   : > { %v580_v32 = vadd.f32 %v891_v22, %v561_v29  ;;  %v632_v33 = vpop.f32.mrf.mxu0  ;;  %587 = vst.msk [vmem:[%s420_s15 + $0x18] sm:$0xff] %vm583_vm1, %v582_v36  ;;  %v696_v43 = vadd.f32 %v935_v31, %v929_v30 }
  0xdf   : > { %v687_v35 = vpop.f32.mrf.mxu1 }
  0xe0   : > { %585 = vst.msk [vmem:[%s420_s15 + $0x8] sm:$0xff] %vm583_vm1, %v580_v32  ;;  %v688_v37 = vadd.f32 %v687_v35, %v632_v33  ;;  %v930_v38 = vpop.f32.mrf.mxu0  ;;  %v711_v48 = vadd.f32 %v898_v39, %v696_v43 }
  0xe1   : > { %v936_v40 = vpop.f32.mrf.mxu1 }
  0xe2   : > { %v709_v41 = vadd.f32 %v898_v39, %v688_v37  ;;  %v635_v42 = vpop.f32.mrf.mxu0  ;;  %v699_v45 = vadd.f32 %v936_v40, %v930_v38  ;;  %715 = vst.msk [vmem:[%s430_s20 + $0x10] sm:$0xff] %vm583_vm1, %v711_v48 }
  0xe3   : > { %v690_v44 = vpop.f32.mrf.mxu1 }
  0xe4   : > { %713 = vst.msk [vmem:[%s430_s20] sm:$0xff] %vm583_vm1, %v709_v41  ;;  %v691_v46 = vadd.f32 %v690_v44, %v635_v42  ;;  %v712_v49 = vadd.f32 %v898_v39, %v699_v45 }
  0xe6   : > { %v710_v47 = vadd.f32 %v898_v39, %v691_v46  ;;  %716 = vst.msk [vmem:[%s430_s20 + $0x18] sm:$0xff] %vm583_vm1, %v712_v49 }
  0xe8   : > { %714 = vst.msk [vmem:[%s430_s20 + $0x8] sm:$0xff] %vm583_vm1, %v710_v47 }
  0xe9 PF: > { %s20_s11 = sadd.s32 1, %s987_s11   ;;  %s1128_s30 = smov %s983_s10 }
  0xea   : > { %p17_p5 = scmp.ge.s32.totalorder %s20_s11, 4   ;;  %s1129_s10 = smov %s1131_s12 }
  0xec   :  { %19 = sbr.rel (!%p17_p5) target bundleno = 2 (0x2), region = 97 }

// kernel: lan_net_forward.12
= control target key start
LH: loop header
LB: loop body
LE: loop exit
PB: predicated region body
PF: predicated region fallthrough
CT: control target
= control target key end

     0   :  { %s1630_s24 = smov 0   ;;  %s1632_s25 = smov 0   ;;  %s1895_s0 = inlined_call_operand.vmem [shape: f32[1,64,48], index: 0, kind: input, shape index: {}]   ;;  %s1896_s1 = inlined_call_operand.vmem [shape: f32[1,64,48], index: 1, kind: input, shape index: {}]   ;;  %s1897_s2 = inlined_call_operand.vmem [shape: f32[1,64,16], index: 2, kind: input, shape index: {}]   ;;  %s1898_s3 = inlined_call_operand.vmem [shape: f32[1,64,16], index: 3, kind: input, shape index: {}]   ;;  %s1899_s4 = inlined_call_operand.vmem [shape: f32[32,96], index: 4, kind: input, shape index: {}]   ;;  %s1900_s5 = inlined_call_operand.vmem [shape: f32[1,32], index: 5, kind: input, shape index: {}]   ;;  %s1901_s6 = inlined_call_operand.vmem [shape: f32[1,64,16], index: 6, kind: output, shape index: {0}]   ;;  %s1902_s7 = inlined_call_operand.vmem [shape: f32[1,64,16], index: 7, kind: output, shape index: {1}]  }
   0x1   :  { %s1634_s26 = smov 0  }
   0x2 LB: > { %s27_s27 = sadd.s32 1, %s1574_s25  ;;  %p1363_p0 = scmp.ge.s32.totalorder %s1578_s26, 1  ;;  %s1578_s26 = sphi %s1634_s26, %s18_s26   ;;  %s1574_s25 = sphi %s1632_s25, %s1904_s25   ;;  %s1570_s24 = sphi %s1630_s24, %s1903_s24  }
   0x3   : > { %p28_p1 = scmp.ge.s32.totalorder %s27_s27, 2  ;;  %p324_p2 = scmp.lt.s32.totalorder %s1578_s26, 3 }
   0x5   : > { %s1906_s27 = smov (%p28_p1, %s27_s27), 0  ;;  %p325_p3 = pnand %p1363_p0, %p324_p2 }
   0x6   : > { %s1364_s28 = sshll.u32 (!%p325_p3), %s1570_s24, 2  ;;  %s413_s29 = ssub.s32 (!%p325_p3), 1, %s1570_s24 }
   0x7   : > { %328 = sbr.rel (%p325_p3) target bundleno = 2779 (0xadb), region = 44  ;;  %p406_p4 = scmp.lt.s32.totalorder (!%p325_p3), %s1364_s28, 7 }
   0x8   : > { %s1366_s30 = sshll.u32 (!%p325_p3), %s413_s29, 2  ;;  %p1376_p6 = scmp.ne.s32.totalorder (!%p325_p3), %s1570_s24, 0 }
   0x9   : > { %p417_p5 = scmp.lt.s32.totalorder (!%p325_p3), %s1366_s30, 7 }
   0xc   : > { %s1908_s28 = smov (!%p406_p4, %s1364_s28), 7  ;;  %s1910_s30 = smov (!%p417_p5, %s1366_s30), 7 }
   0xd   : > { %s1365_s8 = sshll.u32 %s1908_s28, 3  ;;  %s1367_s12 = sshll.u32 %s1910_s30, 3 }
   0xe   : > { %s1651_s11 = scalar_lea.vmem %s1895_s0, %s1365_s8  ;;  %s1656_s15 = scalar_lea.vmem %s1896_s1, %s1367_s12 }
   0xf   : > { %s1661_s18 = scalar_lea.vmem %s1897_s2, %s1365_s8  ;;  %s1666_s21 = scalar_lea.vmem %s1898_s3, %s1367_s12 }
  0x10   : > { %s1671_s28 = scalar_lea.vmem %s1901_s6, %s1365_s8  ;;  %s1676_s9 = scalar_lea.vmem %s1902_s7, %s1367_s12 }
  0x11   : > { %472 = sbr.rel (%p1376_p6) target bundleno = 24 (0x18), region = 48 }
  0x16   : > { %vm473_vm0 = vcmask 261120   ;;  %v1580_v0 = vmov 0.0  }
  0x17   : > { %474 = vst.msk [vmem:[#allocation2] sm:$0xff] %vm473_vm0, %v1580_v0 }
  0x18 PF: > { %v1681_v1 = vld [vmem:[%s1899_s4 + $0x18] sm:$0xff]  ;;  %v1581_v2 = vmov 0.0   ;;  %v1687_v3 = vld [vmem:[%s1899_s4 + $0x10] sm:$0xff]  ;;  %vm1582_vm1 = vmmov 0   ;;  %v1380_v4 = vld [vmem:[%s1900_s5] ss:$0 sm:$0xff] }
  0x19   : > { %1430 = vmatprep.subr.mxu0 %v1581_v2  ;;  %1438 = vmatprep.mubr.msk.f32.mxu0 %vm1582_vm1, %v1581_v2  ;;  %s1583_s16 = smov 32   ;;  %v1700_v5 = vld [vmem:[%s1899_s4 + $0x8] sm:$0xff]  ;;  %v1709_v6 = vld [vmem:[%s1899_s4] sm:$0xff]  ;;  %vm484_vm2 = vcmask 261120   ;;  %s1584_s23 = smov 64   ;;  %v1377_v22 = vld [vmem:[%s1656_s15 + $0x18] sm:$0xff] }
  0x1a   : > { %1431 = vmatpush3.msra.mxu0 %v1681_v1  ;;  %570 = vrot.lane.b32.xlu0 %v1380_v4, %s1583_s16  ;;  %s1585_s29 = smov 48   ;;  %s1586_s30 = smov 96   ;;  %v481_v14 = vld [vmem:[%s1651_s11] sm:$0xff]  ;;  %vm647_vm3 = vcmask 130048   ;;  %v1384_v54 = vld [vmem:[%s1651_s11 + $0x8] sm:$0xff]  ;;  %v1385_v59 = vld [vmem:[%s1656_s15 + $0x10] sm:$0xff] }
  0x1b   : > { %1432 = vmatprep.subr.mxu0 %v1581_v2  ;;  %1441 = vmatprep.subr.mxu1 %v1581_v2  ;;  %s1587_s10 = smov 80   ;;  %s1588_s13 = smov 16  }
  0x1c   : > { %1433 = vmatpush3.msra.mxu0 %v1687_v3  ;;  %1442 = vmatpush3.msra.mxu1 %v1681_v1  ;;  %s1589_s8 = smov 112  }
  0x1d   : > { %1434 = vmatprep.subr.mxu0 %v1581_v2  ;;  %1443 = vmatprep.subr.mxu1 %v1581_v2 }
  0x1e   : > { %1435 = vmatpush3.msra.mxu0 %v1700_v5  ;;  %v1713_v7 = vld [vmem:[#allocation2] sm:$0xff]  ;;  %607 = vrot.lane.b32.xlu0 %v1380_v4, %s1584_s23 }
  0x1f   : > { %1436 = vmatprep.subr.mxu0 %v1581_v2  ;;  %1444 = vmatpush3.msra.mxu1 %v1687_v3 }
  0x20   : > { %1437 = vmatpush3.msra.mxu0 %v1709_v6  ;;  %1445 = vmatprep.subr.mxu1 %v1581_v2 }
  0x21   : > { %1439 = vmatmul.mubr.msk.f32.vlgmr.msra.gmra.mxu0 %vm484_vm2, %v1713_v7  ;;  %1446 = vmatpush3.msra.mxu1 %v1700_v5 }
  0x22   : > { %1447 = vmatprep.subr.mxu1 %v1581_v2  ;;  %1449 = vmatprep.mubr.msk.f32.mxu1 %vm1582_vm1, %v1581_v2 }
  0x23   : > { %1448 = vmatpush3.msra.mxu1 %v1709_v6  ;;  %1452 = vmatprep.subr.mxu0 %v1581_v2 }
  0x24   : > { %1453 = vmatpush3.msra.mxu0 %v1681_v1  ;;  %1460 = vmatprep.mubr.msk.f32.mxu0 %vm1582_vm1, %v1581_v2 }
  0x25   : > { %1454 = vmatprep.subr.mxu0 %v1581_v2  ;;  %1463 = vmatprep.subr.mxu1 %v1581_v2 }
  0x26   : > { %1455 = vmatpush3.msra.mxu0 %v1687_v3 }
  0x27   : > { %1456 = vmatprep.subr.mxu0 %v1581_v2 }
  0x28   : > { %1457 = vmatpush3.msra.mxu0 %v1700_v5 }
  0x29   : > { %1458 = vmatprep.subr.mxu0 %v1581_v2 }
  0x2a   : > { %1459 = vmatpush3.msra.mxu0 %v1709_v6 }
  0x8c   : > { %v1737_v8 = vpop.permute.xlu0 %570 }
  0x90   : > { %v1739_v9 = vpop.permute.xlu0 %607 }
  0xe1   : > { %v554_v10 = vpop.f32.mrf.mxu0 }
  0xe2   : > { %v610_v11 = vadd.f32 %v1739_v9, %v554_v10  ;;  %v573_v12 = vadd.f32 %v1737_v8, %v554_v10  ;;  %v558_v15 = vadd.f32 %v554_v10, %v481_v14 }
  0xe3   : > { %v1440_v13 = vpop.f32.mrf.mxu0 }
  0xe4   : > { %612 = vrot.lane.b32.xlu0 %v610_v11, %s1585_s29  ;;  %575 = vrot.lane.b32.xlu1 %v573_v12, %s1586_s30  ;;  %v1379_v16 = vmul.f32 -1.442695, %v558_v15 }
  0xe6   : > { %1508 = vpow2.f32 %v1379_v16 }
  0xe8   : > { %597 = vrot.lane.b32.xlu1 %v554_v10, %s1587_s10 }
  0xf3   : > { %v1509_v17 = vpop.eup %1508 }
  0xf4   : > { %v562_v18 = vadd.f32 1.0, %v1509_v17 }
  0xf6   : > { %1510 = vrcp.f32 %v562_v18 }
 0x103   : > { %v1511_v19 = vpop.eup %1510 }
 0x104   : > { %v585_v38 = vsub.f32 1.0, %v1511_v19 }
 0x156   : > { %v576_v20 = vpop.permute.xlu1 %575  ;;  %v613_v29 = vpop.permute.xlu0 %612 }
 0x157   : > { %v578_v21 = vmul.f32 %v1511_v19, %v576_v20 }
 0x159   : > { %580 = vrot.lane.b32.xlu1 %v578_v21, %s1583_s16 }
 0x15a   : > { %v598_v23 = vpop.permute.xlu1 %597 }
 0x15b   : > { %v600_v24 = vadd.f32 %v1377_v22, %v598_v23 }
 0x15d   : > { %v1381_v25 = vmul.f32 -1.442695, %v600_v24 }
 0x15f   : > { %1512 = vpow2.f32 %v1381_v25 }
 0x16c   : > { %v1513_v26 = vpop.eup %1512 }
 0x16d   : > { %v604_v27 = vadd.f32 1.0, %v1513_v26 }
 0x16f   : > { %1514 = vrcp.f32 %v604_v27 }
 0x17c   : > { %v1515_v28 = vpop.eup %1514 }
 0x17d   : > { %v615_v30 = vmul.f32 %v1515_v28, %v613_v29  ;;  %v622_v44 = vsub.f32 1.0, %v1515_v28  ;;  %v628_v46 = vmul.f32 %v1515_v28, %v1713_v7 }
 0x17f   : > { %617 = vrot.lane.b32.xlu0 %v615_v30, %s1583_s16 }
 0x183   : > { %591 = vrot.lane.b32.xlu0 %v1713_v7, %s1588_s13 }
 0x1cb   : > { %v581_v31 = vpop.permute.xlu1 %580 }
 0x1cc   : > { %v583_v32 = vadd.f32 %v581_v31, %v481_v14 }
 0x1ce   : > { %1516 = vtanh.f32 %v583_v32  ;;  %v1393_v32 = vld [vmem:[%s1651_s11 + $0x10] sm:$0xff] }
 0x1db   : > { %v1517_v33 = vpop.eup %1516 }
 0x1dc   : > { %587 = vrot.lane.b32.xlu1 %v1517_v33, %s1589_s8 }
 0x1f1   : > { %v618_v34 = vpop.permute.xlu0 %617 }
 0x1f2   : > { %v620_v35 = vadd.f32 %v1377_v22, %v618_v34 }
 0x1f4   : > { %1518 = vtanh.f32 %v620_v35 }
 0x1f5   : > { %v592_v37 = vpop.permute.xlu0 %591 }
 0x1f6   : > { %v594_v40 = vmul.f32 %v1511_v19, %v592_v37  ;;  %v1394_v37 = vld [vmem:[%s1656_s15 + $0x8] sm:$0xff] }
 0x201   : > { %v1519_v36 = vpop.eup %1518 }
 0x202   : > { %624 = vrot.lane.b32.xlu1 %v1519_v36, %s1589_s8 }
 0x24e   : > { %v588_v39 = vpop.permute.xlu1 %587 }
 0x24f   : > { %v590_v41 = vmul.f32 %v588_v39, %v585_v38 }
 0x251   : > { %v1754_v42 = vadd.f32 %v594_v40, %v590_v41 }
 0x253   : > { %656 = vrot.lane.b32.xlu0 %v1754_v42, %s1589_s8 }
 0x274   : > { %v625_v43 = vpop.permute.xlu1 %624 }
 0x275   : > { %v627_v45 = vmul.f32 %v625_v43, %v622_v44 }
 0x277   : > { %v1759_v47 = vadd.f32 %v628_v46, %v627_v45 }
 0x2c5   : > { %v657_v48 = vpop.permute.xlu0 %656 }
 0x2c6   : > { %v659_v49 = vsel %vm647_vm3, %v657_v48, %v1759_v47 }
 0x2c7   : > { %1450 = vmatmul.mubr.msk.f32.vlgmr.msra.gmra.mxu1 %vm484_vm2, %v659_v49 }
 0x2c8   : > { %1464 = vmatpush3.msra.mxu1 %v1681_v1  ;;  %1471 = vmatprep.mubr.msk.f32.mxu1 %vm1582_vm1, %v1581_v2 }
 0x2c9   : > { %1465 = vmatprep.subr.mxu1 %v1581_v2 }
 0x2ca   : > { %1466 = vmatpush3.msra.mxu1 %v1687_v3 }
 0x2cb   : > { %1467 = vmatprep.subr.mxu1 %v1581_v2 }
 0x2cc   : > { %1468 = vmatpush3.msra.mxu1 %v1700_v5 }
 0x2cd   : > { %1469 = vmatprep.subr.mxu1 %v1581_v2 }
 0x2ce   : > { %1470 = vmatpush3.msra.mxu1 %v1709_v6 }
 0x387   : > { %v733_v50 = vpop.f32.mrf.mxu1 }
 0x388   : > { %768 = vrot.lane.b32.xlu0 %v733_v50, %s1587_s10  ;;  %v744_v51 = vadd.f32 %v733_v50, %v1737_v8  ;;  %v778_v53 = vadd.f32 %v733_v50, %v1739_v9  ;;  %v737_v55 = vadd.f32 %v1384_v54, %v733_v50 }
 0x389   : > { %v1451_v52 = vpop.f32.mrf.mxu1 }
 0x38a   : > { %746 = vrot.lane.b32.xlu1 %v744_v51, %s1586_s30  ;;  %v1387_v56 = vmul.f32 -1.442695, %v737_v55 }
 0x38c   : > { %1520 = vpow2.f32 %v1387_v56 }
 0x38e   : > { %780 = vrot.lane.b32.xlu1 %v778_v53, %s1585_s29 }
 0x399   : > { %v1521_v57 = vpop.eup %1520 }
 0x39a   : > { %v741_v58 = vadd.f32 1.0, %v1521_v57 }
 0x39c   : > { %1522 = vrcp.f32 %v741_v58 }
 0x3a9   : > { %v1523_v62 = vpop.eup %1522 }
 0x3aa   : > { %v756_v16 = vsub.f32 1.0, %v1523_v62 }
 0x3fa   : > { %v769_v60 = vpop.permute.xlu0 %768 }
 0x3fb   : > { %v771_v61 = vadd.f32 %v1385_v59, %v769_v60 }
 0x3fc   : > { %v747_v63 = vpop.permute.xlu1 %746 }
 0x3fd   : > { %v1388_v0 = vmul.f32 -1.442695, %v771_v61  ;;  %v749_v1 = vmul.f32 %v1523_v62, %v747_v63 }
 0x3ff   : > { %1524 = vpow2.f32 %v1388_v0  ;;  %751 = vrot.lane.b32.xlu0 %v749_v1, %s1583_s16 }
 0x400   : > { %v781_v5 = vpop.permute.xlu1 %780 }
 0x40c   : > { %v1525_v2 = vpop.eup %1524 }
 0x40d   : > { %v775_v3 = vadd.f32 1.0, %v1525_v2 }
 0x40f   : > { %1526 = vrcp.f32 %v775_v3 }
 0x41c   : > { %v1527_v4 = vpop.eup %1526 }
 0x41d   : > { %v783_v6 = vmul.f32 %v1527_v4, %v781_v5  ;;  %v790_v22 = vsub.f32 1.0, %v1527_v4  ;;  %v796_v24 = vmul.f32 %v1527_v4, %v659_v49 }
 0x41f   : > { %785 = vrot.lane.b32.xlu1 %v783_v6, %s1583_s16 }
 0x423   : > { %762 = vrot.lane.b32.xlu1 %v659_v49, %s1588_s13 }
 0x471   : > { %v752_v7 = vpop.permute.xlu0 %751 }
 0x472   : > { %v754_v10 = vadd.f32 %v1384_v54, %v752_v7 }
 0x474   : > { %1528 = vtanh.f32 %v754_v10 }
 0x481   : > { %v1529_v11 = vpop.eup %1528 }
 0x482   : > { %758 = vrot.lane.b32.xlu0 %v1529_v11, %s1589_s8 }
 0x491   : > { %v786_v12 = vpop.permute.xlu1 %785 }
 0x492   : > { %v788_v13 = vadd.f32 %v1385_v59, %v786_v12  ;;  %v1402_v12 = vld [vmem:[%s1651_s11 + $0x18] sm:$0xff] }
 0x494   : > { %1530 = vtanh.f32 %v788_v13 }
 0x495   : > { %v763_v15 = vpop.permute.xlu1 %762 }
 0x496   : > { %v765_v18 = vmul.f32 %v1523_v62, %v763_v15 }
 0x4a1   : > { %v1531_v14 = vpop.eup %1530 }
 0x4a2   : > { %792 = vrot.lane.b32.xlu0 %v1531_v14, %s1589_s8 }
 0x4f4   : > { %v759_v17 = vpop.permute.xlu0 %758 }
 0x4f5   : > { %v761_v19 = vmul.f32 %v759_v17, %v756_v16  ;;  %v1000_v17 = vld [vmem:[%s1656_s15] sm:$0xff] }
 0x4f7   : > { %v1785_v20 = vadd.f32 %v765_v18, %v761_v19 }
 0x4f9   : > { %825 = vrot.lane.b32.xlu1 %v1785_v20, %s1589_s8 }
 0x514   : > { %v793_v21 = vpop.permute.xlu0 %792 }
 0x515   : > { %v795_v23 = vmul.f32 %v793_v21, %v790_v22 }
 0x517   : > { %v1789_v25 = vadd.f32 %v796_v24, %v795_v23  ;;  %v1382_v23 = vld [vmem:[%s1666_s21 + $0x18] sm:$0xff]  ;;  %v1390_v24 = vld [vmem:[%s1666_s21 + $0x10] sm:$0xff] }
 0x56b   : > { %v826_v26 = vpop.permute.xlu1 %825 }
 0x56c   : > { %v828_v27 = vsel %vm647_vm3, %v826_v26, %v1789_v25  ;;  %v1399_v26 = vld [vmem:[%s1666_s21 + $0x8] sm:$0xff] }
 0x56d   : > { %1461 = vmatmul.mubr.msk.f32.vlgmr.msra.gmra.mxu0 %vm484_vm2, %v828_v27 }
 0x62d   : > { %v902_v28 = vpop.f32.mrf.mxu0 }
 0x62e   : > { %937 = vrot.lane.b32.xlu1 %v902_v28, %s1587_s10  ;;  %v913_v29 = vadd.f32 %v902_v28, %v1737_v8  ;;  %v947_v31 = vadd.f32 %v902_v28, %v1739_v9  ;;  %v906_v33 = vadd.f32 %v1393_v32, %v902_v28 }
 0x62f   : > { %v1462_v30 = vpop.f32.mrf.mxu0 }
 0x630   : > { %915 = vrot.lane.b32.xlu0 %v913_v29, %s1586_s30  ;;  %v1396_v34 = vmul.f32 -1.442695, %v906_v33  ;;  %v1389_v33 = vld [vmem:[%s1661_s18 + $0x8] sm:$0xff] }
 0x632   : > { %1532 = vpow2.f32 %v1396_v34  ;;  %v1398_v34 = vld [vmem:[%s1661_s18 + $0x10] sm:$0xff] }
 0x634   : > { %949 = vrot.lane.b32.xlu0 %v947_v31, %s1585_s29 }
 0x63f   : > { %v1533_v35 = vpop.eup %1532 }
 0x640   : > { %v910_v36 = vadd.f32 1.0, %v1533_v35  ;;  %v1406_v35 = vld [vmem:[%s1661_s18 + $0x18] sm:$0xff] }
 0x642   : > { %1534 = vrcp.f32 %v910_v36 }
 0x64f   : > { %v1535_v40 = vpop.eup %1534 }
 0x650   : > { %v925_v58 = vsub.f32 1.0, %v1535_v40 }
 0x6a0   : > { %v938_v38 = vpop.permute.xlu1 %937 }
 0x6a1   : > { %v940_v39 = vadd.f32 %v1394_v37, %v938_v38 }
 0x6a2   : > { %v916_v41 = vpop.permute.xlu0 %915 }
 0x6a3   : > { %v1397_v43 = vmul.f32 -1.442695, %v940_v39  ;;  %v918_v44 = vmul.f32 %v1535_v40, %v916_v41 }
 0x6a5   : > { %1536 = vpow2.f32 %v1397_v43  ;;  %920 = vrot.lane.b32.xlu1 %v918_v44, %s1583_s16 }
 0x6a6   : > { %v950_v49 = vpop.permute.xlu0 %949 }
 0x6b2   : > { %v1537_v45 = vpop.eup %1536 }
 0x6b3   : > { %v944_v46 = vadd.f32 1.0, %v1537_v45 }
 0x6b5   : > { %1538 = vrcp.f32 %v944_v46 }
 0x6c2   : > { %v1539_v48 = vpop.eup %1538 }
 0x6c3   : > { %v952_v50 = vmul.f32 %v1539_v48, %v950_v49  ;;  %v959_v0 = vsub.f32 1.0, %v1539_v48  ;;  %v965_v2 = vmul.f32 %v1539_v48, %v828_v27 }
 0x6c5   : > { %954 = vrot.lane.b32.xlu0 %v952_v50, %s1583_s16 }
 0x6c9   : > { %931 = vrot.lane.b32.xlu0 %v828_v27, %s1588_s13 }
 0x717   : > { %v921_v51 = vpop.permute.xlu1 %920 }
 0x718   : > { %v923_v52 = vadd.f32 %v1393_v32, %v921_v51  ;;  %v630_v32 = vld [vmem:[%s1661_s18] sm:$0xff] }
 0x71a   : > { %1540 = vtanh.f32 %v923_v52  ;;  %v1142_v52 = vld [vmem:[%s1666_s21] sm:$0xff] }
 0x727   : > { %v1541_v53 = vpop.eup %1540 }
 0x728   : > { %927 = vrot.lane.b32.xlu1 %v1541_v53, %s1589_s8 }
 0x737   : > { %v955_v54 = vpop.permute.xlu0 %954 }
 0x738   : > { %v957_v55 = vadd.f32 %v1394_v37, %v955_v54 }
 0x73a   : > { %1542 = vtanh.f32 %v957_v55 }
 0x73b   : > { %v932_v57 = vpop.permute.xlu0 %931 }
 0x73c   : > { %v934_v60 = vmul.f32 %v1535_v40, %v932_v57 }
 0x747   : > { %v1543_v56 = vpop.eup %1542 }
 0x748   : > { %961 = vrot.lane.b32.xlu1 %v1543_v56, %s1589_s8 }
 0x79a   : > { %v928_v59 = vpop.permute.xlu1 %927 }
 0x79b   : > { %v930_v61 = vmul.f32 %v928_v59, %v925_v58 }
 0x79d   : > { %v1806_v62 = vadd.f32 %v934_v60, %v930_v61 }
 0x79f   : > { %994 = vrot.lane.b32.xlu0 %v1806_v62, %s1589_s8 }
 0x7ba   : > { %v962_v63 = vpop.permute.xlu1 %961 }
 0x7bb   : > { %v964_v1 = vmul.f32 %v962_v63, %v959_v0 }
 0x7bd   : > { %v1810_v3 = vadd.f32 %v965_v2, %v964_v1 }
 0x811   : > { %v995_v4 = vpop.permute.xlu0 %994 }
 0x812   : > { %v1814_v5 = vsel %vm647_vm3, %v995_v4, %v1810_v3 }
 0x813   : > { %1472 = vmatmul.mubr.msk.f32.vlgmr.msra.gmra.mxu1 %vm484_vm2, %v1814_v5 }
 0x8d3   : > { %v1070_v6 = vpop.f32.mrf.mxu1 }
 0x8d4   : > { %1105 = vrot.lane.b32.xlu1 %v1070_v6, %s1587_s10  ;;  %v1081_v7 = vadd.f32 %v1070_v6, %v1737_v8  ;;  %v1115_v11 = vadd.f32 %v1070_v6, %v1739_v9  ;;  %v1074_v13 = vadd.f32 %v1402_v12, %v1070_v6 }
 0x8d5   : > { %v1473_v10 = vpop.f32.mrf.mxu1 }
 0x8d6   : > { %1083 = vrot.lane.b32.xlu0 %v1081_v7, %s1586_s30  ;;  %v1404_v14 = vmul.f32 -1.442695, %v1074_v13 }
 0x8d8   : > { %1117 = vrot.lane.b32.xlu1 %v1115_v11, %s1585_s29  ;;  %1544 = vpow2.f32 %v1404_v14 }
 0x8e5   : > { %v1545_v15 = vpop.eup %1544 }
 0x8e6   : > { %v1078_v16 = vadd.f32 1.0, %v1545_v15 }
 0x8e8   : > { %1546 = vrcp.f32 %v1078_v16 }
 0x8f5   : > { %v1825_v19 = vpop.eup %1546 }
 0x8f6   : > { %v1093_v56 = vsub.f32 1.0, %v1825_v19 }
 0x946   : > { %v1106_v18 = vpop.permute.xlu1 %1105 }
 0x947   : > { %v1108_v8 = vadd.f32 %v1106_v18, %v1000_v17 }
 0x948   : > { %v1084_v21 = vpop.permute.xlu0 %1083 }
 0x949   : > { %v1405_v22 = vmul.f32 -1.442695, %v1108_v8  ;;  %v1086_v9 = vmul.f32 %v1825_v19, %v1084_v21 }
 0x94a   : > { %v1118_v30 = vpop.permute.xlu1 %1117 }
 0x94b   : > { %1548 = vpow2.f32 %v1405_v22  ;;  %1088 = vrot.lane.b32.xlu0 %v1086_v9, %s1583_s16 }
 0x94f   : > { %639 = vrot.lane.b32.xlu0 %v1382_v23, %s1588_s13 }
 0x953   : > { %808 = vrot.lane.b32.xlu0 %v1390_v24, %s1588_s13 }
 0x957   : > { %977 = vrot.lane.b32.xlu0 %v1399_v26, %s1588_s13 }
 0x958   : > { %v1549_v27 = vpop.eup %1548 }
 0x959   : > { %v1112_v28 = vadd.f32 1.0, %v1549_v27 }
 0x95b   : > { %1550 = vrcp.f32 %v1112_v28 }
 0x968   : > { %v1551_v29 = vpop.eup %1550 }
 0x969   : > { %v1120_v31 = vmul.f32 %v1551_v29, %v1118_v30  ;;  %v1127_v63 = vsub.f32 1.0, %v1551_v29  ;;  %v1133_v2 = vmul.f32 %v1551_v29, %v1814_v5 }
 0x96b   : > { %1122 = vrot.lane.b32.xlu1 %v1120_v31, %s1583_s16 }
 0x96f   : > { %1099 = vrot.lane.b32.xlu1 %v1814_v5, %s1588_s13 }
 0x973   : > { %632 = vrot.lane.b32.xlu1 %v630_v32, %s1588_s13 }
 0x977   : > { %801 = vrot.lane.b32.xlu1 %v1389_v33, %s1588_s13 }
 0x97b   : > { %970 = vrot.lane.b32.xlu1 %v1398_v34, %s1588_s13 }
 0x97f   : > { %1138 = vrot.lane.b32.xlu1 %v1406_v35, %s1588_s13 }
 0x9bd   : > { %v1089_v36 = vpop.permute.xlu0 %1088 }
 0x9be   : > { %v1091_v37 = vadd.f32 %v1402_v12, %v1089_v36 }
 0x9c0   : > { %1552 = vtanh.f32 %v1091_v37 }
 0x9c1   : > { %v640_v49 = vpop.permute.xlu0 %639 }
 0x9c2   : > { %v642_v53 = vadd.f32 %v640_v49, %v1759_v47 }
 0x9cd   : > { %v1553_v38 = vpop.eup %1552 }
 0x9ce   : > { %1095 = vrot.lane.b32.xlu0 %v1553_v38, %s1589_s8 }
 0x9dd   : > { %v1123_v39 = vpop.permute.xlu1 %1122 }
 0x9de   : > { %v1125_v40 = vadd.f32 %v1123_v39, %v1000_v17 }
 0x9e0   : > { %1554 = vtanh.f32 %v1125_v40 }
 0x9e1   : > { %v1100_v41 = vpop.permute.xlu1 %1099 }
 0x9e2   : > { %v1102_v58 = vmul.f32 %v1825_v19, %v1100_v41 }
 0x9e5   : > { %v633_v43 = vpop.permute.xlu1 %632 }
 0x9e6   : > { %v635_v44 = vadd.f32 %v633_v43, %v1754_v42  ;;  %v809_v42 = vpop.permute.xlu0 %808 }
 0x9e8   : > { %644 = vrot.lane.b32.xlu1 %v635_v44, %s1589_s8 }
 0x9e9   : > { %v802_v45 = vpop.permute.xlu1 %801 }
 0x9ea   : > { %v804_v46 = vadd.f32 %v802_v45, %v1785_v20  ;;  %v811_v20 = vadd.f32 %v809_v42, %v1789_v25  ;;  %v978_v54 = vpop.permute.xlu0 %977 }
 0x9eb   : > { %v980_v55 = vadd.f32 %v978_v54, %v1810_v3 }
 0x9ec   : > { %813 = vrot.lane.b32.xlu1 %v804_v46, %s1589_s8 }
 0x9ed   : > { %v1555_v48 = vpop.eup %1554  ;;  %v971_v50 = vpop.permute.xlu1 %970 }
 0x9ee   : > { %v973_v51 = vadd.f32 %v971_v50, %v1806_v62  ;;  %1129 = vrot.lane.b32.xlu0 %v1555_v48, %s1589_s8 }
 0x9f0   : > { %982 = vrot.lane.b32.xlu1 %v973_v51, %s1589_s8 }
 0x9f1   : > { %v1139_v59 = vpop.permute.xlu1 %1138 }
 0x9f2   : > { %1144 = vrot.lane.b32.xlu0 %v1142_v52, %s1588_s13 }
 0x9f6   : > { %650 = vrot.lane.b32.xlu0 %v642_v53, %s1589_s8 }
 0x9fa   : > { %819 = vrot.lane.b32.xlu0 %v811_v20, %s1589_s8 }
 0x9fe   : > { %988 = vrot.lane.b32.xlu0 %v980_v55, %s1589_s8 }
 0xa40   : > { %v1096_v57 = vpop.permute.xlu0 %1095 }
 0xa41   : > { %v1098_v47 = vmul.f32 %v1096_v57, %v1093_v56 }
 0xa43   : > { %v1103_v60 = vadd.f32 %v1102_v58, %v1098_v47 }
 0xa45   : > { %v1141_v61 = vadd.f32 %v1139_v59, %v1103_v60  ;;  %1160 = vrot.lane.b32.xlu1 %v1103_v60, %s1589_s8 }
 0xa47   : > { %1149 = vrot.lane.b32.xlu0 %v1141_v61, %s1589_s8 }
 0xa5a   : > { %v645_v25 = vpop.permute.xlu1 %644 }
 0xa5b   : > { %648 = vst.msk [vmem:[%s1671_s28] sm:$0xff] %vm647_vm3, %v645_v25 }
 0xa5e   : > { %v814_v62 = vpop.permute.xlu1 %813 }
 0xa5f   : > { %1391 = vst.msk [vmem:[%s1671_s28 + $0x8] sm:$0xff] %vm647_vm3, %v814_v62 }
 0xa60   : > { %v1130_v0 = vpop.permute.xlu0 %1129 }
 0xa61   : > { %v1132_v1 = vmul.f32 %v1130_v0, %v1127_v63 }
 0xa62   : > { %v983_v3 = vpop.permute.xlu1 %982 }
 0xa63   : > { %1400 = vst.msk [vmem:[%s1671_s28 + $0x10] sm:$0xff] %vm647_vm3, %v983_v3  ;;  %v1134_v4 = vadd.f32 %v1133_v2, %v1132_v1 }
 0xa64   : > { %v1145_v6 = vpop.permute.xlu0 %1144 }
 0xa65   : > { %v1147_v7 = vadd.f32 %v1145_v6, %v1134_v4 }
 0xa67   : > { %1155 = vrot.lane.b32.xlu1 %v1147_v7, %s1589_s8 }
 0xa68   : > { %v651_v10 = vpop.permute.xlu0 %650 }
 0xa69   : > { %1383 = vst.msk [vmem:[%s1676_s9 + $0x18] sm:$0xff] %vm647_vm3, %v651_v10 }
 0xa6c   : > { %v820_v11 = vpop.permute.xlu0 %819 }
 0xa6d   : > { %1392 = vst.msk [vmem:[%s1676_s9 + $0x10] sm:$0xff] %vm647_vm3, %v820_v11 }
 0xa70   : > { %v989_v12 = vpop.permute.xlu0 %988 }
 0xa71   : > { %1401 = vst.msk [vmem:[%s1676_s9 + $0x8] sm:$0xff] %vm647_vm3, %v989_v12 }
 0xab7   : > { %v1161_v5 = vpop.permute.xlu1 %1160 }
 0xab8   : > { %v1163_v13 = vsel %vm647_vm3, %v1161_v5, %v1134_v4 }
 0xab9   : > { %1164 = vst.msk [vmem:[#allocation2] sm:$0xff] %vm484_vm2, %v1163_v13  ;;  %v1150_v14 = vpop.permute.xlu0 %1149 }
 0xaba   : > { %1407 = vst.msk [vmem:[%s1671_s28 + $0x18] sm:$0xff] %vm647_vm3, %v1150_v14 }
 0xad9   : > { %v1156_v15 = vpop.permute.xlu1 %1155 }
 0xada   : > { %1158 = vst.msk [vmem:[%s1676_s9] sm:$0xff] %vm647_vm3, %v1156_v15 }
 0xadb PF: > { %s18_s26 = sadd.s32 1, %s1578_s26   ;;  %s1903_s24 = smov %s1574_s25 }
 0xadc   : > { %p15_p7 = scmp.ge.s32.totalorder %s18_s26, 4   ;;  %s1904_s25 = smov %s1906_s27 }
 0xade   :  { %17 = sbr.rel (!%p15_p7) target bundleno = 2 (0x2), region = 117 }

// kernel: lan_net_forward.17
= control target key start
LH: loop header
LB: loop body
LE: loop exit
PB: predicated region body
PF: predicated region fallthrough
CT: control target
= control target key end

     0   :  { %s869_s21 = smov 0   ;;  %s871_s22 = smov 0   ;;  %s947_s0 = inlined_call_operand.vmem [shape: f32[1,64,16], index: 0, kind: input, shape index: {}]   ;;  %s948_s1 = inlined_call_operand.vmem [shape: f32[1,64,16], index: 1, kind: input, shape index: {}]   ;;  %s949_s2 = inlined_call_operand.vmem [shape: f32[1,64,1], index: 2, kind: input, shape index: {}]   ;;  %s950_s3 = inlined_call_operand.vmem [shape: f32[16,10], index: 3, kind: input, shape index: {}]   ;;  %s951_s4 = inlined_call_operand.vmem [shape: f32[16,10], index: 4, kind: input, shape index: {}]   ;;  %s952_s5 = inlined_call_operand.vmem [shape: f32[1,10], index: 5, kind: input, shape index: {}]   ;;  %s953_s6 = inlined_call_operand.vmem [shape: f32[1,8,10], index: 6, kind: output, shape index: {}]  }
   0x1   :  { %s873_s23 = smov 0  }
   0x2 LB: > { %s25_s24 = sadd.s32 1, %s823_s22  ;;  %p723_p0 = scmp.ge.s32.totalorder %s827_s23, 1  ;;  %s827_s23 = sphi %s873_s23, %s16_s23   ;;  %s823_s22 = sphi %s871_s22, %s955_s22   ;;  %s819_s21 = sphi %s869_s21, %s954_s21  }
   0x3   : > { %p26_p1 = scmp.ge.s32.totalorder %s25_s24, 2  ;;  %p265_p2 = scmp.lt.s32.totalorder %s827_s23, 3 }
   0x5   : > { %s957_s24 = smov (%p26_p1, %s25_s24), 0  ;;  %p266_p3 = pnand %p723_p0, %p265_p2 }
   0x6   : > { %s724_s25 = sshll.u32 (!%p266_p3), %s819_s21, 2  ;;  %p730_p5 = scmp.ne.s32.totalorder (!%p266_p3), %s819_s21, 0 }
   0x7   : > { %269 = sbr.rel (%p266_p3) target bundleno = 816 (0x330), region = 44  ;;  %p319_p4 = scmp.lt.s32.totalorder (!%p266_p3), %s724_s25, 7 }
   0xc   : > { %s959_s25 = smov (!%p319_p4, %s724_s25), 7  ;;  %353 = sbr.rel (%p730_p5) target bundleno = 20 (0x14), region = 48 }
   0xd   : > { %s725_s26 = sshll.u32 %s959_s25, 3 }
   0xe   : > { %s893_s29 = scalar_lea.vmem %s947_s0, %s725_s26  ;;  %s898_s8 = scalar_lea.vmem %s948_s1, %s725_s26 }
   0xf   : > { %s344_s11 = scalar_lea.vmem %s949_s2, %s725_s26 }
  0x11   : > { %vm354_vm0 = vcmask 130048   ;;  %vm357_vm1 = vcmask 7168   ;;  %v829_v0 = vmov 0.0  }
  0x12   : > { %355 = vst.msk [vmem:[#allocation2] sm:$0xff] %vm354_vm0, %v829_v0  ;;  %356 = vst.msk [vmem:[#allocation3] sm:$0xff] %vm354_vm0, %v829_v0 }
  0x13   : > { %358 = vst.msk [vmem:[#allocation4] sm:$0xff] %vm357_vm1, %v829_v0 }
  0x14 PF: > { %v734_v1 = vld [vmem:[%s344_s11 + $0x10] sm:$0xff]  ;;  %v359_v2 = vld [vmem:[%s344_s11] sm:$0xff]  ;;  %v731_v3 = vld [vmem:[%s344_s11 + $0x8] sm:$0xff]  ;;  %v830_v4 = vmov 0   ;;  %vm429_vm2 = vcmask 7168   ;;  %vm422_vm3 = vcmask 130048  }
  0x15   : > { %797 = vset.pattern.permute.xlu1 %v830_v4  ;;  %796 = vset.pattern.permute.xlu0 %v830_v4  ;;  %v387_v5 = vadd.f32 %v731_v3, %v359_v2  ;;  %v737_v7 = vld [vmem:[%s344_s11 + $0x18] sm:$0xff]  ;;  %v360_v13 = vld [vmem:[%s893_s29] sm:$0xff]  ;;  %v732_v15 = vld [vmem:[%s893_s29 + $0x8] sm:$0xff]  ;;  %p740_p6 = scmp.ne.s32.totalorder %s819_s21, 1 }
  0x16   : > { %394 = vperm.xlu1 %797, %v734_v1   ;;  %363 = vperm.xlu0 %796, %v359_v2   ;;  %v368_v14 = vld [vmem:[%s898_s8] sm:$0xff]  ;;  %v733_v16 = vld [vmem:[%s898_s8 + $0x8] sm:$0xff]  ;;  %v735_v17 = vld [vmem:[%s893_s29 + $0x10] sm:$0xff] }
  0x17   : > { %v403_v6 = vadd.f32 %v734_v1, %v387_v5  ;;  %v736_v18 = vld [vmem:[%s898_s8 + $0x10] sm:$0xff]  ;;  %v738_v24 = vld [vmem:[%s893_s29 + $0x18] sm:$0xff] }
  0x18   : > { %v739_v25 = vld [vmem:[%s898_s8 + $0x18] sm:$0xff] }
  0x19   : > { %v419_v9 = vadd.f32 %v737_v7, %v403_v6  ;;  %v420_v35 = vld [vmem:[#allocation2] sm:$0xff]  ;;  %v424_v36 = vld [vmem:[#allocation3] sm:$0xff] }
  0x1a   : > { %v427_v8 = vld [vmem:[#allocation4] sm:$0xff]  ;;  %410 = vperm.xlu1 %797, %v737_v7   ;;  %378 = vperm.xlu0 %796, %v731_v3  }
  0x1b   : > { %v428_v10 = vadd.f32 %v427_v8, %v419_v9 }
  0x1d   : > { %430 = vst.msk [vmem:[#allocation4] sm:$0xff] %vm429_vm2, %v428_v10 }
  0x91   : > { %v395_v11 = vpop.permute.xlu1 %394  ;;  %v364_v12 = vpop.permute.xlu0 %363 }
  0x92   : > { %v366_v20 = vmul.f32 %v364_v12, %v360_v13  ;;  %v369_v21 = vmul.f32 %v368_v14, %v364_v12  ;;  %v397_v27 = vmul.f32 %v735_v17, %v395_v11  ;;  %v401_v28 = vmul.f32 %v736_v18, %v395_v11 }
  0x95   : > { %v379_v19 = vpop.permute.xlu0 %378  ;;  %v411_v26 = vpop.permute.xlu1 %410 }
  0x96   : > { %v381_v22 = vmul.f32 %v732_v15, %v379_v19  ;;  %v385_v23 = vmul.f32 %v733_v16, %v379_v19  ;;  %v413_v31 = vmul.f32 %v738_v24, %v411_v26  ;;  %v417_v32 = vmul.f32 %v739_v25, %v411_v26 }
  0x98   : > { %v382_v29 = vadd.f32 %v381_v22, %v366_v20  ;;  %v386_v30 = vadd.f32 %v385_v23, %v369_v21 }
  0x9a   : > { %v398_v33 = vadd.f32 %v397_v27, %v382_v29  ;;  %v402_v34 = vadd.f32 %v401_v28, %v386_v30 }
  0x9c   : > { %v414_v37 = vadd.f32 %v413_v31, %v398_v33  ;;  %v418_v38 = vadd.f32 %v417_v32, %v402_v34  ;;  %434 = sbr.rel (%p740_p6) target bundleno = 816 (0x330), region = 52 }
  0x9e   : > { %v421_v39 = vadd.f32 %v420_v35, %v414_v37  ;;  %v425_v40 = vadd.f32 %v424_v36, %v418_v38 }
  0xa0   : > { %423 = vst.msk [vmem:[#allocation2] sm:$0xff] %vm422_vm3, %v421_v39  ;;  %426 = vst.msk [vmem:[#allocation3] sm:$0xff] %vm422_vm3, %v425_v40 }
  0xa1   : > { %v435_v41 = vld [vmem:[#allocation4] sm:$0xff]  ;;  %v450_v42 = vld [vmem:[%s951_s4 + $0x8] sm:$0xff]  ;;  %v831_v44 = vmov 0   ;;  %v832_v46 = vmov 0.0   ;;  %v449_v47 = vld [vmem:[%s951_s4] sm:$0xff]  ;;  %vm833_vm4 = vmmov 0  }
  0xa2   : > { %v448_v43 = vld [vmem:[%s950_s3 + $0x8] sm:$0xff]  ;;  %798 = vset.pattern.permute.xlu0 %v831_v44  ;;  %v436_v45 = vmax.f32 %v435_v41, 1e-06  ;;  %753 = vmatprep.subr.mxu0 %v832_v46  ;;  %v447_v48 = vld [vmem:[%s950_s3] sm:$0xff]  ;;  %vm605_vm5 = vcmask 80896  }
  0xa3   : > { %760 = vmatprep.subr.mxu1 %v832_v46  ;;  %754 = vmatpush3.msra.mxu0 %v450_v42  ;;  %v743_v57 = vld [vmem:[%s952_s5] ss:$0 sm:$0xff] }
  0xa4   : > { %440 = vperm.xlu0 %798, %v436_v45   ;;  %761 = vmatpush3.msra.mxu1 %v448_v43 }
  0xa5   : > { %755 = vmatprep.subr.mxu0 %v832_v46  ;;  %762 = vmatprep.subr.mxu1 %v832_v46 }
  0xa6   : > { %756 = vmatpush3.msra.mxu0 %v449_v47  ;;  %757 = vmatprep.mubr.msk.f32.mxu0 %vm833_vm4, %v832_v46 }
  0xa7   : > { %763 = vmatpush3.msra.mxu1 %v447_v48  ;;  %764 = vmatprep.mubr.msk.f32.mxu1 %vm833_vm4, %v832_v46  ;;  %v445_v50 = vld [vmem:[#allocation3] sm:$0xff]  ;;  %v437_v51 = vld [vmem:[#allocation2] sm:$0xff] }
 0x11f   : > { %v441_v49 = vpop.permute.xlu0 %440 }
 0x120   : > { %799 = vrcp.f32 %v441_v49 }
 0x12d   : > { %v800_v52 = vpop.eup %799 }
 0x12e   : > { %v446_v53 = vmul.f32 %v800_v52, %v445_v50  ;;  %v444_v54 = vmul.f32 %v800_v52, %v437_v51 }
 0x130   : > { %758 = vmatmul.mubr.msk.f32.vlgmr.msra.gmra.mxu0 %vm422_vm3, %v446_v53  ;;  %765 = vmatmul.mubr.msk.f32.vlgmr.msra.gmra.mxu1 %vm422_vm3, %v444_v54 }
 0x1f0   : > { %v520_v55 = vpop.f32.mrf.mxu0  ;;  %v593_v56 = vpop.f32.mrf.mxu1 }
 0x1f1   : > { %v594_v58 = vadd.f32 %v593_v56, %v520_v55 }
 0x1f2   : > { %v759_v59 = vpop.f32.mrf.mxu0  ;;  %v766_v60 = vpop.f32.mrf.mxu1 }
 0x1f3   : > { %v604_v61 = vadd.f32 %v743_v57, %v594_v58 }
 0x1f5   : > { %v606_v62 = vsel %vm605_vm5, %v604_v61, -inf }
 0x1f6   : > { %607 = vmax.xlane.f32.xlu0 %v606_v62 }
 0x27f   : > { %v608_v63 = vpop.xlane.xlu0 %607 }
 0x280   : > { %v609_v0 = vsub.f32 %v604_v61, %v608_v63 }
 0x282   : > { %v610_v1 = vmul.f32 1.442695, %v609_v0 }
 0x284   : > { %801 = vpow2.f32 %v610_v1 }
 0x291   : > { %v802_v2 = vpop.eup %801 }
 0x292   : > { %v612_v3 = vsel %vm605_vm5, %v802_v2, 0.0 }
 0x293   : > { %613 = vadd.xlane.f32.xlu1 %v612_v3 }
 0x31c   : > { %v614_v4 = vpop.xlane.xlu1 %613 }
 0x31d   : > { %803 = vlog2.f32 %v614_v4 }
 0x32a   : > { %v804_v5 = vpop.eup %803 }
 0x32b   : > { %v616_v6 = vmul.f32 0.6931472, %v804_v5 }
 0x32d   : > { %v617_v7 = vsub.f32 %v609_v0, %v616_v6 }
 0x32f   : > { %618 = vst.msk [vmem:[%s953_s6] sm:$0xff] %vm605_vm5, %v617_v7 }
 0x330 PF: > { %s16_s23 = sadd.s32 1, %s827_s23   ;;  %s954_s21 = smov %s823_s22 }
 0x331   : > { %p13_p7 = scmp.ge.s32.totalorder %s16_s23, 4   ;;  %s955_s22 = smov %s957_s24 }
 0x333   :  { %15 = sbr.rel (!%p13_p7) target bundleno = 2 (0x2), region = 97 }

</bundles_post_ra>
